<compile_context>
chip_gen: v5e
topology: v5e:2x2
jax: 0.10.0
libtpu: 0.0.40
codegen_flags: <defaults>
</compile_context>

<pallas_src>
import jax
import jax.numpy as jnp
from jax.experimental import pallas as pl
from jax.experimental.pallas import tpu as pltpu

_SELU_ALPHA = 1.6732632423543772848170429916717
_SELU_SCALE = 1.0507009873554804934193349852946


def _round_up(n, m):
    return ((n + m - 1) // m) * m


def _cdiv(a, b):
    return (a + b - 1) // b


def _choose_tiling(batch, max_block_rows=1024):
    """Pad batch to a multiple of 8 (not of the tile), keep grid length even
    (v7x megacore), cap the tile at max_block_rows."""
    b8 = _round_up(max(batch, 1), 8)
    grid_len = max(2, _cdiv(b8, max_block_rows))
    grid_len = _round_up(grid_len, 2)             # even -> splits across 2 TCs on v7x
    block_b = _round_up(_cdiv(b8, grid_len), 8)   # sublane/MXU row granularity is 8
    return grid_len, block_b, grid_len * block_b


def _mlp_kernel(x_ref, w1_ref, b1_ref, wh_ref, bh_ref, w5_ref, b5_ref,
                w6_ref, b6_ref, o_ref):
    # Feature-major: activations are (features, batch_tile); batch is lane-dense.
    x = x_ref[0]                     # (n_p, tb) f32
    mm_dtype = w1_ref.dtype          # bf16 (or f32 if use_bf16=False)

    def linear(w, v, b):
        # MXU matmul with bf16 operands, f32 accumulation; f32 bias add on VPU.
        acc = jnp.dot(w, v.astype(mm_dtype), preferred_element_type=jnp.float32)
        return acc + b

    y = jnp.maximum(linear(w1_ref[...], x, b1_ref[...]), 0.0)      # fc1 + relu
    y = jnp.maximum(linear(wh_ref[0], y, bh_ref[0]), 0.0)          # fc2 + relu
    y = jnp.maximum(linear(wh_ref[1], y, bh_ref[1]), 0.0)          # fc3 + relu
    y = jnp.maximum(linear(wh_ref[2], y, bh_ref[2]), 0.0)          # fc4 + relu
    y = jnp.maximum(x + linear(w5_ref[...], y, b5_ref[...]), 0.0)  # fc5 + res + relu

    # fc6: contract the n_particles (sublane) axis on the VPU/XLU.  Result is a
    # lane-dense (1, tb) row -> lane-dense SELU + unmasked store.
    z = jnp.sum(y * w6_ref[...], axis=0, keepdims=True) + b6_ref[...]   # (1, tb)

    # SELU.  Negative branch alpha*(exp(z)-1): one EUP push, no divide; exact
    # zeros feed the positive branch so the cancellation is numerically benign.
    zn = jnp.minimum(z, 0.0)
    neg = _SELU_ALPHA * (jnp.exp(zn) - 1.0)
    selu = _SELU_SCALE * jnp.where(z > 0.0, z, neg)
    o_ref[...] = selu.reshape(o_ref.shape).astype(o_ref.dtype)


def prepare_params(params, *, use_bf16=True, hidden_pad_multiple=256):
    """One-time weight prep (hoist out of the forward):
       * transpose to native (out, in) layout (kernel computes W @ h),
       * zero-pad hidden 200 -> 256 (exact: padded units have zero weight+bias,
         relu(0) = 0, and their fan-out columns are zero),
       * cast matmul weights to bf16, pack the three 256x256 layers together."""
    n_p, h = params["w1"].shape
    hp = _round_up(h, hidden_pad_multiple)
    wdt = jnp.bfloat16 if use_bf16 else jnp.float32

    def w_oi(w, rows, cols):                      # (in,out) -> padded (out,in)
        wt = w.T
        return jnp.pad(wt, ((0, rows - wt.shape[0]), (0, cols - wt.shape[1])))

    def b_col(b, rows):                           # (1,out) -> padded (out,1)
        bt = b.reshape(-1, 1)
        return jnp.pad(bt, ((0, rows - bt.shape[0]), (0, 0)))

    return {
        "w1": w_oi(params["w1"], hp, n_p).astype(wdt),                    # (hp, n_p)
        "b1": b_col(params["b1"], hp).astype(jnp.float32),                # (hp, 1)
        "wh": jnp.stack([w_oi(params[f"w{i}"], hp, hp)
                         for i in (2, 3, 4)]).astype(wdt),                # (3, hp, hp)
        "bh": jnp.stack([b_col(params[f"b{i}"], hp)
                         for i in (2, 3, 4)]).astype(jnp.float32),        # (3, hp, 1)
        "w5": w_oi(params["w5"], n_p, hp).astype(wdt),                    # (n_p, hp)
        "b5": b_col(params["b5"], n_p).astype(jnp.float32),               # (n_p, 1)
        # fc6 runs on the VPU/XLU: keep it f32 as an (n_p, 1) column.
        "w6": params["w6"].reshape(n_p, 1).astype(jnp.float32),
        "b6": params["b6"].reshape(1, 1).astype(jnp.float32),
    }


def reference_network1_forward(x, kp, *, max_block_rows=1024):
    """x: (B, n_particles) f32.  kp: output of prepare_params.  Returns (B,1) f32.
    Intended to be wrapped in jax.jit so the layout plumbing fuses."""
    B, n_p = x.shape
    hp = kp["w1"].shape[0]
    grid_len, block_b, B_pad = _choose_tiling(B, max_block_rows)

    # Pad batch to grid_len*block_b (multiple of 8) and lay it out feature-major,
    # pre-tiled as (grid_len, n_p, block_b) so every BlockSpec uses full trailing
    # dims (legal for any block_b, incl. non-multiples of 128).
    x_p = jnp.pad(x.astype(jnp.float32), ((0, B_pad - B), (0, 0)))
    x_t = x_p.T.reshape(n_p, grid_len, block_b).transpose(1, 0, 2)

    weight_keys = ("w1", "b1", "wh", "bh", "w5", "b5", "w6", "b6")
    weights = [kp[k] for k in weight_keys]

    # Weights/biases: full-array blocks with constant index_map -> fetched once
    # and kept VMEM-resident across the whole grid (~400 KiB total).
    def resident(a):
        zeros = (0,) * a.ndim
        return pl.BlockSpec(a.shape, lambda i, _z=zeros: _z)

    in_specs = [pl.BlockSpec((1, n_p, block_b), lambda i: (i, 0, 0))]
    in_specs += [resident(a) for a in weights]
    out_spec = pl.BlockSpec((1, 1, block_b), lambda i: (i, 0, 0))

    weight_bytes = sum(int(a.size) * a.dtype.itemsize for a in weights)
    flops = 2 * B_pad * (n_p * hp + 3 * hp * hp + hp * n_p + n_p)
    cost = pl.CostEstimate(
        flops=int(flops),
        transcendentals=int(B_pad),
        bytes_accessed=int(B_pad * n_p * 4 + B_pad * 4 + weight_bytes),
    )

    # v5e's default scoped VMEM is 16 MiB; raise it once tiles get big.
    vmem_limit = 32 * 1024 * 1024 if block_b >= 512 else None

    fn = pl.pallas_call(
        _mlp_kernel,
        out_shape=jax.ShapeDtypeStruct((grid_len, 1, block_b), jnp.float32),
        grid_spec=pltpu.PrefetchScalarGridSpec(
            num_scalar_prefetch=0,
            grid=(grid_len,),
            in_specs=in_specs,
            out_specs=out_spec,
        ),
        compiler_params=pltpu.CompilerParams(
            dimension_semantics=("parallel",),   # shard batch tiles across TCs
            vmem_limit_bytes=vmem_limit,
        ),
        cost_estimate=cost,
    )
    out = fn(x_t, *weights)                      # (grid_len, 1, block_b)
    return out.reshape(B_pad, 1)[:B]


def init_params(key, n_particles, hidden=200):
    """PyTorch nn.Linear-style init (uniform +/- 1/sqrt(fan_in)).  Weights are
    stored as (in, out); biases as (1, out).  hidden=200 matches the module."""
    dims = [(n_particles, hidden), (hidden, hidden), (hidden, hidden),
            (hidden, hidden), (hidden, n_particles), (n_particles, 1)]
    params = {}
    for idx, (fan_in, fan_out) in enumerate(dims, start=1):
        key, kw, kb = jax.random.split(key, 3)
        bound = 1.0 / jnp.sqrt(jnp.float32(fan_in))
        params[f"w{idx}"] = jax.random.uniform(
            kw, (fan_in, fan_out), jnp.float32, minval=-bound, maxval=bound)
        params[f"b{idx}"] = jax.random.uniform(
            kb, (1, fan_out), jnp.float32, minval=-bound, maxval=bound)
    return params


def reference_forward_f32(x, params):
    """Pure-JAX full-f32 reference of the PyTorch module (HIGHEST precision)."""
    hi = jax.lax.Precision.HIGHEST
    relu = lambda v: jnp.maximum(v, 0.0)
    dot = lambda a, w: jnp.dot(a, w, precision=hi)
    y = relu(dot(x, params["w1"]) + params["b1"])
    y = relu(dot(y, params["w2"]) + params["b2"])
    y = relu(dot(y, params["w3"]) + params["b3"])
    y = relu(dot(y, params["w4"]) + params["b4"])
    y = relu(x + dot(y, params["w5"]) + params["b5"])
    z = dot(y, params["w6"]) + params["b6"]
    return _SELU_SCALE * jnp.where(z > 0.0, z,
                                   _SELU_ALPHA * jnp.expm1(jnp.minimum(z, 0.0)))


def reference_forward_bf16(x, params):
    """Pure-JAX mirror of the kernel numerics (bf16 operands, f32 accumulate)."""
    relu = lambda v: jnp.maximum(v, 0.0)

    def lin(v, w, b):
        return jnp.dot(v.astype(jnp.bfloat16), w.astype(jnp.bfloat16),
                       preferred_element_type=jnp.float32) + b

    y = relu(lin(x, params["w1"], params["b1"]))
    y = relu(lin(y, params["w2"], params["b2"]))
    y = relu(lin(y, params["w3"], params["b3"]))
    y = relu(lin(y, params["w4"], params["b4"]))
    y = relu(x + lin(y, params["w5"], params["b5"]))
    z = jnp.sum(y * params["w6"].reshape(1, -1), axis=-1, keepdims=True) + params["b6"]
    return _SELU_SCALE * jnp.where(z > 0.0, z,
                                   _SELU_ALPHA * jnp.expm1(jnp.minimum(z, 0.0)))


if __name__ == "__main__":
    n_particles = 8
    batch = 300      # ragged: pads to 304 (multiple of 8), two tiles of 152

    key = jax.random.PRNGKey(0)
    key, kx = jax.random.split(key)
    x = jax.random.normal(kx, (batch, n_particles), jnp.float32)
    params = init_params(key, n_particles)

    kp = prepare_params(params)                    # weight prep hoisted: done once
    fwd = jax.jit(reference_network1_forward)      # pad/plumbing fuse around kernel
    out = jax.block_until_ready(fwd(x, kp))
    assert out.shape == (batch, 1)

    # Tight check against a pure-JAX mirror of the kernel's bf16/f32 numerics.
    ref_b = reference_forward_bf16(x, params)
    assert jnp.allclose(out, ref_b, atol=2e-3, rtol=2e-3), \
        "mismatch vs bf16-numerics reference"

    # Looser check against the full-f32 semantics of the original module.
    ref_f = reference_forward_f32(x, params)
    assert jnp.allclose(out, ref_f, atol=5e-2, rtol=5e-2), \
        "mismatch vs f32 reference"

    print("KERNEL_OK")
</pallas_src>

<mosaic_0001>
module attributes {stable_mosaic.version = 11 : i64} {
  func.func @_mlp_kernel(%arg0: i32, %arg1: memref<1x8x152xf32, #tpu.memory_space<vmem>>, %arg2: memref<256x8xbf16, #tpu.memory_space<vmem>>, %arg3: memref<256x1xf32, #tpu.memory_space<vmem>>, %arg4: memref<3x256x256xbf16, #tpu.memory_space<vmem>>, %arg5: memref<3x256x1xf32, #tpu.memory_space<vmem>>, %arg6: memref<8x256xbf16, #tpu.memory_space<vmem>>, %arg7: memref<8x1xf32, #tpu.memory_space<vmem>>, %arg8: memref<8x1xf32, #tpu.memory_space<vmem>>, %arg9: memref<1x1xf32, #tpu.memory_space<vmem>>, %arg10: memref<1x1x152xf32, #tpu.memory_space<vmem>>) attributes {dimension_semantics = [#tpu.dimension_semantics<parallel>], iteration_bounds = array<i64: 2>, scalar_prefetch = 0 : i64, scratch_operands = 0 : i64, tpu.core_type = #tpu.core_type<tc>, window_params = [{transform_indices = @transform_0, window_bounds = array<i64: 1, 8, 152>}, {pipeline_mode = #tpu.pipeline_mode<synchronous>, transform_indices = @transform_1, window_bounds = array<i64: 256, 8>}, {pipeline_mode = #tpu.pipeline_mode<synchronous>, transform_indices = @transform_2, window_bounds = array<i64: 256, 1>}, {pipeline_mode = #tpu.pipeline_mode<synchronous>, transform_indices = @transform_3, window_bounds = array<i64: 3, 256, 256>}, {pipeline_mode = #tpu.pipeline_mode<synchronous>, transform_indices = @transform_4, window_bounds = array<i64: 3, 256, 1>}, {pipeline_mode = #tpu.pipeline_mode<synchronous>, transform_indices = @transform_5, window_bounds = array<i64: 8, 256>}, {pipeline_mode = #tpu.pipeline_mode<synchronous>, transform_indices = @transform_6, window_bounds = array<i64: 8, 1>}, {pipeline_mode = #tpu.pipeline_mode<synchronous>, transform_indices = @transform_7, window_bounds = array<i64: 8, 1>}, {pipeline_mode = #tpu.pipeline_mode<synchronous>, transform_indices = @transform_8, window_bounds = array<i64: 1, 1>}, {transform_indices = @transform_9, window_bounds = array<i64: 1, 1, 152>}]} {
    %c0 = arith.constant 0 : index
    %c0_0 = arith.constant 0 : index
    %c0_1 = arith.constant 0 : index
    %0 = vector.load %arg1[%c0, %c0_0, %c0_1] : memref<1x8x152xf32, #tpu.memory_space<vmem>>, vector<1x8x152xf32>
    %1 = vector.shape_cast %0 : vector<1x8x152xf32> to vector<8x152xf32>
    %c0_2 = arith.constant 0 : index
    %c0_3 = arith.constant 0 : index
    %2 = vector.load %arg2[%c0_2, %c0_3] : memref<256x8xbf16, #tpu.memory_space<vmem>>, vector<256x8xbf16>
    %c0_4 = arith.constant 0 : index
    %c0_5 = arith.constant 0 : index
    %3 = vector.load %arg3[%c0_4, %c0_5] : memref<256x1xf32, #tpu.memory_space<vmem>>, vector<256x1xf32>
    %4 = arith.truncf %1 : vector<8x152xf32> to vector<8x152xbf16>
    %cst = arith.constant dense<0.000000e+00> : vector<256x152xf32>
    %5 = tpu.matmul %2, %4, %cst {dimension_numbers = #tpu.dot_dimension_numbers<[1], [0], [0], [1], [0, 0, 1, 1], [], []>} : vector<256x8xbf16>, vector<8x152xbf16>, vector<256x152xf32> -> vector<256x152xf32>
    %6 = vector.broadcast %3 : vector<256x1xf32> to vector<256x152xf32>
    %7 = arith.addf %5, %6 : vector<256x152xf32>
    %cst_6 = arith.constant 0.000000e+00 : f32
    %8 = vector.broadcast %cst_6 : f32 to vector<256x152xf32>
    %9 = arith.maximumf %7, %8 : vector<256x152xf32>
    %c0_7 = arith.constant 0 : index
    %c0_8 = arith.constant 0 : index
    %c0_9 = arith.constant 0 : index
    %10 = vector.load %arg4[%c0_7, %c0_8, %c0_9] : memref<3x256x256xbf16, #tpu.memory_space<vmem>>, vector<1x256x256xbf16>
    %11 = vector.shape_cast %10 : vector<1x256x256xbf16> to vector<256x256xbf16>
    %c0_10 = arith.constant 0 : index
    %c0_11 = arith.constant 0 : index
    %c0_12 = arith.constant 0 : index
    %12 = vector.load %arg5[%c0_10, %c0_11, %c0_12] : memref<3x256x1xf32, #tpu.memory_space<vmem>>, vector<1x256x1xf32>
    %13 = vector.shape_cast %12 : vector<1x256x1xf32> to vector<256x1xf32>
    %14 = arith.truncf %9 : vector<256x152xf32> to vector<256x152xbf16>
    %cst_13 = arith.constant dense<0.000000e+00> : vector<256x152xf32>
    %15 = tpu.matmul %11, %14, %cst_13 {dimension_numbers = #tpu.dot_dimension_numbers<[1], [0], [0], [1], [0, 0, 1, 1], [], []>} : vector<256x256xbf16>, vector<256x152xbf16>, vector<256x152xf32> -> vector<256x152xf32>
    %16 = vector.broadcast %13 : vector<256x1xf32> to vector<256x152xf32>
    %17 = arith.addf %15, %16 : vector<256x152xf32>
    %cst_14 = arith.constant 0.000000e+00 : f32
    %18 = vector.broadcast %cst_14 : f32 to vector<256x152xf32>
    %19 = arith.maximumf %17, %18 : vector<256x152xf32>
    %c1 = arith.constant 1 : index
    %c0_15 = arith.constant 0 : index
    %c0_16 = arith.constant 0 : index
    %20 = vector.load %arg4[%c1, %c0_15, %c0_16] : memref<3x256x256xbf16, #tpu.memory_space<vmem>>, vector<1x256x256xbf16>
    %21 = vector.shape_cast %20 : vector<1x256x256xbf16> to vector<256x256xbf16>
    %c1_17 = arith.constant 1 : index
    %c0_18 = arith.constant 0 : index
    %c0_19 = arith.constant 0 : index
    %22 = vector.load %arg5[%c1_17, %c0_18, %c0_19] : memref<3x256x1xf32, #tpu.memory_space<vmem>>, vector<1x256x1xf32>
    %23 = vector.shape_cast %22 : vector<1x256x1xf32> to vector<256x1xf32>
    %24 = arith.truncf %19 : vector<256x152xf32> to vector<256x152xbf16>
    %cst_20 = arith.constant dense<0.000000e+00> : vector<256x152xf32>
    %25 = tpu.matmul %21, %24, %cst_20 {dimension_numbers = #tpu.dot_dimension_numbers<[1], [0], [0], [1], [0, 0, 1, 1], [], []>} : vector<256x256xbf16>, vector<256x152xbf16>, vector<256x152xf32> -> vector<256x152xf32>
    %26 = vector.broadcast %23 : vector<256x1xf32> to vector<256x152xf32>
    %27 = arith.addf %25, %26 : vector<256x152xf32>
    %cst_21 = arith.constant 0.000000e+00 : f32
    %28 = vector.broadcast %cst_21 : f32 to vector<256x152xf32>
    %29 = arith.maximumf %27, %28 : vector<256x152xf32>
    %c2 = arith.constant 2 : index
    %c0_22 = arith.constant 0 : index
    %c0_23 = arith.constant 0 : index
    %30 = vector.load %arg4[%c2, %c0_22, %c0_23] : memref<3x256x256xbf16, #tpu.memory_space<vmem>>, vector<1x256x256xbf16>
    %31 = vector.shape_cast %30 : vector<1x256x256xbf16> to vector<256x256xbf16>
    %c2_24 = arith.constant 2 : index
    %c0_25 = arith.constant 0 : index
    %c0_26 = arith.constant 0 : index
    %32 = vector.load %arg5[%c2_24, %c0_25, %c0_26] : memref<3x256x1xf32, #tpu.memory_space<vmem>>, vector<1x256x1xf32>
    %33 = vector.shape_cast %32 : vector<1x256x1xf32> to vector<256x1xf32>
    %34 = arith.truncf %29 : vector<256x152xf32> to vector<256x152xbf16>
    %cst_27 = arith.constant dense<0.000000e+00> : vector<256x152xf32>
    %35 = tpu.matmul %31, %34, %cst_27 {dimension_numbers = #tpu.dot_dimension_numbers<[1], [0], [0], [1], [0, 0, 1, 1], [], []>} : vector<256x256xbf16>, vector<256x152xbf16>, vector<256x152xf32> -> vector<256x152xf32>
    %36 = vector.broadcast %33 : vector<256x1xf32> to vector<256x152xf32>
    %37 = arith.addf %35, %36 : vector<256x152xf32>
    %cst_28 = arith.constant 0.000000e+00 : f32
    %38 = vector.broadcast %cst_28 : f32 to vector<256x152xf32>
    %39 = arith.maximumf %37, %38 : vector<256x152xf32>
    %c0_29 = arith.constant 0 : index
    %c0_30 = arith.constant 0 : index
    %40 = vector.load %arg6[%c0_29, %c0_30] : memref<8x256xbf16, #tpu.memory_space<vmem>>, vector<8x256xbf16>
    %c0_31 = arith.constant 0 : index
    %c0_32 = arith.constant 0 : index
    %41 = vector.load %arg7[%c0_31, %c0_32] : memref<8x1xf32, #tpu.memory_space<vmem>>, vector<8x1xf32>
    %42 = arith.truncf %39 : vector<256x152xf32> to vector<256x152xbf16>
    %cst_33 = arith.constant dense<0.000000e+00> : vector<8x152xf32>
    %43 = tpu.matmul %40, %42, %cst_33 {dimension_numbers = #tpu.dot_dimension_numbers<[1], [0], [0], [1], [0, 0, 1, 1], [], []>} : vector<8x256xbf16>, vector<256x152xbf16>, vector<8x152xf32> -> vector<8x152xf32>
    %44 = vector.broadcast %41 : vector<8x1xf32> to vector<8x152xf32>
    %45 = arith.addf %43, %44 : vector<8x152xf32>
    %46 = arith.addf %1, %45 : vector<8x152xf32>
    %cst_34 = arith.constant 0.000000e+00 : f32
    %47 = vector.broadcast %cst_34 : f32 to vector<8x152xf32>
    %48 = arith.maximumf %46, %47 : vector<8x152xf32>
    %c0_35 = arith.constant 0 : index
    %c0_36 = arith.constant 0 : index
    %49 = vector.load %arg8[%c0_35, %c0_36] : memref<8x1xf32, #tpu.memory_space<vmem>>, vector<8x1xf32>
    %50 = vector.broadcast %49 : vector<8x1xf32> to vector<8x152xf32>
    %51 = arith.mulf %48, %50 : vector<8x152xf32>
    %cst_37 = arith.constant dense<0.000000e+00> : vector<152xf32>
    %52 = vector.multi_reduction <add>, %51, %cst_37 [0] : vector<8x152xf32> to vector<152xf32>
    %53 = vector.shape_cast %52 : vector<152xf32> to vector<1x152xf32>
    %c0_38 = arith.constant 0 : index
    %c0_39 = arith.constant 0 : index
    %54 = vector.load %arg9[%c0_38, %c0_39] : memref<1x1xf32, #tpu.memory_space<vmem>>, vector<1x1xf32>
    %55 = vector.broadcast %54 : vector<1x1xf32> to vector<1x152xf32>
    %56 = arith.addf %53, %55 : vector<1x152xf32>
    %cst_40 = arith.constant 0.000000e+00 : f32
    %57 = vector.broadcast %cst_40 : f32 to vector<1x152xf32>
    %58 = arith.minimumf %56, %57 : vector<1x152xf32>
    %59 = math.exp %58 : vector<1x152xf32>
    %cst_41 = arith.constant 1.000000e+00 : f32
    %60 = vector.broadcast %cst_41 : f32 to vector<1x152xf32>
    %61 = arith.subf %59, %60 : vector<1x152xf32>
    %cst_42 = arith.constant 1.67326319 : f32
    %62 = vector.broadcast %cst_42 : f32 to vector<1x152xf32>
    %63 = arith.mulf %62, %61 : vector<1x152xf32>
    %cst_43 = arith.constant 0.000000e+00 : f32
    %64 = vector.broadcast %cst_43 : f32 to vector<1x152xf32>
    %65 = arith.cmpf ogt, %56, %64 : vector<1x152xf32>
    %66 = arith.select %65, %56, %63 : vector<1x152xi1>, vector<1x152xf32>
    %cst_44 = arith.constant 1.05070102 : f32
    %67 = vector.broadcast %cst_44 : f32 to vector<1x152xf32>
    %68 = arith.mulf %67, %66 : vector<1x152xf32>
    %69 = vector.shape_cast %68 : vector<1x152xf32> to vector<1x1x152xf32>
    %c0_45 = arith.constant 0 : index
    %c0_46 = arith.constant 0 : index
    %c0_47 = arith.constant 0 : index
    %70 = vector.load %arg10[%c0_45, %c0_46, %c0_47] : memref<1x1x152xf32, #tpu.memory_space<vmem>>, vector<1x1x152xf32>
    tpu.vector_store %arg10[%c0_45, %c0_46, %c0_47], %69 {strides = array<i32>} : memref<1x1x152xf32, #tpu.memory_space<vmem>>, vector<1x1x152xf32>,
    return
  }
  func.func @transform_0(%arg0: i32) -> (i32, i32, i32) {
    %c0_i32 = arith.constant 0 : i32
    %c0_i32_0 = arith.constant 0 : i32
    %c0_i32_1 = arith.constant 0 : i32
    return %arg0, %c0_i32, %c0_i32_0 : i32, i32, i32
  }
  func.func @transform_1(%arg0: i32) -> (i32, i32) {
    %c0_i32 = arith.constant 0 : i32
    %c0_i32_0 = arith.constant 0 : i32
    %c0_i32_1 = arith.constant 0 : i32
    return %c0_i32, %c0_i32_0 : i32, i32
  }
  func.func @transform_2(%arg0: i32) -> (i32, i32) {
    %c0_i32 = arith.constant 0 : i32
    %c0_i32_0 = arith.constant 0 : i32
    %c0_i32_1 = arith.constant 0 : i32
    return %c0_i32, %c0_i32_0 : i32, i32
  }
  func.func @transform_3(%arg0: i32) -> (i32, i32, i32) {
    %c0_i32 = arith.constant 0 : i32
    %c0_i32_0 = arith.constant 0 : i32
    %c0_i32_1 = arith.constant 0 : i32
    %c0_i32_2 = arith.constant 0 : i32
    return %c0_i32, %c0_i32_0, %c0_i32_1 : i32, i32, i32
  }
  func.func @transform_4(%arg0: i32) -> (i32, i32, i32) {
    %c0_i32 = arith.constant 0 : i32
    %c0_i32_0 = arith.constant 0 : i32
    %c0_i32_1 = arith.constant 0 : i32
    %c0_i32_2 = arith.constant 0 : i32
    return %c0_i32, %c0_i32_0, %c0_i32_1 : i32, i32, i32
  }
  func.func @transform_5(%arg0: i32) -> (i32, i32) {
    %c0_i32 = arith.constant 0 : i32
    %c0_i32_0 = arith.constant 0 : i32
    %c0_i32_1 = arith.constant 0 : i32
    return %c0_i32, %c0_i32_0 : i32, i32
  }
  func.func @transform_6(%arg0: i32) -> (i32, i32) {
    %c0_i32 = arith.constant 0 : i32
    %c0_i32_0 = arith.constant 0 : i32
    %c0_i32_1 = arith.constant 0 : i32
    return %c0_i32, %c0_i32_0 : i32, i32
  }
  func.func @transform_7(%arg0: i32) -> (i32, i32) {
    %c0_i32 = arith.constant 0 : i32
    %c0_i32_0 = arith.constant 0 : i32
    %c0_i32_1 = arith.constant 0 : i32
    return %c0_i32, %c0_i32_0 : i32, i32
  }
  func.func @transform_8(%arg0: i32) -> (i32, i32) {
    %c0_i32 = arith.constant 0 : i32
    %c0_i32_0 = arith.constant 0 : i32
    %c0_i32_1 = arith.constant 0 : i32
    return %c0_i32, %c0_i32_0 : i32, i32
  }
  func.func @transform_9(%arg0: i32) -> (i32, i32, i32) {
    %c0_i32 = arith.constant 0 : i32
    %c0_i32_0 = arith.constant 0 : i32
    %c0_i32_1 = arith.constant 0 : i32
    return %arg0, %c0_i32, %c0_i32_0 : i32, i32, i32
  }
}

</mosaic_0001>

<bundles_post_ra>
// kernel: reference_network1_forward.1
= control target key start
LH: loop header
LB: loop body
LE: loop exit
PB: predicated region body
PF: predicated region fallthrough
CT: control target
= control target key end

     0   :  { %s4480_s11 = smov 0   ;;  %s6653_s0 = inlined_call_operand.vmem [shape: f32[2,8,152], index: 0, kind: input, shape index: {}]   ;;  %s6654_s1 = inlined_call_operand.vmem [shape: bf16[256,8], index: 1, kind: input, shape index: {}]   ;;  %s6655_s2 = inlined_call_operand.vmem [shape: f32[256,1], index: 2, kind: input, shape index: {}]   ;;  %s6656_s3 = inlined_call_operand.vmem [shape: bf16[3,256,256], index: 3, kind: input, shape index: {}]   ;;  %s6657_s4 = inlined_call_operand.vmem [shape: f32[3,256,1], index: 4, kind: input, shape index: {}]   ;;  %s6658_s5 = inlined_call_operand.vmem [shape: bf16[8,256], index: 5, kind: input, shape index: {}]   ;;  %s6659_s6 = inlined_call_operand.vmem [shape: f32[8,1], index: 6, kind: input, shape index: {}]   ;;  %s6660_s7 = inlined_call_operand.vmem [shape: f32[8,1], index: 7, kind: input, shape index: {}]   ;;  %s6661_s8 = inlined_call_operand.<no memory space> [shape: f32[1,1], index: 8, kind: input, shape index: {}]   ;;  %s6662_s9 = inlined_call_operand.vmem [shape: f32[2,1,152], index: 9, kind: output, shape index: {}]  }
   0x1   :  { %v14_v0 = vstv %s6661_s8 }
   0x2   :  { %15 = vst [vmem:[#allocation2] sm:$0x1] %v14_v0 }
   0x3 LB: > { %s3665_s12 = sadd.s32 4294967295, %s4424_s11   ;;  %p3669_p0 = scmp.ge.s32.totalorder %s4424_s11, 1  ;;  %s4424_s11 = sphi %s4480_s11, %s21_s11  }
   0x4   : > { %p289_p1 = scmp.lt.s32.totalorder %s4424_s11, 3 }
   0x6   : > { %p290_p2 = pnand %p3669_p0, %p289_p1 }
   0x8   : > { %293 = sbr.rel (%p290_p2) target bundleno = 1776 (0x6f0), region = 56 }
   0xd   : > { %v398_v1 = vld [vmem:[%s6655_s2 + $0xf0] sm:$0xff]  ;;  %v380_v3 = vld [vmem:[%s6655_s2 + $0x60] sm:$0xff]  ;;  %p324_p3 = scmp.lt.s32.totalorder %s3665_s12, 1  ;;  %v4426_v4 = vmov 0   ;;  %vm691_vm0 = vcmask 1043456   ;;  %v399_v7 = vld [vmem:[%s6655_s2 + $0xf8] sm:$0xff] }
   0xe   : > { %v382_v2 = vld [vmem:[%s6655_s2 + $0x70] sm:$0xff]  ;;  %4411 = vset.pattern.permute.xlu2 %v4426_v4  ;;  %4410 = vset.pattern.permute.xlu1 %v4426_v4  ;;  %v383_v10 = vld [vmem:[%s6655_s2 + $0x78] sm:$0xff]  ;;  %v381_v11 = vld [vmem:[%s6655_s2 + $0x68] sm:$0xff]  ;;  %vm642_vm1 = vcmask 64512   ;;  %vm3568_vm2 = vcmask 195584   ;;  %vm3604_vm5 = vcmask 1040384  }
   0xf   : > { %4409 = vset.pattern.permute.xlu0 %v4426_v4  ;;  %554 = vperm.xlu1 %4410, %v398_v1   ;;  %s6825_s12 = smov (!%p324_p3, %s3665_s12), 1  ;;  %v4286_v14 = vld [vmem:[%s6654_s1] sm:$0xff]  ;;  %v4296_v15 = vld [vmem:[%s6654_s1 + $0x50] sm:$0xff]  ;;  %v397_v16 = vld [vmem:[%s6655_s2 + $0xe8] sm:$0xff] }
  0x10   : > { %474 = vperm.xlu0 %4409, %v382_v2   ;;  %464 = vperm.xlu2 %4411, %v380_v3   ;;  %s4285_s18 = sshll.u32 %s6825_s12, 4  ;;  %v396_v17 = vld [vmem:[%s6655_s2 + $0xe0] sm:$0xff]  ;;  %v378_v18 = vld [vmem:[%s6655_s2 + $0x50] sm:$0xff]  ;;  %v379_v20 = vld [vmem:[%s6655_s2 + $0x58] sm:$0xff] }
  0x11   : > { %s4503_s21 = scalar_lea.vmem %s6653_s0, %s4285_s18  ;;  %v394_v19 = vld [vmem:[%s6655_s2 + $0xd0] sm:$0xff]  ;;  %v395_v21 = vld [vmem:[%s6655_s2 + $0xd8] sm:$0xff]  ;;  %v4287_v22 = vld [vmem:[%s6654_s1 + $0x8] sm:$0xff] }
  0x12   : > { %v334_v5 = vld [vmem:[%s4503_s21] sm:$0xff]  ;;  %v335_v6 = vld [vmem:[%s4503_s21 + $0x8] sm:$0xff]  ;;  %v4297_v23 = vld [vmem:[%s6654_s1 + $0x58] sm:$0xff] }
  0x13   : > { %v400_v8 = vpack.c.bf16 %v334_v5, %v334_v5  ;;  %v401_v9 = vpack.c.bf16 %v335_v6, %v335_v6  ;;  %v377_v24 = vld [vmem:[%s6655_s2 + $0x48] sm:$0xff]  ;;  %v392_v25 = vld [vmem:[%s6655_s2 + $0xc0] sm:$0xff]  ;;  %v374_v27 = vld [vmem:[%s6655_s2 + $0x30] sm:$0xff] }
  0x14   : > { %v376_v26 = vld [vmem:[%s6655_s2 + $0x40] sm:$0xff]  ;;  %v393_v28 = vld [vmem:[%s6655_s2 + $0xc8] sm:$0xff]  ;;  %v375_v29 = vld [vmem:[%s6655_s2 + $0x38] sm:$0xff] }
  0x15   : > { %v693_v12 = vsel %vm691_vm0, %v400_v8, 0  ;;  %v696_v13 = vsel %vm691_vm0, %v401_v9, 0  ;;  %v4288_v30 = vld [vmem:[%s6654_s1 + $0x10] sm:$0xff]  ;;  %v4298_v31 = vld [vmem:[%s6654_s1 + $0x60] sm:$0xff]  ;;  %v391_v32 = vld [vmem:[%s6655_s2 + $0xb8] sm:$0xff] }
  0x16   : > { %705 = vmatpush.bf16.msra.mxu0 %v693_v12  ;;  %4398 = vmatpush.bf16.msra.mxu2 %v693_v12  ;;  %v390_v33 = vld [vmem:[%s6655_s2 + $0xb0] sm:$0xff]  ;;  %v372_v34 = vld [vmem:[%s6655_s2 + $0x20] sm:$0xff]  ;;  %v373_v36 = vld [vmem:[%s6655_s2 + $0x28] sm:$0xff] }
  0x17   : > { %559 = vperm.xlu1 %4410, %v399_v7   ;;  %794 = vmatpush.bf16.msra.mxu1 %v696_v13  ;;  %v388_v35 = vld [vmem:[%s6655_s2 + $0xa0] sm:$0xff]  ;;  %v389_v37 = vld [vmem:[%s6655_s2 + $0xa8] sm:$0xff]  ;;  %v4289_v38 = vld [vmem:[%s6654_s1 + $0x18] sm:$0xff] }
  0x18   : > { %479 = vperm.xlu0 %4409, %v383_v10   ;;  %469 = vperm.xlu2 %4411, %v381_v11   ;;  %v4299_v39 = vld [vmem:[%s6654_s1 + $0x68] sm:$0xff]  ;;  %v371_v40 = vld [vmem:[%s6655_s2 + $0x18] sm:$0xff]  ;;  %v386_v41 = vld [vmem:[%s6655_s2 + $0x90] sm:$0xff] }
  0x19   : > { %4399 = vmatpush.bf16.msra.mxu3 %v696_v13  ;;  %3737 = vmatmul.msk.bf16.vlgmr.msra.gmra.mxu0 %vm642_vm1, %v4286_v14  ;;  %v370_v42 = vld [vmem:[%s6655_s2 + $0x10] sm:$0xff]  ;;  %v368_v43 = vld [vmem:[%s6655_s2] sm:$0xff]  ;;  %v387_v44 = vld [vmem:[%s6655_s2 + $0x98] sm:$0xff] }
  0x1a   : > { %3747 = vmatmul.msk.bf16.vlgmr.msra.gmra.mxu2 %vm642_vm1, %v4296_v15  ;;  %3753 = vmatmul.msk.bf16.vlgmr.msra.gmra.mxu1 %vm642_vm1, %v4286_v14  ;;  %v369_v45 = vld [vmem:[%s6655_s2 + $0x8] sm:$0xff]  ;;  %v4290_v46 = vld [vmem:[%s6654_s1 + $0x20] sm:$0xff]  ;;  %v4300_v47 = vld [vmem:[%s6654_s1 + $0x70] sm:$0xff] }
  0x1b   : > { %v385_v48 = vld [vmem:[%s6655_s2 + $0x88] sm:$0xff]  ;;  %v384_v49 = vld [vmem:[%s6655_s2 + $0x80] sm:$0xff]  ;;  %v986_v50 = vld [vmem:[%s6657_s4 + $0x70] sm:$0xff] }
  0x1c   : > { %3763 = vmatmul.msk.bf16.vlgmr.msra.gmra.mxu3 %vm642_vm1, %v4296_v15  ;;  %v1002_v51 = vld [vmem:[%s6657_s4 + $0xf0] sm:$0xff]  ;;  %v987_v52 = vld [vmem:[%s6657_s4 + $0x78] sm:$0xff]  ;;  %v4291_v54 = vld [vmem:[%s6654_s1 + $0x28] sm:$0xff] }
  0x1d   : > { %v1003_v53 = vld [vmem:[%s6657_s4 + $0xf8] sm:$0xff]  ;;  %v985_v56 = vld [vmem:[%s6657_s4 + $0x68] sm:$0xff]  ;;  %v984_v57 = vld [vmem:[%s6657_s4 + $0x60] sm:$0xff] }
  0x1e   : > { %v4301_v55 = vld [vmem:[%s6654_s1 + $0x78] sm:$0xff]  ;;  %v1000_v58 = vld [vmem:[%s6657_s4 + $0xe0] sm:$0xff]  ;;  %v982_v59 = vld [vmem:[%s6657_s4 + $0x50] sm:$0xff] }
  0x1f   : > { %549 = vperm.xlu1 %4410, %v397_v16   ;;  %v1001_v60 = vld [vmem:[%s6657_s4 + $0xe8] sm:$0xff]  ;;  %v983_v61 = vld [vmem:[%s6657_s4 + $0x58] sm:$0xff]  ;;  %v4292_v62 = vld [vmem:[%s6654_s1 + $0x30] sm:$0xff] }
  0x20   : > { %544 = vperm.xlu0 %4409, %v396_v17   ;;  %454 = vperm.xlu2 %4411, %v378_v18   ;;  %v999_v63 = vld [vmem:[%s6657_s4 + $0xd8] sm:$0xff]  ;;  %v998_v0 = vld [vmem:[%s6657_s4 + $0xd0] sm:$0xff]  ;;  %v980_v1 = vld [vmem:[%s6657_s4 + $0x40] sm:$0xff] }
  0x21   : > { %v996_v2 = vld [vmem:[%s6657_s4 + $0xc0] sm:$0xff]  ;;  %v981_v3 = vld [vmem:[%s6657_s4 + $0x48] sm:$0xff]  ;;  %v4293_v5 = vld [vmem:[%s6654_s1 + $0x38] sm:$0xff] }
  0x22   : > { %v997_v4 = vld [vmem:[%s6657_s4 + $0xc8] sm:$0xff]  ;;  %v979_v6 = vld [vmem:[%s6657_s4 + $0x38] sm:$0xff]  ;;  %v978_v7 = vld [vmem:[%s6657_s4 + $0x30] sm:$0xff] }
  0x23   : > { %v994_v8 = vld [vmem:[%s6657_s4 + $0xb0] sm:$0xff]  ;;  %v976_v9 = vld [vmem:[%s6657_s4 + $0x20] sm:$0xff]  ;;  %v995_v10 = vld [vmem:[%s6657_s4 + $0xb8] sm:$0xff] }
  0x24   : > { %v977_v11 = vld [vmem:[%s6657_s4 + $0x28] sm:$0xff]  ;;  %v4294_v12 = vld [vmem:[%s6654_s1 + $0x40] sm:$0xff]  ;;  %v974_v17 = vld [vmem:[%s6657_s4 + $0x10] sm:$0xff] }
  0x25   : > { %v993_v15 = vld [vmem:[%s6657_s4 + $0xa8] sm:$0xff]  ;;  %v992_v16 = vld [vmem:[%s6657_s4 + $0xa0] sm:$0xff] }
  0x27   : > { %534 = vperm.xlu1 %4410, %v394_v19  }
  0x28   : > { %459 = vperm.xlu0 %4409, %v379_v20   ;;  %539 = vperm.xlu2 %4411, %v395_v21  }
  0x29   : > { %3738 = vmatmul.msk.bf16.gmra.mxu0 %vm642_vm1, %v4287_v22 }
  0x2a   : > { %3748 = vmatmul.msk.bf16.gmra.mxu2 %vm642_vm1, %v4297_v23  ;;  %3754 = vmatmul.msk.bf16.gmra.mxu1 %vm642_vm1, %v4287_v22  ;;  %v990_v22 = vld [vmem:[%s6657_s4 + $0x90] sm:$0xff] }
  0x2c   : > { %3764 = vmatmul.msk.bf16.gmra.mxu3 %vm642_vm1, %v4297_v23  ;;  %v975_v23 = vld [vmem:[%s6657_s4 + $0x18] sm:$0xff] }
  0x2f   : > { %449 = vperm.xlu1 %4410, %v377_v24   ;;  %v991_v24 = vld [vmem:[%s6657_s4 + $0x98] sm:$0xff] }
  0x30   : > { %524 = vperm.xlu2 %4411, %v392_v25   ;;  %444 = vperm.xlu0 %4409, %v376_v26   ;;  %v4295_v25 = vld [vmem:[%s6654_s1 + $0x48] sm:$0xff] }
  0x37   : > { %434 = vperm.xlu1 %4410, %v374_v27  }
  0x38   : > { %529 = vperm.xlu0 %4409, %v393_v28   ;;  %439 = vperm.xlu2 %4411, %v375_v29  }
  0x39   : > { %3739 = vmatmul.msk.bf16.gmra.mxu0 %vm642_vm1, %v4288_v30 }
  0x3a   : > { %3749 = vmatmul.msk.bf16.gmra.mxu2 %vm642_vm1, %v4298_v31  ;;  %3755 = vmatmul.msk.bf16.gmra.mxu1 %vm642_vm1, %v4288_v30  ;;  %v973_v30 = vld [vmem:[%s6657_s4 + $0x8] sm:$0xff] }
  0x3c   : > { %3765 = vmatmul.msk.bf16.gmra.mxu3 %vm642_vm1, %v4298_v31  ;;  %v972_v31 = vld [vmem:[%s6657_s4] sm:$0xff] }
  0x3f   : > { %519 = vperm.xlu1 %4410, %v391_v32   ;;  %v988_v32 = vld [vmem:[%s6657_s4 + $0x80] sm:$0xff] }
  0x40   : > { %514 = vperm.xlu0 %4409, %v390_v33   ;;  %424 = vperm.xlu2 %4411, %v372_v34  }
  0x47   : > { %504 = vperm.xlu1 %4410, %v388_v35  }
  0x48   : > { %429 = vperm.xlu0 %4409, %v373_v36   ;;  %509 = vperm.xlu2 %4411, %v389_v37   ;;  %v3943_v37 = vld [vmem:[%s6657_s4 + $0x170] sm:$0xff] }
  0x49   : > { %3740 = vmatmul.msk.bf16.gmra.mxu0 %vm642_vm1, %v4289_v38 }
  0x4a   : > { %3750 = vmatmul.msk.bf16.gmra.mxu2 %vm642_vm1, %v4299_v39  ;;  %3756 = vmatmul.msk.bf16.gmra.mxu1 %vm642_vm1, %v4289_v38  ;;  %v989_v38 = vld [vmem:[%s6657_s4 + $0x88] sm:$0xff] }
  0x4c   : > { %3766 = vmatmul.msk.bf16.gmra.mxu3 %vm642_vm1, %v4299_v39  ;;  %v3944_v39 = vld [vmem:[%s6657_s4 + $0x178] sm:$0xff] }
  0x4f   : > { %419 = vperm.xlu1 %4410, %v371_v40  }
  0x50   : > { %494 = vperm.xlu2 %4411, %v386_v41   ;;  %414 = vperm.xlu0 %4409, %v370_v42  }
  0x57   : > { %404 = vperm.xlu1 %4410, %v368_v43  }
  0x58   : > { %499 = vperm.xlu0 %4409, %v387_v44   ;;  %409 = vperm.xlu2 %4411, %v369_v45   ;;  %v3960_v44 = vld [vmem:[%s6657_s4 + $0x1f8] sm:$0xff]  ;;  %v3959_v45 = vld [vmem:[%s6657_s4 + $0x1f0] sm:$0xff] }
  0x59   : > { %3741 = vmatmul.msk.bf16.gmra.mxu0 %vm642_vm1, %v4290_v46 }
  0x5a   : > { %3751 = vmatmul.msk.bf16.gmra.mxu2 %vm642_vm1, %v4300_v47  ;;  %3757 = vmatmul.msk.bf16.gmra.mxu1 %vm642_vm1, %v4290_v46  ;;  %v3941_v46 = vld [vmem:[%s6657_s4 + $0x160] sm:$0xff] }
  0x5c   : > { %3767 = vmatmul.msk.bf16.gmra.mxu3 %vm642_vm1, %v4300_v47 }
  0x5f   : > { %489 = vperm.xlu1 %4410, %v385_v48  }
  0x60   : > { %484 = vperm.xlu0 %4409, %v384_v49   ;;  %1108 = vperm.xlu2 %4411, %v986_v50  }
  0x67   : > { %1188 = vperm.xlu1 %4410, %v1002_v51  }
  0x68   : > { %1113 = vperm.xlu0 %4409, %v987_v52   ;;  %1193 = vperm.xlu2 %4411, %v1003_v53   ;;  %v3957_v53 = vld [vmem:[%s6657_s4 + $0x1e0] sm:$0xff] }
  0x69   : > { %3742 = vmatmul.msk.bf16.gmra.mxu0 %vm642_vm1, %v4291_v54 }
  0x6a   : > { %3752 = vmatmul.msk.bf16.gmra.mxu2 %vm642_vm1, %v4301_v55  ;;  %3758 = vmatmul.msk.bf16.gmra.mxu1 %vm642_vm1, %v4291_v54  ;;  %v4821_v47 = vpop.permute.xlu2 %464  ;;  %v3942_v54 = vld [vmem:[%s6657_s4 + $0x168] sm:$0xff] }
  0x6c   : > { %3768 = vmatmul.msk.bf16.gmra.mxu3 %vm642_vm1, %v4301_v55  ;;  %v3958_v55 = vld [vmem:[%s6657_s4 + $0x1e8] sm:$0xff] }
  0x6f   : > { %1103 = vperm.xlu1 %4410, %v985_v56  }
  0x70   : > { %1098 = vperm.xlu0 %4409, %v984_v57   ;;  %1178 = vperm.xlu2 %4411, %v1000_v58  }
  0x77   : > { %1088 = vperm.xlu1 %4410, %v982_v59   ;;  %v4848_v59 = vpop.permute.xlu2 %469 }
  0x78   : > { %1183 = vperm.xlu0 %4409, %v1001_v60   ;;  %1093 = vperm.xlu2 %4411, %v983_v61  }
  0x79   : > { %3743 = vmatmul.msk.bf16.gmra.mxu0 %vm642_vm1, %v4292_v62 }
  0x7a   : > { %3759 = vmatmul.msk.bf16.gmra.mxu1 %vm642_vm1, %v4292_v62 }
  0x7f   : > { %1173 = vperm.xlu1 %4410, %v999_v63   ;;  %v3940_v63 = vld [vmem:[%s6657_s4 + $0x158] sm:$0xff] }
  0x80   : > { %1168 = vperm.xlu0 %4409, %v998_v0   ;;  %1078 = vperm.xlu2 %4411, %v980_v1   ;;  %v3939_v0 = vld [vmem:[%s6657_s4 + $0x150] sm:$0xff] }
  0x81   : > { %v4827_v50 = vpop.permute.xlu1 %554  ;;  %v3955_v1 = vld [vmem:[%s6657_s4 + $0x1d0] sm:$0xff] }
  0x82   : > { %v4842_v56 = vpop.permute.xlu0 %474 }
  0x87   : > { %1158 = vperm.xlu1 %4410, %v996_v2  }
  0x88   : > { %1083 = vperm.xlu0 %4409, %v981_v3   ;;  %1163 = vperm.xlu2 %4411, %v997_v4  }
  0x89   : > { %3744 = vmatmul.msk.bf16.gmra.mxu0 %vm642_vm1, %v4293_v5  ;;  %v4854_v62 = vpop.permute.xlu1 %559 }
  0x8a   : > { %3760 = vmatmul.msk.bf16.gmra.mxu1 %vm642_vm1, %v4293_v5  ;;  %v4869_v4 = vpop.permute.xlu0 %479 }
  0x8f   : > { %1073 = vperm.xlu1 %4410, %v979_v6  }
  0x90   : > { %1068 = vperm.xlu0 %4409, %v978_v7   ;;  %1148 = vperm.xlu2 %4411, %v994_v8   ;;  %v4875_v7 = vpop.permute.xlu2 %454 }
  0x91   : > { %v4877_v8 = vpop.permute.xlu1 %549 }
  0x96   : > { %v4733_v13 = vpop.f32.mrf.mxu0 }
  0x97   : > { %1058 = vperm.xlu1 %4410, %v976_v9   ;;  %6690 = vst [vmem:[#allocation3_spill] sm:$0xff] %v4733_v13  ;;  %v4735_v14 = vpop.f32.mrf.mxu1  ;;  %v3937_v9 = vld [vmem:[%s6657_s4 + $0x140] sm:$0xff]  ;;  %v3950_v13 = vld [vmem:[%s6657_s4 + $0x1a8] sm:$0xff] }
  0x98   : > { %1153 = vperm.xlu0 %4409, %v995_v10   ;;  %1063 = vperm.xlu2 %4411, %v977_v11   ;;  %6691 = vst [vmem:[#allocation4_spill] sm:$0xff] %v4735_v14  ;;  %v3956_v10 = vld [vmem:[%s6657_s4 + $0x1d8] sm:$0xff]  ;;  %v3938_v11 = vld [vmem:[%s6657_s4 + $0x148] sm:$0xff] }
  0x99   : > { %3745 = vmatmul.msk.bf16.gmra.mxu0 %vm642_vm1, %v4294_v12 }
  0x9a   : > { %3761 = vmatmul.msk.bf16.gmra.mxu1 %vm642_vm1, %v4294_v12 }
  0x9d   : > { %v4748_v18 = vpop.f32.mrf.mxu2 }
  0x9e   : > { %v4750_v19 = vpop.f32.mrf.mxu0 }
  0x9f   : > { %1143 = vperm.xlu1 %4410, %v993_v15   ;;  %6692 = vst [vmem:[#allocation5_spill] sm:$0xff] %v4750_v19  ;;  %v4752_v20 = vpop.f32.mrf.mxu3  ;;  %v4754_v21 = vpop.f32.mrf.mxu1  ;;  %v3931_v19 = vld [vmem:[%s6657_s4 + $0x110] sm:$0xff] }
  0xa0   : > { %1138 = vperm.xlu0 %4409, %v992_v16   ;;  %1048 = vperm.xlu2 %4411, %v974_v17   ;;  %6693 = vst [vmem:[#allocation6_spill] sm:$0xff] %v4754_v21 }
  0xa5   : > { %v4768_v26 = vpop.f32.mrf.mxu2 }
  0xa6   : > { %v4770_v27 = vpop.f32.mrf.mxu0 }
  0xa7   : > { %1128 = vperm.xlu1 %4410, %v990_v22   ;;  %6694 = vst [vmem:[#allocation7_spill] sm:$0xff] %v4770_v27  ;;  %v4772_v28 = vpop.f32.mrf.mxu3  ;;  %v4774_v29 = vpop.f32.mrf.mxu1 }
  0xa8   : > { %1053 = vperm.xlu0 %4409, %v975_v23   ;;  %1133 = vperm.xlu2 %4411, %v991_v24   ;;  %6695 = vst [vmem:[#allocation8_spill] sm:$0xff] %v4774_v29  ;;  %v545_v22 = vpop.permute.xlu0 %544  ;;  %v4896_v23 = vpop.permute.xlu2 %539  ;;  %v3954_v24 = vld [vmem:[%s6657_s4 + $0x1c8] sm:$0xff] }
  0xa9   : > { %3746 = vmatmul.msk.bf16.gmra.mxu0 %vm642_vm1, %v4295_v25 }
  0xaa   : > { %3762 = vmatmul.msk.bf16.gmra.mxu1 %vm642_vm1, %v4295_v25  ;;  %v3953_v25 = vld [vmem:[%s6657_s4 + $0x1c0] sm:$0xff] }
  0xad   : > { %v4787_v33 = vpop.f32.mrf.mxu2 }
  0xae   : > { %v4789_v34 = vpop.f32.mrf.mxu0 }
  0xaf   : > { %1043 = vperm.xlu1 %4410, %v973_v30   ;;  %6696 = vst [vmem:[#allocation9_spill] sm:$0xff] %v4789_v34  ;;  %v4791_v35 = vpop.f32.mrf.mxu3  ;;  %v4793_v36 = vpop.f32.mrf.mxu1  ;;  %v3935_v30 = vld [vmem:[%s6657_s4 + $0x130] sm:$0xff] }
  0xb0   : > { %1038 = vperm.xlu0 %4409, %v972_v31   ;;  %1118 = vperm.xlu2 %4411, %v988_v32   ;;  %6697 = vst [vmem:[#allocation10_spill] sm:$0xff] %v4793_v36  ;;  %v4907_v31 = vpop.permute.xlu1 %534 }
  0xb5   : > { %v4804_v40 = vpop.f32.mrf.mxu2 }
  0xb6   : > { %v4806_v41 = vpop.f32.mrf.mxu0 }
  0xb7   : > { %1946 = vperm.xlu1 %4410, %v3943_v37   ;;  %6698 = vst [vmem:[#allocation11_spill] sm:$0xff] %v4806_v41  ;;  %v4808_v42 = vpop.f32.mrf.mxu3  ;;  %v4810_v43 = vpop.f32.mrf.mxu1 }
  0xb8   : > { %1123 = vperm.xlu0 %4409, %v989_v38   ;;  %1951 = vperm.xlu2 %4411, %v3944_v39   ;;  %6699 = vst [vmem:[#allocation12_spill] sm:$0xff] %v4810_v43 }
  0xbd   : > { %v4823_v48 = vpop.f32.mrf.mxu2 }
  0xbe   : > { %v4825_v49 = vpop.f32.mrf.mxu0 }
  0xbf   : > { %2031 = vperm.xlu1 %4410, %v3960_v44   ;;  %6700 = vst [vmem:[#allocation13_spill] sm:$0xff] %v4825_v49  ;;  %v4829_v51 = vpop.f32.mrf.mxu3  ;;  %v4831_v52 = vpop.f32.mrf.mxu1 }
  0xc0   : > { %2026 = vperm.xlu0 %4409, %v3959_v45   ;;  %1936 = vperm.xlu2 %4411, %v3941_v46   ;;  %6701 = vst [vmem:[#allocation14_spill] sm:$0xff] %v4831_v52  ;;  %v4913_v44 = vpop.permute.xlu0 %459  ;;  %v3951_v45 = vld [vmem:[%s6657_s4 + $0x1b0] sm:$0xff]  ;;  %v3936_v46 = vld [vmem:[%s6657_s4 + $0x138] sm:$0xff] }
  0xc5   : > { %v4844_v57 = vpop.f32.mrf.mxu2 }
  0xc6   : > { %v4846_v58 = vpop.f32.mrf.mxu0 }
  0xc7   : > { %2016 = vperm.xlu1 %4410, %v3957_v53   ;;  %6702 = vst [vmem:[#allocation15_spill] sm:$0xff] %v4846_v58  ;;  %v4850_v60 = vpop.f32.mrf.mxu3  ;;  %v4852_v61 = vpop.f32.mrf.mxu1  ;;  %v3952_v53 = vld [vmem:[%s6657_s4 + $0x1b8] sm:$0xff] }
  0xc8   : > { %1941 = vperm.xlu0 %4409, %v3942_v54   ;;  %2021 = vperm.xlu2 %4411, %v3958_v55   ;;  %6703 = vst [vmem:[#allocation16_spill] sm:$0xff] %v4852_v61  ;;  %v525_v54 = vpop.permute.xlu2 %524 }
  0xcd   : > { %v4865_v2 = vpop.f32.mrf.mxu2 }
  0xce   : > { %v4867_v3 = vpop.f32.mrf.mxu0 }
  0xcf   : > { %1931 = vperm.xlu1 %4410, %v3940_v63   ;;  %v4871_v5 = vpop.f32.mrf.mxu3  ;;  %v4873_v6 = vpop.f32.mrf.mxu1 }
  0xd0   : > { %1926 = vperm.xlu0 %4409, %v3939_v0   ;;  %2006 = vperm.xlu2 %4411, %v3955_v1   ;;  %6704 = vst [vmem:[#allocation17_spill] sm:$0xff] %v4873_v6  ;;  %v4926_v0 = vpop.permute.xlu1 %449  ;;  %v4945_v21 = vpop.permute.xlu2 %439 }
  0xd5   : > { %v4888_v12 = vpop.f32.mrf.mxu2 }
  0xd6   : > { %v4890_v15 = vpop.f32.mrf.mxu0 }
  0xd7   : > { %1916 = vperm.xlu1 %4410, %v3937_v9   ;;  %v4892_v16 = vpop.f32.mrf.mxu3  ;;  %v4894_v17 = vpop.f32.mrf.mxu1 }
  0xd8   : > { %2011 = vperm.xlu0 %4409, %v3956_v10   ;;  %1921 = vperm.xlu2 %4411, %v3938_v11   ;;  %v3934_v10 = vld [vmem:[%s6657_s4 + $0x128] sm:$0xff]  ;;  %v3933_v11 = vld [vmem:[%s6657_s4 + $0x120] sm:$0xff]  ;;  %v4947_v14 = vpop.permute.xlu1 %434 }
  0xd9   : > { %6705 = vst [vmem:[#allocation18_spill] sm:$0xff] %v4947_v14  ;;  %v4968_v14 = vpop.permute.xlu2 %424 }
  0xdd   : > { %v777_v32 = vpop.f32.mrf.mxu2 }
  0xde   : > { %v4909_v37 = vpop.f32.mrf.mxu0 }
  0xdf   : > { %2001 = vperm.xlu1 %4410, %v3954_v24   ;;  %v866_v38 = vpop.f32.mrf.mxu3  ;;  %v4911_v39 = vpop.f32.mrf.mxu1  ;;  %v3949_v24 = vld [vmem:[%s6657_s4 + $0x1a0] sm:$0xff] }
  0xe0   : > { %1996 = vperm.xlu0 %4409, %v3953_v25   ;;  %1906 = vperm.xlu2 %4411, %v3935_v30   ;;  %v4939_v25 = vpop.permute.xlu0 %444 }
  0xe5   : > { %v779_v55 = vpop.f32.mrf.mxu2 }
  0xe6   : > { %v4924_v63 = vpop.f32.mrf.mxu0  ;;  %v780_v34 = vadd.f32 %v779_v55, %v4877_v8  ;;  %v520_v55 = vpop.permute.xlu1 %519 }
  0xe7   : > { %1986 = vperm.xlu1 %4410, %v3951_v45   ;;  %v868_v1 = vpop.f32.mrf.mxu3  ;;  %v4928_v9 = vpop.f32.mrf.mxu1 }
  0xe8   : > { %1911 = vperm.xlu0 %4409, %v3936_v46   ;;  %1991 = vperm.xlu2 %4411, %v3952_v53   ;;  %v530_v27 = vpop.permute.xlu0 %529  ;;  %v869_v41 = vadd.f32 %v868_v1, %v4877_v8  ;;  %v934_v8 = vmax.f32 %v780_v34, 0.0  ;;  %v3929_v34 = vld [vmem:[%s6657_s4 + $0x100] sm:$0xff] }
  0xed   : > { %v782_v30 = vpop.f32.mrf.mxu2 }
  0xee   : > { %v4941_v45 = vpop.f32.mrf.mxu0 }
  0xef   : > { %1901 = vperm.xlu1 %4410, %v3934_v10   ;;  %v871_v46 = vpop.f32.mrf.mxu3  ;;  %v4943_v53 = vpop.f32.mrf.mxu1  ;;  %v3932_v10 = vld [vmem:[%s6657_s4 + $0x118] sm:$0xff] }
  0xf0   : > { %1896 = vperm.xlu0 %4409, %v3933_v11   ;;  %1976 = vperm.xlu2 %4411, %v3949_v24   ;;  %v783_v11 = vadd.f32 %v782_v30, %v4827_v50  ;;  %v872_v24 = vadd.f32 %v871_v46, %v4827_v50  ;;  %v778_v30 = vadd.f32 %v777_v32, %v545_v22 }
  0xf1   : > { %v768_v32 = vadd.f32 %v4823_v48, %v525_v54 }
  0xf2   : > { %v936_v50 = vmax.f32 %v783_v11, 0.0  ;;  %v937_v61 = vmax.f32 %v872_v24, 0.0 }
  0xf5   : > { %v784_v29 = vpop.f32.mrf.mxu2 }
  0xf6   : > { %v4960_v36 = vpop.f32.mrf.mxu0  ;;  %v785_v52 = vadd.f32 %v784_v29, %v4854_v62  ;;  %v773_v29 = vadd.f32 %v4865_v2, %v4907_v31  ;;  %v3947_v2 = vld [vmem:[%s6657_s4 + $0x190] sm:$0xff] }
  0xf7   : > { %1886 = vperm.xlu1 %4410, %v3931_v19   ;;  %v873_v43 = vpop.f32.mrf.mxu3  ;;  %v4966_v6 = vpop.f32.mrf.mxu1  ;;  %v867_v19 = vadd.f32 %v866_v38, %v545_v22  ;;  %v857_v38 = vadd.f32 %v4829_v51, %v525_v54 }
  0xf8   : > { %1981 = vperm.xlu0 %4409, %v3950_v13   ;;  %1891 = vperm.xlu2 %4411, %v3932_v10   ;;  %v874_v49 = vadd.f32 %v873_v43, %v4854_v62  ;;  %v938_v46 = vmax.f32 %v785_v52, 0.0  ;;  %v775_v13 = vadd.f32 %v4888_v12, %v4896_v23  ;;  %v3948_v43 = vld [vmem:[%s6657_s4 + $0x198] sm:$0xff]  ;;  %v862_v52 = vadd.f32 %v4871_v5, %v4907_v31  ;;  %v515_v51 = vpop.permute.xlu0 %514 }
  0xf9   : > { %v935_v62 = vmax.f32 %v869_v41, 0.0  ;;  %v932_v12 = vmax.f32 %v778_v30, 0.0  ;;  %v933_v5 = vmax.f32 %v867_v19, 0.0  ;;  %v770_v41 = vadd.f32 %v4844_v57, %v530_v27 }
  0xfa   : > { %v939_v58 = vmax.f32 %v874_v49, 0.0  ;;  %v1034_v1 = vpack.c.bf16 %v938_v46, %v936_v50  ;;  %v864_v49 = vadd.f32 %v4892_v16, %v4896_v23  ;;  %v859_v31 = vadd.f32 %v4850_v60, %v530_v27  ;;  %v3945_v27 = vld [vmem:[%s6657_s4 + $0x180] sm:$0xff] }
  0xfb   : > { %v1032_v23 = vpack.c.bf16 %v934_v8, %v932_v12  ;;  %v929_v10 = vmax.f32 %v862_v52, 0.0  ;;  %v1033_v48 = vpack.c.bf16 %v935_v62, %v933_v5  ;;  %v763_v54 = vadd.f32 %v4787_v33, %v515_v51  ;;  %v3930_v33 = vld [vmem:[%s6657_s4 + $0x108] sm:$0xff] }
  0xfc   : > { %v1035_v22 = vpack.c.bf16 %v939_v58, %v937_v61  ;;  %1445 = vmatpush.bf16.msrb.mxu3 %v1034_v1  ;;  %v928_v58 = vmax.f32 %v773_v29, 0.0  ;;  %v930_v61 = vmax.f32 %v775_v13, 0.0  ;;  %v931_v11 = vmax.f32 %v864_v49, 0.0  ;;  %v505_v1 = vpop.permute.xlu1 %504 }
  0xfd   : > { %v852_v30 = vadd.f32 %v4791_v35, %v515_v51  ;;  %v765_v57 = vadd.f32 %v4804_v40, %v520_v55  ;;  %v924_v50 = vmax.f32 %v768_v32, 0.0  ;;  %v926_v46 = vmax.f32 %v770_v41, 0.0  ;;  %v3946_v35 = vld [vmem:[%s6657_s4 + $0x188] sm:$0xff]  ;;  %v510_v40 = vpop.permute.xlu2 %509 }
  0xfe   : > { %1623 = vmatpush.bf16.msrb.mxu1 %v1035_v22  ;;  %v4989_v16 = vpop.f32.mrf.mxu0  ;;  %v1030_v19 = vpack.c.bf16 %v930_v61, %v928_v58  ;;  %v854_v60 = vadd.f32 %v4808_v42, %v520_v55  ;;  %v925_v29 = vmax.f32 %v857_v38, 0.0  ;;  %v927_v13 = vmax.f32 %v859_v31, 0.0 }
  0xff   : > { %1971 = vperm.xlu1 %4410, %v3948_v43   ;;  %v4993_v24 = vpop.f32.mrf.mxu1  ;;  %v1031_v8 = vpack.c.bf16 %v931_v11, %v929_v10  ;;  %v760_v43 = vadd.f32 %v4768_v26, %v510_v40  ;;  %v758_v52 = vadd.f32 %v4748_v18, %v505_v1  ;;  %v849_v55 = vadd.f32 %v4772_v28, %v510_v40  ;;  %v4136_v28 = vld [vmem:[%s6657_s4 + $0x278] sm:$0xff]  ;;  %v4134_v40 = vld [vmem:[%s6657_s4 + $0x268] sm:$0xff] }
 0x100   : > { %1966 = vperm.xlu0 %4409, %v3947_v2   ;;  %1876 = vperm.xlu2 %4411, %v3929_v34   ;;  %v920_v49 = vmax.f32 %v763_v54, 0.0  ;;  %v922_v62 = vmax.f32 %v765_v57, 0.0  ;;  %v1028_v22 = vpack.c.bf16 %v926_v46, %v924_v50  ;;  %v921_v2 = vmax.f32 %v852_v30, 0.0  ;;  %v5028_v46 = vpop.permute.xlu0 %429 }
 0x101   : > { %1446 = vmatpush.bf16.msrb.mxu3 %v1032_v23  ;;  %v923_v34 = vmax.f32 %v854_v60, 0.0  ;;  %v847_v12 = vadd.f32 %v4752_v20, %v505_v1  ;;  %v1029_v38 = vpack.c.bf16 %v927_v13, %v925_v29  ;;  %v918_v26 = vmax.f32 %v760_v43, 0.0  ;;  %v4135_v23 = vld [vmem:[%s6657_s4 + $0x270] sm:$0xff] }
 0x102   : > { %1624 = vmatpush.bf16.msrb.mxu1 %v1033_v48  ;;  %v916_v5 = vmax.f32 %v758_v52, 0.0  ;;  %v1026_v18 = vpack.c.bf16 %v922_v62, %v920_v49  ;;  %v919_v41 = vmax.f32 %v849_v55, 0.0  ;;  %v4151_v20 = vld [vmem:[%s6657_s4 + $0x2f0] sm:$0xff]  ;;  %v740_v48 = vadd.f32 %v4989_v16, %v4848_v59 }
 0x103   : > { %v917_v58 = vmax.f32 %v847_v12, 0.0  ;;  %v1027_v61 = vpack.c.bf16 %v923_v34, %v921_v2  ;;  %v738_v30 = vadd.f32 %v4960_v36, %v4821_v47  ;;  %v827_v29 = vadd.f32 %v4966_v6, %v4821_v47 }
 0x104   : > { %v1024_v11 = vpack.c.bf16 %v918_v26, %v916_v5  ;;  %v902_v36 = vmax.f32 %v740_v48, 0.0  ;;  %v730_v1 = vadd.f32 %v4909_v37, %v4926_v0  ;;  %v822_v43 = vadd.f32 %v4928_v9, %v4875_v7  ;;  %v420_v37 = vpop.permute.xlu1 %419  ;;  %v6708_v26 = vld [vmem:[#allocation16_spill] sm:$0xff] }
 0x105   : > { %1447 = vmatpush.bf16.msrb.mxu3 %v1030_v19  ;;  %v1025_v50 = vpack.c.bf16 %v919_v41, %v917_v58  ;;  %v829_v19 = vadd.f32 %v4993_v24, %v4848_v59  ;;  %v4133_v59 = vld [vmem:[%s6657_s4 + $0x260] sm:$0xff]  ;;  %v733_v24 = vadd.f32 %v4924_v63, %v4875_v7  ;;  %v900_v47 = vmax.f32 %v738_v30, 0.0  ;;  %v5064_v2 = vpop.permute.xlu2 %494  ;;  %v6712_v30 = vld [vmem:[#allocation12_spill] sm:$0xff] }
 0x106   : > { %1625 = vmatpush.bf16.msrb.mxu1 %v1031_v8  ;;  %v742_v42 = vpop.f32.mrf.mxu0  ;;  %v817_v55 = vadd.f32 %v4894_v17, %v4939_v25  ;;  %v819_v62 = vadd.f32 %v4911_v39, %v4926_v0  ;;  %v894_v12 = vmax.f32 %v730_v1, 0.0  ;;  %v6707_v39 = vld [vmem:[#allocation15_spill] sm:$0xff] }
 0x107   : > { %1956 = vperm.xlu1 %4410, %v3945_v27   ;;  %v831_v32 = vpop.f32.mrf.mxu1  ;;  %v743_v31 = vadd.f32 %v742_v42, %v4842_v56  ;;  %v903_v6 = vmax.f32 %v829_v19, 0.0  ;;  %v901_v42 = vmax.f32 %v827_v29, 0.0 }
 0x108   : > { %1881 = vperm.xlu0 %4409, %v3930_v33   ;;  %1961 = vperm.xlu2 %4411, %v3946_v35   ;;  %v832_v51 = vadd.f32 %v831_v32, %v4842_v56  ;;  %v735_v56 = vadd.f32 %v4941_v45, %v4913_v44  ;;  %v824_v45 = vadd.f32 %v4943_v53, %v4913_v44  ;;  %v415_v34 = vpop.permute.xlu0 %414  ;;  %v897_v32 = vmax.f32 %v822_v43, 0.0  ;;  %v6717_v43 = vld [vmem:[#allocation8_spill] sm:$0xff] }
 0x109   : > { %1448 = vmatpush.bf16.msrb.mxu3 %v1028_v22  ;;  %v904_v27 = vmax.f32 %v743_v31, 0.0  ;;  %v1016_v44 = vpack.c.bf16 %v902_v36, %v900_v47  ;;  %v728_v53 = vadd.f32 %v4890_v15, %v4939_v25  ;;  %v896_v22 = vmax.f32 %v733_v24, 0.0  ;;  %v4150_v25 = vld [vmem:[%s6657_s4 + $0x2e8] sm:$0xff]  ;;  %v4132_v47 = vld [vmem:[%s6657_s4 + $0x258] sm:$0xff] }
 0x10a   : > { %1626 = vmatpush.bf16.msrb.mxu1 %v1029_v38  ;;  %v905_v13 = vmax.f32 %v832_v51, 0.0  ;;  %v898_v52 = vmax.f32 %v735_v56, 0.0  ;;  %v899_v7 = vmax.f32 %v824_v45, 0.0  ;;  %v1017_v9 = vpack.c.bf16 %v903_v6, %v901_v42  ;;  %v6706_v38 = vld [vmem:[#allocation18_spill] sm:$0xff]  ;;  %v6711_v51 = vld [vmem:[#allocation11_spill] sm:$0xff] }
 0x10b   : > { %v725_v15 = vadd.f32 %v4867_v3, %v4945_v21  ;;  %v723_v0 = vadd.f32 %v6707_v39, %v6706_v38  ;;  %v812_v5 = vadd.f32 %v6708_v26, %v6706_v38  ;;  %v4149_v3 = vld [vmem:[%s6657_s4 + $0x2e0] sm:$0xff]  ;;  %v892_v41 = vmax.f32 %v728_v53, 0.0  ;;  %v4148_v53 = vld [vmem:[%s6657_s4 + $0x2d8] sm:$0xff] }
 0x10c   : > { %v1014_v17 = vpack.c.bf16 %v898_v52, %v896_v22  ;;  %v893_v58 = vmax.f32 %v817_v55, 0.0  ;;  %v405_v24 = vpop.permute.xlu1 %404  ;;  %v802_v52 = vadd.f32 %v6717_v43, %v415_v34  ;;  %v6718_v55 = vld [vmem:[#allocation3_spill] sm:$0xff] }
 0x10d   : > { %1449 = vmatpush.bf16.msrb.mxu3 %v1026_v18  ;;  %v6709_v18 = vld [vmem:[#allocation17_spill] sm:$0xff]  ;;  %v1012_v48 = vpack.c.bf16 %v894_v12, %v892_v41  ;;  %v410_v6 = vpop.permute.xlu2 %409 }
 0x10e   : > { %1627 = vmatpush.bf16.msrb.mxu1 %v1027_v61  ;;  %v744_v10 = vpop.f32.mrf.mxu0  ;;  %v895_v61 = vmax.f32 %v819_v62, 0.0  ;;  %v708_v62 = vadd.f32 %v6718_v55, %v405_v24  ;;  %v6719_v12 = vld [vmem:[#allocation5_spill] sm:$0xff]  ;;  %v881_v38 = vmax.f32 %v802_v52, 0.0 }
 0x10f   : > { %2789 = vperm.xlu1 %4410, %v4136_v28   ;;  %v745_v54 = vadd.f32 %v744_v10, %v4869_v4  ;;  %v833_v57 = vpop.f32.mrf.mxu1  ;;  %v814_v28 = vadd.f32 %v6709_v18, %v4945_v21  ;;  %v6710_v10 = vld [vmem:[#allocation13_spill] sm:$0xff]  ;;  %v890_v21 = vmax.f32 %v725_v15, 0.0 }
 0x110   : > { %2784 = vperm.xlu0 %4409, %v4135_v23   ;;  %2864 = vperm.xlu2 %4411, %v4151_v20   ;;  %v834_v16 = vadd.f32 %v833_v57, %v4869_v4  ;;  %v4152_v4 = vld [vmem:[%s6657_s4 + $0x2f8] sm:$0xff]  ;;  %v1015_v23 = vpack.c.bf16 %v899_v7, %v897_v32  ;;  %v4131_v20 = vld [vmem:[%s6657_s4 + $0x250] sm:$0xff]  ;;  %v807_v57 = vadd.f32 %v6712_v30, %v4968_v14  ;;  %v500_v42 = vpop.permute.xlu0 %499 }
 0x111   : > { %v906_v60 = vmax.f32 %v745_v54, 0.0  ;;  %1450 = vmatpush.bf16.msrb.mxu3 %v1024_v11  ;;  %v720_v11 = vadd.f32 %v6710_v10, %v5028_v46  ;;  %v718_v54 = vadd.f32 %v6711_v51, %v4968_v14  ;;  %v891_v56 = vmax.f32 %v814_v28, 0.0  ;;  %v4147_v14 = vld [vmem:[%s6657_s4 + $0x2d0] sm:$0xff]  ;;  %v4130_v28 = vld [vmem:[%s6657_s4 + $0x248] sm:$0xff]  ;;  %v3771_v10 = vld [vmem:[%s6656_s3] sm:$0xf] }
 0x112   : > { %1628 = vmatpush.bf16.msrb.mxu1 %v1025_v50  ;;  %v907_v8 = vmax.f32 %v834_v16, 0.0  ;;  %v6713_v50 = vld [vmem:[#allocation14_spill] sm:$0xff]  ;;  %v889_v16 = vmax.f32 %v812_v5, 0.0  ;;  %v1013_v29 = vpack.c.bf16 %v895_v61, %v893_v58  ;;  %v885_v45 = vmax.f32 %v807_v57, 0.0  ;;  %v6720_v32 = vld [vmem:[#allocation4_spill] sm:$0xff] }
 0x113   : > { %v1018_v33 = vpack.c.bf16 %v906_v60, %v904_v27  ;;  %v809_v19 = vadd.f32 %v6713_v50, %v5028_v46  ;;  %v888_v60 = vmax.f32 %v723_v0, 0.0  ;;  %v886_v36 = vmax.f32 %v720_v11, 0.0  ;;  %v6721_v0 = vld [vmem:[#allocation6_spill] sm:$0xff]  ;;  %v4303_v11 = vld [vmem:[%s6656_s3 + $0x4] sm:$0xf0] }
 0x114   : > { %v1019_v35 = vpack.c.bf16 %v907_v8, %v905_v13  ;;  %v6714_v13 = vld [vmem:[#allocation9_spill] sm:$0xff]  ;;  %v884_v46 = vmax.f32 %v718_v54, 0.0  ;;  %v799_v26 = vadd.f32 %v6721_v0, %v410_v6  ;;  %v876_v5 = vmax.f32 %v708_v62, 0.0  ;;  %v4129_v58 = vld [vmem:[%s6657_s4 + $0x240] sm:$0xff] }
 0x115   : > { %1356 = vmatpush.bf16.msrb.mxu2 %v1018_v33  ;;  %v715_v8 = vadd.f32 %v6714_v13, %v420_v37  ;;  %v6715_v33 = vld [vmem:[#allocation7_spill] sm:$0xff]  ;;  %v4144_v52 = vld [vmem:[%s6657_s4 + $0x2b8] sm:$0xff] }
 0x116   : > { %v5052_v63 = vpop.f32.mrf.mxu0  ;;  %1534 = vmatpush.bf16.msrb.mxu0 %v1019_v35  ;;  %v887_v35 = vmax.f32 %v809_v19, 0.0  ;;  %v1008_v15 = vpack.c.bf16 %v886_v36, %v884_v46  ;;  %v4305_v55 = vld [vmem:[%s6656_s3 + $0x14] sm:$0xf0]  ;;  %v4121_v0 = vld [vmem:[%s6657_s4 + $0x200] sm:$0xff] }
 0x117   : > { %2774 = vperm.xlu1 %4410, %v4133_v59   ;;  %v5060_v49 = vpop.f32.mrf.mxu1  ;;  %v713_v59 = vadd.f32 %v6715_v33, %v415_v34  ;;  %v882_v7 = vmax.f32 %v715_v8, 0.0  ;;  %v797_v34 = vadd.f32 %v6720_v32, %v405_v24  ;;  %v4124_v32 = vld [vmem:[%s6657_s4 + $0x218] sm:$0xff] }
 0x118   : > { %2869 = vperm.xlu0 %4409, %v4152_v4   ;;  %2779 = vperm.xlu2 %4411, %v4134_v40   ;;  %v1010_v4 = vpack.c.bf16 %v890_v21, %v888_v60  ;;  %v6716_v40 = vld [vmem:[#allocation10_spill] sm:$0xff]  ;;  %v1009_v39 = vpack.c.bf16 %v887_v35, %v885_v45  ;;  %v879_v21 = vmax.f32 %v799_v26, 0.0  ;;  %v485_v30 = vpop.permute.xlu0 %484 }
 0x119   : > { %1357 = vmatpush.bf16.msrb.mxu2 %v1016_v44  ;;  %v804_v1 = vadd.f32 %v6716_v40, %v420_v37  ;;  %v1011_v44 = vpack.c.bf16 %v891_v56, %v889_v16  ;;  %v710_v37 = vadd.f32 %v6719_v12, %v410_v6  ;;  %v877_v41 = vmax.f32 %v797_v34, 0.0  ;;  %v3773_v6 = vld [vmem:[%s6656_s3 + $0x8] sm:$0xf0]  ;;  %v3781_v12 = vld [vmem:[%s6656_s3 + $0x18] sm:$0xf0]  ;;  %v4123_v34 = vld [vmem:[%s6657_s4 + $0x210] sm:$0xff] }
 0x11a   : > { %1535 = vmatpush.bf16.msrb.mxu0 %v1017_v9  ;;  %v880_v9 = vmax.f32 %v713_v59, 0.0  ;;  %v748_v60 = vadd.f32 %v5052_v63, %v485_v30  ;;  %v837_v59 = vadd.f32 %v5060_v49, %v485_v30  ;;  %v4127_v63 = vld [vmem:[%s6657_s4 + $0x230] sm:$0xff]  ;;  %v4140_v26 = vld [vmem:[%s6657_s4 + $0x298] sm:$0xff] }
 0x11b   : > { %v1005_v56 = vpack.c.bf16 %v879_v21, %v877_v41  ;;  %v4138_v41 = vld [vmem:[%s6657_s4 + $0x288] sm:$0xff]  ;;  %v3576_v21 = vld [vmem:[#allocation2] sm:$0x1] }
 0x11c   : > { %v1006_v18 = vpack.c.bf16 %v882_v7, %v880_v9  ;;  %v908_v46 = vmax.f32 %v748_v60, 0.0  ;;  %v909_v35 = vmax.f32 %v837_v59, 0.0  ;;  %v4126_v7 = vld [vmem:[%s6657_s4 + $0x228] sm:$0xff] }
 0x11d   : > { %1358 = vmatpush.bf16.msrb.mxu2 %v1014_v17  ;;  %v4142_v9 = vld [vmem:[%s6657_s4 + $0x2a8] sm:$0xff] }
 0x11e   : > { %v5083_v31 = vpop.f32.mrf.mxu0  ;;  %1536 = vmatpush.bf16.msrb.mxu0 %v1015_v23  ;;  %v4311_v60 = vld [vmem:[%s6656_s3 + $0x44] sm:$0xf0] }
 0x11f   : > { %2859 = vperm.xlu1 %4410, %v4150_v25   ;;  %v5093_v27 = vpop.f32.mrf.mxu1  ;;  %v883_v25 = vmax.f32 %v804_v1, 0.0 }
 0x120   : > { %2854 = vperm.xlu0 %4409, %v4149_v3   ;;  %2764 = vperm.xlu2 %4411, %v4131_v20   ;;  %v878_v3 = vmax.f32 %v710_v37, 0.0  ;;  %v4145_v20 = vld [vmem:[%s6657_s4 + $0x2c0] sm:$0xff] }
 0x121   : > { %1359 = vmatpush.bf16.msrb.mxu2 %v1012_v48  ;;  %v1007_v23 = vpack.c.bf16 %v883_v25, %v881_v38  ;;  %v490_v48 = vpop.permute.xlu1 %489  ;;  %v3787_v25 = vld [vmem:[%s6656_s3 + $0x20] sm:$0xf]  ;;  %v4307_v38 = vld [vmem:[%s6656_s3 + $0x24] sm:$0xf0] }
 0x122   : > { %1537 = vmatpush.bf16.msrb.mxu0 %v1013_v29  ;;  %v1004_v54 = vpack.c.bf16 %v878_v3, %v876_v5  ;;  %v750_v57 = vadd.f32 %v5083_v31, %v490_v48  ;;  %v3772_v29 = vor.u32 %v4303_v11, %v3771_v10  ;;  %v839_v36 = vadd.f32 %v5093_v27, %v490_v48  ;;  %v4146_v27 = vld [vmem:[%s6657_s4 + $0x2c8] sm:$0xff]  ;;  %v5223_v10 = vpop.permute.xlu0 %1113  ;;  %v3554_v48 = vld [vmem:[%s6660_s7] sm:$0xff] }
 0x123   : > { %v4122_v5 = vld [vmem:[%s6657_s4 + $0x208] sm:$0xff] }
 0x124   : > { %v910_v31 = vmax.f32 %v750_v57, 0.0  ;;  %v911_v49 = vmax.f32 %v839_v36, 0.0  ;;  %v4310_v36 = vld [vmem:[%s6656_s3 + $0x44] sm:$0xf] }
 0x125   : > { %1360 = vmatpush.bf16.msrb.mxu2 %v1010_v4 }
 0x126   : > { %v752_v22 = vpop.f32.mrf.mxu0  ;;  %1538 = vmatpush.bf16.msrb.mxu0 %v1011_v44  ;;  %v1020_v40 = vpack.c.bf16 %v910_v31, %v908_v46  ;;  %v1021_v43 = vpack.c.bf16 %v911_v49, %v909_v35  ;;  %v4125_v44 = vld [vmem:[%s6657_s4 + $0x220] sm:$0xff]  ;;  %v3813_v46 = vld [vmem:[%s6656_s3 + $0x58] sm:$0xf0]  ;;  %v4315_v35 = vld [vmem:[%s6656_s3 + $0x64] sm:$0xf0] }
 0x127   : > { %2844 = vperm.xlu1 %4410, %v4147_v14   ;;  %v841_v17 = vpop.f32.mrf.mxu1  ;;  %v753_v61 = vadd.f32 %v752_v22, %v5064_v2  ;;  %v4128_v14 = vld [vmem:[%s6657_s4 + $0x238] sm:$0xff]  ;;  %v4141_v22 = vld [vmem:[%s6657_s4 + $0x2a0] sm:$0xff] }
 0x128   : > { %2769 = vperm.xlu0 %4409, %v4132_v47   ;;  %2849 = vperm.xlu2 %4411, %v4148_v53   ;;  %v842_v50 = vadd.f32 %v841_v17, %v5064_v2  ;;  %v4302_v47 = vld [vmem:[%s6656_s3 + $0x4] sm:$0xf]  ;;  %v3779_v53 = vld [vmem:[%s6656_s3 + $0x10] sm:$0xf] }
 0x129   : > { %1361 = vmatpush.bf16.msrb.mxu2 %v1008_v15  ;;  %v912_v13 = vmax.f32 %v753_v61, 0.0  ;;  %v3776_v1 = vor.u32 %v4302_v47, %v3773_v6  ;;  %v3780_v62 = vor.u32 %v4305_v55, %v3779_v53  ;;  %v4304_v15 = vld [vmem:[%s6656_s3 + $0x14] sm:$0xf]  ;;  %v3453_v61 = vld [vmem:[%s6659_s6] sm:$0xff]  ;;  %v5234_v30 = vpop.permute.xlu1 %1188 }
 0x12a   : > { %1539 = vmatpush.bf16.msrb.mxu0 %v1009_v39  ;;  %v913_v24 = vmax.f32 %v842_v50, 0.0  ;;  %v3784_v37 = vor.u32 %v4304_v15, %v3781_v12  ;;  %v4139_v17 = vld [vmem:[%s6657_s4 + $0x290] sm:$0xff]  ;;  %v3788_v39 = vor.u32 %v4307_v38, %v3787_v25  ;;  %v5236_v50 = vpop.permute.xlu0 %1098  ;;  %v3819_v6 = vld [vmem:[%s6656_s3 + $0x60] sm:$0xf] }
 0x12d   : > { %1362 = vmatpush.bf16.msrb.mxu2 %v1006_v18  ;;  %v4306_v18 = vld [vmem:[%s6656_s3 + $0x24] sm:$0xf] }
 0x12e   : > { %v754_v51 = vpop.f32.mrf.mxu0  ;;  %1540 = vmatpush.bf16.msrb.mxu0 %v1007_v23  ;;  %v3795_v23 = vld [vmem:[%s6656_s3 + $0x30] sm:$0xf] }
 0x12f   : > { %2759 = vperm.xlu1 %4410, %v4130_v28   ;;  %v755_v19 = vadd.f32 %v754_v51, %v500_v42  ;;  %v843_v16 = vpop.f32.mrf.mxu1  ;;  %v3789_v28 = vld [vmem:[%s6656_s3 + $0x28] sm:$0xf0]  ;;  %v4308_v51 = vld [vmem:[%s6656_s3 + $0x34] sm:$0xf] }
 0x130   : > { %2754 = vperm.xlu0 %4409, %v4129_v58   ;;  %2834 = vperm.xlu2 %4411, %v4145_v20   ;;  %v844_v33 = vadd.f32 %v843_v16, %v500_v42  ;;  %v4143_v42 = vld [vmem:[%s6657_s4 + $0x2b0] sm:$0xff]  ;;  %v3792_v3 = vor.u32 %v4306_v18, %v3789_v28  ;;  %v4137_v58 = vld [vmem:[%s6657_s4 + $0x280] sm:$0xff]  ;;  %v4309_v20 = vld [vmem:[%s6656_s3 + $0x34] sm:$0xf0] }
 0x131   : > { %v914_v8 = vmax.f32 %v755_v19, 0.0  ;;  %1363 = vmatpush.bf16.msrb.mxu2 %v1004_v54  ;;  %v3796_v11 = vor.u32 %v4309_v20, %v3795_v23  ;;  %v3797_v54 = vld [vmem:[%s6656_s3 + $0x38] sm:$0xf0]  ;;  %v3803_v19 = vld [vmem:[%s6656_s3 + $0x40] sm:$0xf] }
 0x132   : > { %v915_v2 = vmax.f32 %v844_v33, 0.0  ;;  %1541 = vmatpush.bf16.msrb.mxu0 %v1005_v56  ;;  %v3800_v57 = vor.u32 %v4308_v51, %v3797_v54  ;;  %v3804_v16 = vor.u32 %v4311_v60, %v3803_v19  ;;  %v5244_v56 = vpop.permute.xlu1 %1103  ;;  %v3843_v54 = vld [vmem:[%s6656_s3 + $0x90] sm:$0xf] }
 0x133   : > { %v1022_v4 = vpack.c.bf16 %v914_v8, %v912_v13  ;;  %v3805_v13 = vld [vmem:[%s6656_s3 + $0x48] sm:$0xf0]  ;;  %v5254_v8 = vpop.permute.xlu2 %1108 }
 0x134   : > { %1364 = vmatmul.bf16.vlgmr.msrb.gmra.mxu2 %v3772_v29  ;;  %v1023_v45 = vpack.c.bf16 %v915_v2, %v913_v24  ;;  %v3808_v33 = vor.u32 %v4310_v36, %v3805_v13  ;;  %v3811_v24 = vld [vmem:[%s6656_s3 + $0x50] sm:$0xf]  ;;  %v4313_v2 = vld [vmem:[%s6656_s3 + $0x54] sm:$0xf0] }
 0x135   : > { %1451 = vmatpush.bf16.msrb.mxu3 %v1022_v4  ;;  %1542 = vmatmul.bf16.vlgmr.msrb.gmra.mxu0 %v3772_v29  ;;  %v5246_v29 = vpop.permute.xlu0 %1183  ;;  %v3812_v4 = vor.u32 %v4313_v2, %v3811_v24 }
 0x136   : > { %1629 = vmatpush.bf16.msrb.mxu1 %v1023_v45 }
 0x137   : > { %2744 = vperm.xlu1 %4410, %v4127_v63  }
 0x138   : > { %2839 = vperm.xlu0 %4409, %v4146_v27   ;;  %2749 = vperm.xlu2 %4411, %v4128_v14   ;;  %v4312_v14 = vld [vmem:[%s6656_s3 + $0x54] sm:$0xf] }
 0x139   : > { %1452 = vmatpush.bf16.msrb.mxu3 %v1020_v40  ;;  %v3816_v45 = vor.u32 %v4312_v14, %v3813_v46 }
 0x13a   : > { %1630 = vmatpush.bf16.msrb.mxu1 %v1021_v43  ;;  %v5256_v59 = vpop.permute.xlu1 %1088 }
 0x13b   : > { %v5266_v63 = vpop.permute.xlu2 %1193 }
 0x13c   : > { %1453 = vmatmul.bf16.vlgmr.msrb.gmra.mxu3 %v3776_v1  ;;  %6723 = vst [vmem:[#allocation15_spill] sm:$0xff] %v5266_v63 }
 0x13d   : > { %1631 = vmatmul.bf16.vlgmr.msrb.gmra.mxu1 %v3776_v1  ;;  %v5258_v31 = vpop.permute.xlu0 %1168  ;;  %v3820_v1 = vor.u32 %v4315_v35, %v3819_v6  ;;  %v3845_v6 = vld [vmem:[%s6656_s3 + $0x98] sm:$0xf0] }
 0x13e   : > { %6722 = vst [vmem:[#allocation18_spill] sm:$0xff] %v5258_v31 }
 0x13f   : > { %2829 = vperm.xlu1 %4410, %v4144_v52   ;;  %v4314_v52 = vld [vmem:[%s6656_s3 + $0x64] sm:$0xf] }
 0x140   : > { %2824 = vperm.xlu0 %4409, %v4143_v42   ;;  %2734 = vperm.xlu2 %4411, %v4125_v44   ;;  %v3821_v42 = vld [vmem:[%s6656_s3 + $0x68] sm:$0xf0] }
 0x141   : > { %v3824_v53 = vor.u32 %v4314_v52, %v3821_v42 }
 0x142   : > { %v5268_v27 = vpop.permute.xlu1 %1173 }
 0x143   : > { %6724 = vst [vmem:[#allocation16_spill] sm:$0xff] %v5268_v27  ;;  %v5278_v47 = vpop.permute.xlu2 %1178 }
 0x144   : > { %1369 = vmatmul.bf16.gmra.mxu2 %v3780_v62  ;;  %6725 = vst [vmem:[#allocation17_spill] sm:$0xff] %v5278_v47 }
 0x145   : > { %1547 = vmatmul.bf16.gmra.mxu0 %v3780_v62  ;;  %v5276_v49 = vpop.permute.xlu0 %1083 }
 0x147   : > { %2814 = vperm.xlu1 %4410, %v4141_v22   ;;  %v3827_v22 = vld [vmem:[%s6656_s3 + $0x70] sm:$0xf] }
 0x148   : > { %2739 = vperm.xlu0 %4409, %v4126_v7   ;;  %2819 = vperm.xlu2 %4411, %v4142_v9   ;;  %v4317_v7 = vld [vmem:[%s6656_s3 + $0x74] sm:$0xf0] }
 0x149   : > { %v3828_v15 = vor.u32 %v4317_v7, %v3827_v22 }
 0x14a   : > { %v5286_v40 = vpop.permute.xlu1 %1158 }
 0x14b   : > { %v5296_v44 = vpop.permute.xlu2 %1093 }
 0x14c   : > { %1458 = vmatmul.bf16.gmra.mxu3 %v3784_v37 }
 0x14d   : > { %1636 = vmatmul.bf16.gmra.mxu1 %v3784_v37  ;;  %v5288_v43 = vpop.permute.xlu0 %1068 }
 0x14f   : > { %2729 = vperm.xlu1 %4410, %v4124_v32   ;;  %v4316_v32 = vld [vmem:[%s6656_s3 + $0x74] sm:$0xf] }
 0x150   : > { %2724 = vperm.xlu0 %4409, %v4123_v34   ;;  %2804 = vperm.xlu2 %4411, %v4139_v17   ;;  %v3829_v34 = vld [vmem:[%s6656_s3 + $0x78] sm:$0xf0] }
 0x151   : > { %v3832_v17 = vor.u32 %v4316_v32, %v3829_v34 }
 0x152   : > { %v5298_v55 = vpop.permute.xlu1 %1073 }
 0x153   : > { %v5308_v9 = vpop.permute.xlu2 %1078 }
 0x154   : > { %1374 = vmatmul.bf16.gmra.mxu2 %v3788_v39 }
 0x155   : > { %1552 = vmatmul.bf16.gmra.mxu0 %v3788_v39  ;;  %v5300_v62 = vpop.permute.xlu0 %1153  ;;  %v3835_v39 = vld [vmem:[%s6656_s3 + $0x80] sm:$0xf] }
 0x156   : > { %6726 = vst [vmem:[#allocation13_spill] sm:$0xff] %v5300_v62 }
 0x157   : > { %2714 = vperm.xlu1 %4410, %v4121_v0   ;;  %v4319_v0 = vld [vmem:[%s6656_s3 + $0x84] sm:$0xf0] }
 0x158   : > { %2809 = vperm.xlu0 %4409, %v4140_v26   ;;  %2719 = vperm.xlu2 %4411, %v4122_v5   ;;  %v3836_v5 = vor.u32 %v4319_v0, %v3835_v39 }
 0x15a   : > { %v5310_v12 = vpop.permute.xlu1 %1058 }
 0x15b   : > { %v5320_v25 = vpop.permute.xlu2 %1163 }
 0x15c   : > { %1463 = vmatmul.bf16.gmra.mxu3 %v3792_v3  ;;  %6727 = vst [vmem:[#allocation11_spill] sm:$0xff] %v5320_v25 }
 0x15d   : > { %1641 = vmatmul.bf16.gmra.mxu1 %v3792_v3  ;;  %v5312_v37 = vpop.permute.xlu0 %1138  ;;  %v4318_v3 = vld [vmem:[%s6656_s3 + $0x84] sm:$0xf] }
 0x15f   : > { %2799 = vperm.xlu1 %4410, %v4138_v41   ;;  %v3837_v41 = vld [vmem:[%s6656_s3 + $0x88] sm:$0xf0] }
 0x160   : > { %2794 = vperm.xlu0 %4409, %v4137_v58   ;;  %3488 = vperm.xlu2 %4411, %v3453_v61   ;;  %v3840_v23 = vor.u32 %v4318_v3, %v3837_v41  ;;  %v3851_v41 = vld [vmem:[%s6656_s3 + $0xa0] sm:$0xf] }
 0x162   : > { %v5322_v38 = vpop.permute.xlu1 %1143 }
 0x163   : > { %6728 = vst [vmem:[#allocation12_spill] sm:$0xff] %v5322_v38  ;;  %v5332_v28 = vpop.permute.xlu2 %1148 }
 0x164   : > { %1379 = vmatmul.bf16.gmra.mxu2 %v3796_v11 }
 0x165   : > { %1557 = vmatmul.bf16.gmra.mxu0 %v3796_v11  ;;  %v5330_v26 = vpop.permute.xlu0 %1053 }
 0x167   : > { %3579 = vperm.xlu1 %4410, %v3576_v21  }
 0x168   : > { %3557 = vperm.xlu0 %4409, %v3554_v48  }
 0x16a   : > { %v5340_v58 = vpop.permute.xlu1 %1128 }
 0x16b   : > { %v5348_v19 = vpop.permute.xlu2 %1063 }
 0x16c   : > { %1468 = vmatmul.bf16.gmra.mxu3 %v3800_v57 }
 0x16d   : > { %1646 = vmatmul.bf16.gmra.mxu1 %v3800_v57  ;;  %v1039_v20 = vpop.permute.xlu0 %1038  ;;  %v4321_v57 = vld [vmem:[%s6656_s3 + $0x94] sm:$0xf0] }
 0x172   : > { %v1044_v24 = vpop.permute.xlu1 %1043 }
 0x173   : > { %v1049_v32 = vpop.permute.xlu2 %1048 }
 0x174   : > { %1384 = vmatmul.bf16.gmra.mxu2 %v3804_v16 }
 0x175   : > { %1562 = vmatmul.bf16.gmra.mxu0 %v3804_v16 }
 0x17c   : > { %1473 = vmatmul.bf16.gmra.mxu3 %v3808_v33 }
 0x17d   : > { %1651 = vmatmul.bf16.gmra.mxu1 %v3808_v33  ;;  %v3844_v33 = vor.u32 %v4321_v57, %v3843_v54 }
 0x184   : > { %1389 = vmatmul.bf16.gmra.mxu2 %v3812_v4 }
 0x185   : > { %1567 = vmatmul.bf16.gmra.mxu0 %v3812_v4 }
 0x18c   : > { %1478 = vmatmul.bf16.gmra.mxu3 %v3816_v45 }
 0x18d   : > { %1656 = vmatmul.bf16.gmra.mxu1 %v3816_v45  ;;  %v4320_v45 = vld [vmem:[%s6656_s3 + $0x94] sm:$0xf] }
 0x18e   : > { %v3848_v7 = vor.u32 %v4320_v45, %v3845_v6 }
 0x194   : > { %1394 = vmatmul.bf16.gmra.mxu2 %v3820_v1 }
 0x195   : > { %1572 = vmatmul.bf16.gmra.mxu0 %v3820_v1 }
 0x19c   : > { %1483 = vmatmul.bf16.gmra.mxu3 %v3824_v53 }
 0x19d   : > { %1661 = vmatmul.bf16.gmra.mxu1 %v3824_v53 }
 0x1a4   : > { %1399 = vmatmul.bf16.gmra.mxu2 %v3828_v15 }
 0x1a5   : > { %1577 = vmatmul.bf16.gmra.mxu0 %v3828_v15 }
 0x1ac   : > { %1488 = vmatmul.bf16.gmra.mxu3 %v3832_v17 }
 0x1ad   : > { %1666 = vmatmul.bf16.gmra.mxu1 %v3832_v17 }
 0x1b2   : > { %v1543_v18 = vpop.f32.mrf.mxu0 }
 0x1b3   : > { %v1544_v11 = vadd.f32 %v1543_v18, %v1039_v20 }
 0x1b4   : > { %1404 = vmatmul.bf16.gmra.mxu2 %v3836_v5 }
 0x1b5   : > { %1582 = vmatmul.bf16.gmra.mxu0 %v3836_v5 }
 0x1b7   : > { %v1365_v61 = vpop.f32.mrf.mxu2 }
 0x1b8   : > { %v1366_v60 = vadd.f32 %v1365_v61, %v1039_v20  ;;  %v4323_v61 = vld [vmem:[%s6656_s3 + $0xa4] sm:$0xf0] }
 0x1ba   : > { %v1545_v21 = vpop.f32.mrf.mxu0  ;;  %v1632_v48 = vpop.f32.mrf.mxu1 }
 0x1bb   : > { %v1633_v51 = vadd.f32 %v1632_v48, %v1544_v11  ;;  %v1546_v2 = vadd.f32 %v1545_v21, %v1044_v24  ;;  %v3852_v48 = vor.u32 %v4323_v61, %v3851_v41 }
 0x1bc   : > { %1493 = vmatmul.bf16.gmra.mxu3 %v3840_v23 }
 0x1bd   : > { %1671 = vmatmul.bf16.gmra.mxu1 %v3840_v23  ;;  %v1713_v35 = vmax.f32 %v1633_v51, 0.0 }
 0x1bf   : > { %v1367_v16 = vpop.f32.mrf.mxu2  ;;  %v1454_v36 = vpop.f32.mrf.mxu3 }
 0x1c0   : > { %v1455_v13 = vadd.f32 %v1454_v36, %v1366_v60  ;;  %v1368_v1 = vadd.f32 %v1367_v16, %v1044_v24  ;;  %v4322_v16 = vld [vmem:[%s6656_s3 + $0xa4] sm:$0xf]  ;;  %v3853_v36 = vld [vmem:[%s6656_s3 + $0xa8] sm:$0xf0] }
 0x1c2   : > { %v1548_v4 = vpop.f32.mrf.mxu0  ;;  %v1634_v14 = vpop.f32.mrf.mxu1  ;;  %v1712_v34 = vmax.f32 %v1455_v13, 0.0 }
 0x1c3   : > { %v1635_v46 = vadd.f32 %v1634_v14, %v1546_v2  ;;  %v1549_v17 = vadd.f32 %v1548_v4, %v1049_v32 }
 0x1c4   : > { %1409 = vmatmul.bf16.gmra.mxu2 %v3844_v33 }
 0x1c5   : > { %v1715_v52 = vmax.f32 %v1635_v46, 0.0  ;;  %1587 = vmatmul.bf16.gmra.mxu0 %v3844_v33  ;;  %v3856_v46 = vor.u32 %v4322_v16, %v3853_v36 }
 0x1c7   : > { %v1370_v42 = vpop.f32.mrf.mxu2  ;;  %v1456_v53 = vpop.f32.mrf.mxu3  ;;  %v5356_v15 = vpack.c.bf16 %v1715_v52, %v1713_v35 }
 0x1c8   : > { %v1457_v22 = vadd.f32 %v1456_v53, %v1368_v1  ;;  %v1371_v23 = vadd.f32 %v1370_v42, %v1049_v32 }
 0x1ca   : > { %v1714_v39 = vmax.f32 %v1457_v22, 0.0  ;;  %v1550_v0 = vpop.f32.mrf.mxu0  ;;  %v1637_v5 = vpop.f32.mrf.mxu1 }
 0x1cb   : > { %v1638_v18 = vadd.f32 %v1637_v5, %v1549_v17  ;;  %v1551_v51 = vadd.f32 %v1550_v0, %v5330_v26 }
 0x1cc   : > { %1498 = vmatmul.bf16.gmra.mxu3 %v3848_v7  ;;  %v5358_v3 = vpack.c.bf16 %v1714_v39, %v1712_v34 }
 0x1cd   : > { %1676 = vmatmul.bf16.gmra.mxu1 %v3848_v7  ;;  %v1717_v13 = vmax.f32 %v1638_v18, 0.0  ;;  %v4325_v7 = vld [vmem:[%s6656_s3 + $0xb4] sm:$0xf0] }
 0x1cf   : > { %v1372_v20 = vpop.f32.mrf.mxu2  ;;  %v1459_v11 = vpop.f32.mrf.mxu3 }
 0x1d0   : > { %v1460_v21 = vadd.f32 %v1459_v11, %v1371_v23  ;;  %v1373_v33 = vadd.f32 %v1372_v20, %v5330_v26  ;;  %v3859_v26 = vld [vmem:[%s6656_s3 + $0xb0] sm:$0xf]  ;;  %v4324_v23 = vld [vmem:[%s6656_s3 + $0xb4] sm:$0xf]  ;;  %v3861_v20 = vld [vmem:[%s6656_s3 + $0xb8] sm:$0xf0] }
 0x1d1   : > { %v3860_v0 = vor.u32 %v4325_v7, %v3859_v26 }
 0x1d2   : > { %v1553_v54 = vpop.f32.mrf.mxu0  ;;  %v1639_v57 = vpop.f32.mrf.mxu1  ;;  %v1716_v6 = vmax.f32 %v1460_v21, 0.0 }
 0x1d3   : > { %v1640_v60 = vadd.f32 %v1639_v57, %v1551_v51  ;;  %v1554_v35 = vadd.f32 %v1553_v54, %v5310_v12  ;;  %v3864_v57 = vor.u32 %v4324_v23, %v3861_v20 }
 0x1d4   : > { %1414 = vmatmul.bf16.gmra.mxu2 %v3852_v48 }
 0x1d5   : > { %v1719_v24 = vmax.f32 %v1640_v60, 0.0  ;;  %1592 = vmatmul.bf16.gmra.mxu0 %v3852_v48 }
 0x1d7   : > { %v1375_v2 = vpop.f32.mrf.mxu2  ;;  %v1461_v4 = vpop.f32.mrf.mxu3  ;;  %v5374_v45 = vpack.c.bf16 %v1719_v24, %v1717_v13 }
 0x1d8   : > { %v1462_v14 = vadd.f32 %v1461_v4, %v1373_v33  ;;  %v1376_v32 = vadd.f32 %v1375_v2, %v5310_v12 }
 0x1da   : > { %v1718_v1 = vmax.f32 %v1462_v14, 0.0  ;;  %v1555_v52 = vpop.f32.mrf.mxu0  ;;  %v1642_v42 = vpop.f32.mrf.mxu1  ;;  %v4327_v14 = vld [vmem:[%s6656_s3 + $0xc4] sm:$0xf0] }
 0x1db   : > { %v1643_v53 = vadd.f32 %v1642_v42, %v1554_v35  ;;  %v1556_v5 = vadd.f32 %v1555_v52, %v5348_v19 }
 0x1dc   : > { %1503 = vmatmul.bf16.gmra.mxu3 %v3856_v46  ;;  %v5377_v22 = vpack.c.bf16 %v1718_v1, %v1716_v6 }
 0x1dd   : > { %1681 = vmatmul.bf16.gmra.mxu1 %v3856_v46  ;;  %v1721_v12 = vmax.f32 %v1643_v53, 0.0 }
 0x1df   : > { %v1377_v34 = vpop.f32.mrf.mxu2  ;;  %v1464_v17 = vpop.f32.mrf.mxu3 }
 0x1e0   : > { %v1465_v39 = vadd.f32 %v1464_v17, %v1376_v32  ;;  %v1378_v11 = vadd.f32 %v1377_v34, %v5348_v19  ;;  %v3867_v19 = vld [vmem:[%s6656_s3 + $0xc0] sm:$0xf]  ;;  %v4326_v32 = vld [vmem:[%s6656_s3 + $0xc4] sm:$0xf]  ;;  %v3869_v34 = vld [vmem:[%s6656_s3 + $0xc8] sm:$0xf0] }
 0x1e1   : > { %v3868_v52 = vor.u32 %v4327_v14, %v3867_v19  ;;  %v4328_v19 = vld [vmem:[%s6656_s3 + $0xd4] sm:$0xf] }
 0x1e2   : > { %v1558_v18 = vpop.f32.mrf.mxu0  ;;  %v1644_v41 = vpop.f32.mrf.mxu1  ;;  %v1720_v16 = vmax.f32 %v1465_v39, 0.0 }
 0x1e3   : > { %v1645_v61 = vadd.f32 %v1644_v41, %v1556_v5  ;;  %v1559_v36 = vadd.f32 %v1558_v18, %v5288_v43  ;;  %v3872_v41 = vor.u32 %v4326_v32, %v3869_v34 }
 0x1e4   : > { %1419 = vmatmul.bf16.gmra.mxu2 %v3860_v0 }
 0x1e5   : > { %v1723_v21 = vmax.f32 %v1645_v61, 0.0  ;;  %1597 = vmatmul.bf16.gmra.mxu0 %v3860_v0 }
 0x1e7   : > { %v1380_v48 = vpop.f32.mrf.mxu2  ;;  %v1466_v51 = vpop.f32.mrf.mxu3  ;;  %v5394_v60 = vpack.c.bf16 %v1723_v21, %v1721_v12 }
 0x1e8   : > { %v1467_v54 = vadd.f32 %v1466_v51, %v1378_v11  ;;  %v1381_v46 = vadd.f32 %v1380_v48, %v5288_v43 }
 0x1ea   : > { %v1722_v13 = vmax.f32 %v1467_v54, 0.0  ;;  %v1560_v33 = vpop.f32.mrf.mxu0  ;;  %v1647_v24 = vpop.f32.mrf.mxu1  ;;  %v4329_v54 = vld [vmem:[%s6656_s3 + $0xd4] sm:$0xf0] }
 0x1eb   : > { %v1648_v2 = vadd.f32 %v1647_v24, %v1559_v36  ;;  %v1561_v42 = vadd.f32 %v1560_v33, %v5298_v55 }
 0x1ec   : > { %1508 = vmatmul.bf16.gmra.mxu3 %v3864_v57  ;;  %v5397_v4 = vpack.c.bf16 %v1722_v13, %v1720_v16 }
 0x1ed   : > { %1686 = vmatmul.bf16.gmra.mxu1 %v3864_v57  ;;  %v1725_v43 = vmax.f32 %v1648_v2, 0.0 }
 0x1ef   : > { %v1382_v6 = vpop.f32.mrf.mxu2  ;;  %v1469_v35 = vpop.f32.mrf.mxu3 }
 0x1f0   : > { %v1470_v1 = vadd.f32 %v1469_v35, %v1381_v46  ;;  %v1383_v17 = vadd.f32 %v1382_v6, %v5298_v55  ;;  %v3875_v55 = vld [vmem:[%s6656_s3 + $0xd0] sm:$0xf] }
 0x1f1   : > { %v3876_v33 = vor.u32 %v4329_v54, %v3875_v55 }
 0x1f2   : > { %v1563_v53 = vpop.f32.mrf.mxu0  ;;  %v1649_v26 = vpop.f32.mrf.mxu1  ;;  %v1724_v23 = vmax.f32 %v1470_v1, 0.0 }
 0x1f3   : > { %v1650_v7 = vadd.f32 %v1649_v26, %v1561_v42  ;;  %v1564_v20 = vadd.f32 %v1563_v53, %v5308_v9  ;;  %v4331_v42 = vld [vmem:[%s6656_s3 + $0xe4] sm:$0xf0] }
 0x1f4   : > { %1424 = vmatmul.bf16.gmra.mxu2 %v3868_v52 }
 0x1f5   : > { %v1727_v39 = vmax.f32 %v1650_v7, 0.0  ;;  %1602 = vmatmul.bf16.gmra.mxu0 %v3868_v52  ;;  %v3883_v52 = vld [vmem:[%s6656_s3 + $0xe0] sm:$0xf] }
 0x1f6   : > { %v3884_v7 = vor.u32 %v4331_v42, %v3883_v52 }
 0x1f7   : > { %v1385_v0 = vpop.f32.mrf.mxu2  ;;  %v1471_v5 = vpop.f32.mrf.mxu3  ;;  %v5414_v61 = vpack.c.bf16 %v1727_v39, %v1725_v43  ;;  %v4330_v43 = vld [vmem:[%s6656_s3 + $0xe4] sm:$0xf] }
 0x1f8   : > { %v1472_v18 = vadd.f32 %v1471_v5, %v1383_v17  ;;  %v1386_v57 = vadd.f32 %v1385_v0, %v5308_v9  ;;  %v3877_v9 = vld [vmem:[%s6656_s3 + $0xd8] sm:$0xf0]  ;;  %v3885_v17 = vld [vmem:[%s6656_s3 + $0xe8] sm:$0xf0] }
 0x1f9   : > { %v3880_v6 = vor.u32 %v4328_v19, %v3877_v9  ;;  %v3888_v5 = vor.u32 %v4330_v43, %v3885_v17 }
 0x1fa   : > { %v1726_v12 = vmax.f32 %v1472_v18, 0.0  ;;  %v5417_v11 = vpop.f32.mrf.mxu0  ;;  %v1652_v21 = vpop.f32.mrf.mxu1 }
 0x1fb   : > { %v5419_v48 = vadd.f32 %v1652_v21, %v1564_v20  ;;  %v4333_v20 = vld [vmem:[%s6656_s3 + $0xf4] sm:$0xf0] }
 0x1fc   : > { %1513 = vmatmul.bf16.gmra.mxu3 %v3872_v41  ;;  %v5421_v51 = vpack.c.bf16 %v1726_v12, %v1724_v23  ;;  %v3891_v23 = vld [vmem:[%s6656_s3 + $0xf0] sm:$0xf] }
 0x1fd   : > { %1691 = vmatmul.bf16.gmra.mxu1 %v3872_v41  ;;  %v3892_v55 = vor.u32 %v4333_v20, %v3891_v23 }
 0x1ff   : > { %v5430_v16 = vpop.f32.mrf.mxu2  ;;  %v1474_v36 = vpop.f32.mrf.mxu3 }
 0x200   : > { %v5432_v13 = vadd.f32 %v1474_v36, %v1386_v57  ;;  %v4332_v36 = vld [vmem:[%s6656_s3 + $0xf4] sm:$0xf] }
 0x202   : > { %v5434_v24 = vpop.f32.mrf.mxu0  ;;  %v5436_v2 = vpop.f32.mrf.mxu1 }
 0x204   : > { %1429 = vmatmul.bf16.gmra.mxu2 %v3876_v33 }
 0x205   : > { %1607 = vmatmul.bf16.gmra.mxu0 %v3876_v33  ;;  %v3893_v33 = vld [vmem:[%s6656_s3 + $0xf8] sm:$0xf0] }
 0x207   : > { %v5444_v14 = vpop.f32.mrf.mxu2  ;;  %v5446_v46 = vpop.f32.mrf.mxu3 }
 0x20a   : > { %v1570_v35 = vpop.f32.mrf.mxu0  ;;  %v5448_v1 = vpop.f32.mrf.mxu1 }
 0x20c   : > { %1518 = vmatmul.bf16.gmra.mxu3 %v3880_v6 }
 0x20d   : > { %1696 = vmatmul.bf16.gmra.mxu1 %v3880_v6  ;;  %v3896_v6 = vor.u32 %v4332_v36, %v3893_v33 }
 0x20f   : > { %v5456_v53 = vpop.f32.mrf.mxu2  ;;  %v5458_v26 = vpop.f32.mrf.mxu3 }
 0x212   : > { %v1573_v32 = vpop.f32.mrf.mxu0  ;;  %v1659_v34 = vpop.f32.mrf.mxu1 }
 0x214   : > { %1434 = vmatmul.bf16.gmra.mxu2 %v3884_v7 }
 0x215   : > { %1612 = vmatmul.bf16.gmra.mxu0 %v3884_v7  ;;  %v5480_v7 = vpop.permute.xlu2 %1133 }
 0x216   : > { %6729 = vst [vmem:[#allocation14_spill] sm:$0xff] %v5480_v7  ;;  %v1571_v7 = vadd.f32 %v1570_v35, %v5296_v44 }
 0x217   : > { %v1395_v39 = vpop.f32.mrf.mxu2  ;;  %v5466_v0 = vpop.f32.mrf.mxu3 }
 0x21a   : > { %v1575_v18 = vpop.f32.mrf.mxu0  ;;  %v1662_v41 = vpop.f32.mrf.mxu1 }
 0x21b   : > { %v1576_v23 = vadd.f32 %v1575_v18, %v5244_v56 }
 0x21c   : > { %1523 = vmatmul.bf16.gmra.mxu3 %v3888_v5 }
 0x21d   : > { %1701 = vmatmul.bf16.gmra.mxu1 %v3888_v5 }
 0x21f   : > { %v1397_v12 = vpop.f32.mrf.mxu2  ;;  %v1484_v21 = vpop.f32.mrf.mxu3 }
 0x220   : > { %v1398_v27 = vadd.f32 %v1397_v12, %v5244_v56  ;;  %v1566_v56 = vadd.f32 %v5417_v11, %v5276_v49 }
 0x222   : > { %v1578_v54 = vpop.f32.mrf.mxu0  ;;  %v1664_v57 = vpop.f32.mrf.mxu1 }
 0x223   : > { %v1579_v5 = vadd.f32 %v1578_v54, %v5254_v8  ;;  %v1665_v36 = vadd.f32 %v1664_v57, %v1576_v23 }
 0x224   : > { %1439 = vmatmul.bf16.gmra.mxu2 %v3892_v55 }
 0x225   : > { %1617 = vmatmul.bf16.gmra.mxu0 %v3892_v55  ;;  %v1574_v55 = vadd.f32 %v1573_v32, %v5236_v50  ;;  %v1660_v32 = vadd.f32 %v1659_v34, %v1571_v7 }
 0x227   : > { %v1400_v19 = vpop.f32.mrf.mxu2  ;;  %v1486_v9 = vpop.f32.mrf.mxu3 }
 0x228   : > { %v1401_v33 = vadd.f32 %v1400_v19, %v5254_v8  ;;  %v1739_v8 = vmax.f32 %v1665_v36, 0.0 }
 0x22a   : > { %v1580_v52 = vpop.f32.mrf.mxu0  ;;  %v1667_v42 = vpop.f32.mrf.mxu1 }
 0x22b   : > { %v1581_v20 = vadd.f32 %v1580_v52, %v5223_v10  ;;  %v1668_v38 = vadd.f32 %v1667_v42, %v1579_v5  ;;  %v1569_v52 = vadd.f32 %v5434_v24, %v5256_v59  ;;  %v1396_v42 = vadd.f32 %v1395_v39, %v5236_v50 }
 0x22c   : > { %1528 = vmatmul.bf16.gmra.mxu3 %v3896_v6  ;;  %v1655_v39 = vadd.f32 %v5436_v2, %v1566_v56 }
 0x22d   : > { %1706 = vmatmul.bf16.gmra.mxu1 %v3896_v6  ;;  %v1663_v6 = vadd.f32 %v1662_v41, %v1574_v55  ;;  %v1741_v47 = vmax.f32 %v1668_v38, 0.0  ;;  %v1119_v41 = vpop.permute.xlu2 %1118  ;;  %v1485_v24 = vadd.f32 %v1484_v21, %v1396_v42 }
 0x22f   : > { %v1402_v43 = vpop.f32.mrf.mxu2  ;;  %v1489_v17 = vpop.f32.mrf.mxu3  ;;  %v1737_v38 = vmax.f32 %v1663_v6, 0.0 }
 0x230   : > { %v1403_v54 = vadd.f32 %v1402_v43, %v5223_v10  ;;  %v1490_v18 = vadd.f32 %v1489_v17, %v1401_v33  ;;  %v1658_v10 = vadd.f32 %v5448_v1, %v1569_v52  ;;  %v1736_v43 = vmax.f32 %v1485_v24, 0.0 }
 0x232   : > { %v1583_v62 = vpop.f32.mrf.mxu0  ;;  %v1669_v25 = vpop.f32.mrf.mxu1  ;;  %v1740_v34 = vmax.f32 %v1490_v18, 0.0  ;;  %v1733_v21 = vmax.f32 %v1658_v10, 0.0 }
 0x233   : > { %v1670_v31 = vadd.f32 %v1669_v25, %v1581_v20  ;;  %v1487_v25 = vadd.f32 %v1486_v9, %v1398_v27  ;;  %v1584_v12 = vadd.f32 %v1583_v62, %v1119_v41  ;;  %v1735_v27 = vmax.f32 %v1660_v32, 0.0 }
 0x234   : > { %v1388_v62 = vadd.f32 %v5430_v16, %v5276_v49  ;;  %v1729_v49 = vmax.f32 %v5419_v48, 0.0 }
 0x235   : > { %v1743_v63 = vmax.f32 %v1670_v31, 0.0  ;;  %v1393_v31 = vadd.f32 %v5456_v53, %v5296_v44  ;;  %v1738_v9 = vmax.f32 %v1487_v25, 0.0  ;;  %v1855_v53 = vpack.c.bf16 %v1739_v8, %v1737_v38 }
 0x236   : > { %v1853_v36 = vpack.c.bf16 %v1735_v27, %v1733_v21 }
 0x237   : > { %v1405_v57 = vpop.f32.mrf.mxu2  ;;  %v1491_v5 = vpop.f32.mrf.mxu3  ;;  %v1857_v19 = vpack.c.bf16 %v1743_v63, %v1741_v47  ;;  %v1391_v63 = vadd.f32 %v5444_v14, %v5256_v59  ;;  %v1482_v47 = vadd.f32 %v5466_v0, %v1393_v31  ;;  %v1731_v59 = vmax.f32 %v1655_v39, 0.0 }
 0x238   : > { %v1492_v35 = vadd.f32 %v1491_v5, %v1403_v54  ;;  %v1406_v17 = vadd.f32 %v1405_v57, %v1119_v41  ;;  %v1477_v14 = vadd.f32 %v5446_v46, %v1388_v62  ;;  %v1854_v33 = vpack.c.bf16 %v1738_v9, %v1736_v43 }
 0x239   : > { %2372 = vmatpush.bf16.msra.mxu0 %v1857_v19  ;;  %v1480_v2 = vadd.f32 %v5458_v26, %v1391_v63  ;;  %v1734_v20 = vmax.f32 %v1482_v47, 0.0  ;;  %v1851_v18 = vpack.c.bf16 %v1731_v59, %v1729_v49  ;;  %v1728_v46 = vmax.f32 %v5432_v13, 0.0  ;;  %v4339_v59 = vld [vmem:[%s6656_s3 + $0x124] sm:$0xf0] }
 0x23a   : > { %v1742_v50 = vmax.f32 %v1492_v35, 0.0  ;;  %v5502_v11 = vpop.f32.mrf.mxu0  ;;  %v1672_v1 = vpop.f32.mrf.mxu1  ;;  %v1730_v54 = vmax.f32 %v1477_v14, 0.0 }
 0x23b   : > { %v5504_v44 = vadd.f32 %v1672_v1, %v1584_v12  ;;  %v1732_v16 = vmax.f32 %v1480_v2, 0.0 }
 0x23c   : > { %v1856_v7 = vpack.c.bf16 %v1742_v50, %v1740_v34  ;;  %v1850_v57 = vpack.c.bf16 %v1730_v54, %v1728_v46  ;;  %v3971_v50 = vld [vmem:[%s6656_s3 + $0x110] sm:$0xf] }
 0x23d   : > { %6730 = vst [vmem:[#allocation9_spill] sm:$0xff] %v5504_v44  ;;  %2373 = vmatpush.bf16.msra.mxu0 %v1855_v53  ;;  %v1852_v52 = vpack.c.bf16 %v1734_v20, %v1732_v16 }
 0x23e   : > { %2194 = vmatpush.bf16.msra.mxu2 %v1856_v7 }
 0x23f   : > { %v5510_v0 = vpop.f32.mrf.mxu2  ;;  %v1494_v23 = vpop.f32.mrf.mxu3 }
 0x240   : > { %6731 = vst [vmem:[#allocation7_spill] sm:$0xff] %v5510_v0  ;;  %v5512_v55 = vadd.f32 %v1494_v23, %v1406_v17  ;;  %v3979_v17 = vld [vmem:[%s6656_s3 + $0x120] sm:$0xf] }
 0x241   : > { %2374 = vmatpush.bf16.msra.mxu0 %v1853_v36  ;;  %v3980_v20 = vor.u32 %v4339_v59, %v3979_v17 }
 0x242   : > { %6732 = vst [vmem:[#allocation10_spill] sm:$0xff] %v5512_v55  ;;  %2195 = vmatpush.bf16.msra.mxu2 %v1854_v33  ;;  %v1588_v26 = vpop.f32.mrf.mxu0  ;;  %v5515_v6 = vpop.f32.mrf.mxu1 }
 0x243   : > { %6733 = vst [vmem:[#allocation8_spill] sm:$0xff] %v5515_v6  ;;  %v1589_v5 = vadd.f32 %v1588_v26, %v5340_v58 }
 0x245   : > { %2375 = vmatpush.bf16.msra.mxu0 %v1851_v18 }
 0x246   : > { %2196 = vmatpush.bf16.msra.mxu2 %v1852_v52 }
 0x247   : > { %v1410_v32 = vpop.f32.mrf.mxu2  ;;  %v5518_v42 = vpop.f32.mrf.mxu3 }
 0x248   : > { %6734 = vst [vmem:[#allocation3_spill] sm:$0xff] %v5518_v42  ;;  %v1411_v19 = vadd.f32 %v1410_v32, %v5340_v58  ;;  %v4335_v58 = vld [vmem:[%s6656_s3 + $0x104] sm:$0xf0]  ;;  %v3987_v32 = vld [vmem:[%s6656_s3 + $0x130] sm:$0xf] }
 0x249   : > { %2376 = vmatpush.bf16.msra.mxu0 %v5414_v61  ;;  %v3963_v61 = vld [vmem:[%s6656_s3 + $0x100] sm:$0xf] }
 0x24a   : > { %2197 = vmatpush.bf16.msra.mxu2 %v1850_v57  ;;  %v5522_v48 = vpop.f32.mrf.mxu0  ;;  %v1677_v8 = vpop.f32.mrf.mxu1  ;;  %v4341_v57 = vld [vmem:[%s6656_s3 + $0x134] sm:$0xf0] }
 0x24b   : > { %v5524_v25 = vadd.f32 %v1677_v8, %v1589_v5 }
 0x24d   : > { %6735 = vst [vmem:[#allocation5_spill] sm:$0xff] %v5524_v25  ;;  %2377 = vmatpush.bf16.msra.mxu0 %v5394_v60 }
 0x24e   : > { %2198 = vmatpush.bf16.msra.mxu2 %v5421_v51  ;;  %v3964_v51 = vor.u32 %v4335_v58, %v3963_v61 }
 0x24f   : > { %v5529_v13 = vpop.f32.mrf.mxu2  ;;  %v1499_v35 = vpop.f32.mrf.mxu3 }
 0x250   : > { %v5531_v41 = vadd.f32 %v1499_v35, %v1411_v19  ;;  %v3988_v19 = vor.u32 %v4341_v57, %v3987_v32  ;;  %v6740_v32 = vld [vmem:[#allocation15_spill] sm:$0xff] }
 0x251   : > { %2378 = vmatpush.bf16.msra.mxu0 %v5374_v45 }
 0x252   : > { %6736 = vst [vmem:[#allocation4_spill] sm:$0xff] %v5531_v41  ;;  %2199 = vmatpush.bf16.msra.mxu2 %v5397_v4  ;;  %v1593_v60 = vpop.f32.mrf.mxu0  ;;  %v5541_v56 = vpop.f32.mrf.mxu1 }
 0x253   : > { %v1594_v4 = vadd.f32 %v1593_v60, %v5312_v37 }
 0x255   : > { %2379 = vmatpush.bf16.msra.mxu0 %v5356_v15 }
 0x256   : > { %2200 = vmatpush.bf16.msra.mxu2 %v5377_v22 }
 0x257   : > { %v1415_v10 = vpop.f32.mrf.mxu2  ;;  %v5545_v45 = vpop.f32.mrf.mxu3 }
 0x258   : > { %6737 = vst [vmem:[#allocation6_spill] sm:$0xff] %v5545_v45  ;;  %2380 = vmatmul.bf16.vlgmr.msra.gmra.mxu0 %v3964_v51  ;;  %v1416_v34 = vadd.f32 %v1415_v10, %v5312_v37  ;;  %v3995_v10 = vld [vmem:[%s6656_s3 + $0x140] sm:$0xf] }
 0x259   : > { %v6743_v45 = vld [vmem:[#allocation18_spill] sm:$0xff] }
 0x25a   : > { %2201 = vmatpush.bf16.msra.mxu2 %v5358_v3  ;;  %v5549_v31 = vpop.f32.mrf.mxu0  ;;  %v1682_v38 = vpop.f32.mrf.mxu1  ;;  %v4337_v3 = vld [vmem:[%s6656_s3 + $0x114] sm:$0xf0] }
 0x25b   : > { %v5551_v24 = vadd.f32 %v1682_v38, %v1594_v4  ;;  %v3972_v27 = vor.u32 %v4337_v3, %v3971_v50  ;;  %v4343_v4 = vld [vmem:[%s6656_s3 + $0x144] sm:$0xf0] }
 0x25d   : > { %2202 = vmatmul.bf16.vlgmr.msra.gmra.mxu2 %v3964_v51 }
 0x25f   : > { %v5554_v12 = vpop.f32.mrf.mxu2  ;;  %v1504_v15 = vpop.f32.mrf.mxu3 }
 0x260   : > { %v5556_v22 = vadd.f32 %v1504_v15, %v1416_v34  ;;  %v3996_v15 = vor.u32 %v4343_v4, %v3995_v10  ;;  %v4011_v10 = vld [vmem:[%s6656_s3 + $0x160] sm:$0xf]  ;;  %v4347_v4 = vld [vmem:[%s6656_s3 + $0x164] sm:$0xf0] }
 0x262   : > { %6738 = vst [vmem:[#allocation19_spill] sm:$0xff] %v5556_v22  ;;  %v1598_v39 = vpop.f32.mrf.mxu0  ;;  %v5564_v63 = vpop.f32.mrf.mxu1 }
 0x263   : > { %v1599_v37 = vadd.f32 %v1598_v39, %v5332_v28 }
 0x267   : > { %v1420_v47 = vpop.f32.mrf.mxu2  ;;  %v5566_v1 = vpop.f32.mrf.mxu3 }
 0x268   : > { %2385 = vmatmul.bf16.gmra.mxu0 %v3972_v27  ;;  %v1421_v62 = vadd.f32 %v1420_v47, %v5332_v28 }
 0x26a   : > { %v5569_v9 = vpop.f32.mrf.mxu0  ;;  %v1687_v7 = vpop.f32.mrf.mxu1 }
 0x26b   : > { %v5571_v53 = vadd.f32 %v1687_v7, %v1599_v37  ;;  %v4003_v7 = vld [vmem:[%s6656_s3 + $0x150] sm:$0xf] }
 0x26d   : > { %2207 = vmatmul.bf16.gmra.mxu2 %v3972_v27 }
 0x26f   : > { %v5574_v21 = vpop.f32.mrf.mxu2  ;;  %v1509_v2 = vpop.f32.mrf.mxu3 }
 0x270   : > { %v5576_v43 = vadd.f32 %v1509_v2, %v1421_v62  ;;  %v4345_v62 = vld [vmem:[%s6656_s3 + $0x154] sm:$0xf0] }
 0x271   : > { %v4004_v59 = vor.u32 %v4345_v62, %v4003_v7 }
 0x272   : > { %6739 = vst [vmem:[#allocation20_spill] sm:$0xff] %v5576_v43  ;;  %v1603_v14 = vpop.f32.mrf.mxu0  ;;  %v5584_v23 = vpop.f32.mrf.mxu1 }
 0x273   : > { %v1604_v28 = vadd.f32 %v1603_v14, %v5286_v40 }
 0x277   : > { %v1425_v36 = vpop.f32.mrf.mxu2  ;;  %v5586_v33 = vpop.f32.mrf.mxu3 }
 0x278   : > { %2390 = vmatmul.bf16.gmra.mxu0 %v3980_v20  ;;  %v1426_v54 = vadd.f32 %v1425_v36, %v5286_v40 }
 0x27a   : > { %v5589_v49 = vpop.f32.mrf.mxu0  ;;  %v1692_v16 = vpop.f32.mrf.mxu1 }
 0x27b   : > { %v5591_v26 = vadd.f32 %v1692_v16, %v1604_v28 }
 0x27d   : > { %2212 = vmatmul.bf16.gmra.mxu2 %v3980_v20 }
 0x27f   : > { %v5594_v18 = vpop.f32.mrf.mxu2  ;;  %v1514_v52 = vpop.f32.mrf.mxu3 }
 0x280   : > { %v5596_v46 = vadd.f32 %v1514_v52, %v1426_v54 }
 0x282   : > { %v1608_v5 = vpop.f32.mrf.mxu0  ;;  %v5604_v8 = vpop.f32.mrf.mxu1 }
 0x283   : > { %v1609_v6 = vadd.f32 %v1608_v5, %v6743_v45 }
 0x287   : > { %v5606_v35 = vpop.f32.mrf.mxu2  ;;  %v5608_v40 = vpop.f32.mrf.mxu3 }
 0x288   : > { %2395 = vmatmul.bf16.gmra.mxu0 %v3988_v19 }
 0x28a   : > { %v1610_v61 = vpop.f32.mrf.mxu0  ;;  %v1697_v58 = vpop.f32.mrf.mxu1 }
 0x28d   : > { %2217 = vmatmul.bf16.gmra.mxu2 %v3988_v19 }
 0x28f   : > { %v1432_v60 = vpop.f32.mrf.mxu2  ;;  %v5610_v51 = vpop.f32.mrf.mxu3 }
 0x292   : > { %v1613_v38 = vpop.f32.mrf.mxu0  ;;  %v1699_v34 = vpop.f32.mrf.mxu1 }
 0x297   : > { %v1435_v50 = vpop.f32.mrf.mxu2  ;;  %v1521_v3 = vpop.f32.mrf.mxu3 }
 0x298   : > { %2400 = vmatmul.bf16.gmra.mxu0 %v3996_v15 }
 0x29a   : > { %v1615_v39 = vpop.f32.mrf.mxu0  ;;  %v1702_v27 = vpop.f32.mrf.mxu1 }
 0x29b   : > { %v1616_v52 = vadd.f32 %v1615_v39, %v5246_v29  ;;  %v6742_v39 = vld [vmem:[#allocation16_spill] sm:$0xff] }
 0x29c   : > { %v1611_v44 = vadd.f32 %v1610_v61, %v6742_v39  ;;  %v6744_v61 = vld [vmem:[#allocation11_spill] sm:$0xff] }
 0x29d   : > { %2222 = vmatmul.bf16.gmra.mxu2 %v3996_v15  ;;  %v6741_v15 = vld [vmem:[#allocation17_spill] sm:$0xff] }
 0x29e   : > { %v1614_v7 = vadd.f32 %v1613_v38, %v6741_v15  ;;  %v1700_v38 = vadd.f32 %v1699_v34, %v1611_v44  ;;  %v1436_v43 = vadd.f32 %v1435_v50, %v6741_v15 }
 0x29f   : > { %v1437_v47 = vpop.f32.mrf.mxu2  ;;  %v1524_v37 = vpop.f32.mrf.mxu3 }
 0x2a0   : > { %v1767_v5 = vmax.f32 %v1700_v38, 0.0 }
 0x2a2   : > { %v1704_v2 = vpop.f32.mrf.mxu1  ;;  %v1618_v17 = vpop.f32.mrf.mxu0 }
 0x2a3   : > { %v1619_v54 = vadd.f32 %v1618_v17, %v5234_v30  ;;  %v1705_v55 = vadd.f32 %v1704_v2, %v1616_v52 }
 0x2a5   : > { %v1771_v52 = vmax.f32 %v1705_v55, 0.0  ;;  %v1431_v55 = vadd.f32 %v5606_v35, %v6743_v45 }
 0x2a7   : > { %v1526_v14 = vpop.f32.mrf.mxu3  ;;  %v1440_v20 = vpop.f32.mrf.mxu2 }
 0x2a8   : > { %2405 = vmatmul.bf16.gmra.mxu0 %v4004_v59  ;;  %v1441_v17 = vadd.f32 %v1440_v20, %v5234_v30 }
 0x2aa   : > { %v1707_v36 = vpop.f32.mrf.mxu1  ;;  %v1620_v28 = vpop.f32.mrf.mxu0 }
 0x2ab   : > { %v1621_v57 = vadd.f32 %v1620_v28, %v6740_v32  ;;  %v1708_v19 = vadd.f32 %v1707_v36, %v1619_v54  ;;  %v1703_v28 = vadd.f32 %v1702_v27, %v1614_v7  ;;  %v1438_v36 = vadd.f32 %v1437_v47, %v5246_v29 }
 0x2ac   : > { %v4012_v54 = vor.u32 %v4347_v4, %v4011_v10  ;;  %v1606_v27 = vadd.f32 %v5589_v49, %v6744_v61  ;;  %v1698_v29 = vadd.f32 %v1697_v58, %v1609_v6  ;;  %v1433_v47 = vadd.f32 %v1432_v60, %v6742_v39  ;;  %v6745_v49 = vld [vmem:[#allocation13_spill] sm:$0xff] }
 0x2ad   : > { %2227 = vmatmul.bf16.gmra.mxu2 %v4004_v59  ;;  %v1773_v42 = vmax.f32 %v1708_v19, 0.0  ;;  %v1527_v30 = vadd.f32 %v1526_v14, %v1438_v36  ;;  %v1601_v6 = vadd.f32 %v5569_v9, %v6745_v49  ;;  %v1520_v58 = vadd.f32 %v5610_v51, %v1431_v55  ;;  %v6746_v14 = vld [vmem:[#allocation12_spill] sm:$0xff]  ;;  %v6754_v55 = vld [vmem:[#allocation3_spill] sm:$0xff] }
 0x2ae   : > { %v1695_v44 = vadd.f32 %v5604_v8, %v1606_v27  ;;  %v1596_v9 = vadd.f32 %v5549_v31, %v6746_v14  ;;  %v1761_v10 = vmax.f32 %v5591_v26, 0.0  ;;  %v6747_v26 = vld [vmem:[#allocation14_spill] sm:$0xff]  ;;  %v1418_v39 = vadd.f32 %v5554_v12, %v6746_v14 }
 0x2af   : > { %v1529_v16 = vpop.f32.mrf.mxu3  ;;  %v1442_v62 = vpop.f32.mrf.mxu2  ;;  %v1690_v45 = vadd.f32 %v5584_v23, %v1601_v6  ;;  %v1764_v51 = vmax.f32 %v1520_v58, 0.0  ;;  %v4019_v23 = vld [vmem:[%s6656_s3 + $0x170] sm:$0xf]  ;;  %v1760_v36 = vmax.f32 %v5596_v46, 0.0  ;;  %v1413_v12 = vadd.f32 %v5529_v13, %v6747_v26  ;;  %v6750_v27 = vld [vmem:[#allocation6_spill] sm:$0xff]  ;;  %v6753_v13 = vld [vmem:[#allocation19_spill] sm:$0xff] }
 0x2b0   : > { %v1443_v22 = vadd.f32 %v1442_v62, %v6740_v32  ;;  %v1530_v25 = vadd.f32 %v1529_v16, %v1441_v17  ;;  %v1769_v32 = vmax.f32 %v1703_v28, 0.0  ;;  %v1525_v16 = vadd.f32 %v1524_v37, %v1436_v43  ;;  %v6748_v46 = vld [vmem:[#allocation20_spill] sm:$0xff]  ;;  %v6757_v14 = vld [vmem:[#allocation10_spill] sm:$0xff] }
 0x2b1   : > { %v1428_v43 = vadd.f32 %v5594_v18, %v6744_v61  ;;  %v1763_v8 = vmax.f32 %v1695_v44, 0.0  ;;  %v1423_v18 = vadd.f32 %v5574_v21, %v6745_v49  ;;  %v1685_v4 = vadd.f32 %v5564_v63, %v1596_v9  ;;  %v6756_v6 = vld [vmem:[#allocation4_spill] sm:$0xff] }
 0x2b2   : > { %v1709_v59 = vpop.f32.mrf.mxu1  ;;  %v1871_v34 = vpack.c.bf16 %v1771_v52, %v1769_v32  ;;  %v1768_v60 = vmax.f32 %v1525_v16, 0.0  ;;  %v1759_v15 = vmax.f32 %v1690_v45, 0.0  ;;  %v1757_v28 = vmax.f32 %v5571_v53, 0.0  ;;  %v4351_v58 = vld [vmem:[%s6656_s3 + $0x184] sm:$0xf0] }
 0x2b3   : > { %v1710_v41 = vadd.f32 %v1709_v59, %v1621_v57  ;;  %v1517_v35 = vadd.f32 %v5608_v40, %v1428_v43  ;;  %v4349_v40 = vld [vmem:[%s6656_s3 + $0x174] sm:$0xf0]  ;;  %v1512_v31 = vadd.f32 %v5586_v33, %v1423_v18  ;;  %v1867_v21 = vpack.c.bf16 %v1763_v8, %v1761_v10  ;;  %v1124_v33 = vpop.permute.xlu0 %1123  ;;  %v3965_v45 = vld [vmem:[%s6656_s3 + $0x108] sm:$0xf0]  ;;  %v4035_v10 = vld [vmem:[%s6656_s3 + $0x190] sm:$0xf] }
 0x2b4   : > { %v1591_v59 = vadd.f32 %v5522_v48, %v6747_v26  ;;  %v4020_v17 = vor.u32 %v4349_v40, %v4019_v23  ;;  %v1507_v38 = vadd.f32 %v5566_v1, %v1418_v39  ;;  %v1865_v52 = vpack.c.bf16 %v1759_v15, %v1757_v28  ;;  %v4336_v23 = vld [vmem:[%s6656_s3 + $0x114] sm:$0xf]  ;;  %v3973_v40 = vld [vmem:[%s6656_s3 + $0x118] sm:$0xf0]  ;;  %v4051_v39 = vld [vmem:[%s6656_s3 + $0x1b0] sm:$0xf] }
 0x2b5   : > { %v1775_v0 = vmax.f32 %v1710_v41, 0.0  ;;  %v1772_v41 = vmax.f32 %v1530_v25, 0.0  ;;  %v1765_v25 = vmax.f32 %v1698_v29, 0.0  ;;  %v1762_v7 = vmax.f32 %v1517_v35, 0.0 }
 0x2b6   : > { %v1680_v63 = vadd.f32 %v5541_v56, %v1591_v59  ;;  %v1586_v48 = vadd.f32 %v5502_v11, %v1124_v33  ;;  %v1753_v53 = vmax.f32 %v5551_v24, 0.0  ;;  %v6749_v56 = vld [vmem:[#allocation8_spill] sm:$0xff]  ;;  %v1502_v1 = vadd.f32 %v6750_v27, %v1413_v12  ;;  %v6751_v11 = vld [vmem:[#allocation7_spill] sm:$0xff]  ;;  %v5766_v27 = vpop.permute.xlu1 %1946 }
 0x2b7   : > { %v1531_v2 = vpop.f32.mrf.mxu3  ;;  %v1873_v20 = vpack.c.bf16 %v1775_v0, %v1773_v42  ;;  %v1522_v0 = vadd.f32 %v1521_v3, %v1433_v47  ;;  %v1770_v42 = vmax.f32 %v1527_v30, 0.0  ;;  %v1869_v3 = vpack.c.bf16 %v1767_v5, %v1765_v25  ;;  %v4027_v25 = vld [vmem:[%s6656_s3 + $0x180] sm:$0xf] }
 0x2b8   : > { %v1532_v57 = vadd.f32 %v1531_v2, %v1443_v22  ;;  %2410 = vmatmul.bf16.gmra.mxu0 %v4012_v54  ;;  %v1758_v2 = vmax.f32 %v1512_v31, 0.0  ;;  %v1866_v30 = vpack.c.bf16 %v1762_v7, %v1760_v36  ;;  %v1751_v61 = vmax.f32 %v1680_v63, 0.0  ;;  %v4043_v31 = vld [vmem:[%s6656_s3 + $0x1a0] sm:$0xf]  ;;  %v4355_v7 = vld [vmem:[%s6656_s3 + $0x1a4] sm:$0xf0] }
 0x2b9   : > { %2461 = vmatpush.bf16.msra.mxu1 %v1873_v20  ;;  %v1766_v50 = vmax.f32 %v1522_v0, 0.0  ;;  %v1870_v37 = vpack.c.bf16 %v1770_v42, %v1768_v60  ;;  %v1756_v20 = vmax.f32 %v6748_v46, 0.0  ;;  %v1754_v29 = vmax.f32 %v1507_v38, 0.0  ;;  %v4334_v60 = vld [vmem:[%s6656_s3 + $0x104] sm:$0xf] }
 0x2ba   : > { %v1774_v19 = vmax.f32 %v1532_v57, 0.0  ;;  %v1675_v57 = vadd.f32 %v6749_v56, %v1586_v48  ;;  %v1408_v16 = vadd.f32 %v6751_v11, %v1124_v33  ;;  %v1752_v44 = vmax.f32 %v6753_v13, 0.0  ;;  %v4357_v36 = vld [vmem:[%s6656_s3 + $0x1b4] sm:$0xf0]  ;;  %v4340_v63 = vld [vmem:[%s6656_s3 + $0x134] sm:$0xf] }
 0x2bb   : > { %v1868_v62 = vpack.c.bf16 %v1766_v50, %v1764_v51  ;;  %v1864_v32 = vpack.c.bf16 %v1758_v2, %v1756_v20  ;;  %v1750_v0 = vmax.f32 %v1502_v1, 0.0  ;;  %v1748_v43 = vmax.f32 %v6756_v6, 0.0  ;;  %v4353_v51 = vld [vmem:[%s6656_s3 + $0x194] sm:$0xf0]  ;;  %v5729_v28 = vpop.permute.xlu0 %2026  ;;  %v4059_v20 = vld [vmem:[%s6656_s3 + $0x1c0] sm:$0xf] }
 0x2bc   : > { %v1872_v22 = vpack.c.bf16 %v1774_v19, %v1772_v41  ;;  %v6752_v41 = vld [vmem:[#allocation5_spill] sm:$0xff]  ;;  %v1747_v24 = vmax.f32 %v1675_v57, 0.0  ;;  %v1497_v5 = vadd.f32 %v6754_v55, %v1408_v16  ;;  %v1744_v9 = vmax.f32 %v6757_v14, 0.0  ;;  %v4359_v56 = vld [vmem:[%s6656_s3 + $0x1c4] sm:$0xf0] }
 0x2bd   : > { %2232 = vmatmul.bf16.gmra.mxu2 %v4012_v54  ;;  %2462 = vmatpush.bf16.msra.mxu1 %v1871_v34  ;;  %v1755_v54 = vmax.f32 %v1685_v4, 0.0  ;;  %v1749_v19 = vmax.f32 %v6752_v41, 0.0  ;;  %v6755_v34 = vld [vmem:[#allocation9_spill] sm:$0xff]  ;;  %v1860_v50 = vpack.c.bf16 %v1750_v0, %v1748_v43  ;;  %v4036_v4 = vor.u32 %v4353_v51, %v4035_v10  ;;  %v4342_v57 = vld [vmem:[%s6656_s3 + $0x144] sm:$0xf] }
 0x2be   : > { %2283 = vmatpush.bf16.msra.mxu3 %v1872_v22  ;;  %v1862_v22 = vpack.c.bf16 %v1754_v29, %v1752_v44  ;;  %v1745_v49 = vmax.f32 %v6755_v34, 0.0  ;;  %v1746_v8 = vmax.f32 %v1497_v5, 0.0  ;;  %v3976_v15 = vor.u32 %v4336_v23, %v3973_v40  ;;  %v5776_v41 = vpop.permute.xlu1 %2031  ;;  %v4067_v44 = vld [vmem:[%s6656_s3 + $0x1d0] sm:$0xf]  ;;  %v4361_v55 = vld [vmem:[%s6656_s3 + $0x1d4] sm:$0xf0] }
 0x2bf   : > { %v1863_v47 = vpack.c.bf16 %v1755_v54, %v1753_v53  ;;  %v1861_v42 = vpack.c.bf16 %v1751_v61, %v1749_v19  ;;  %v4044_v26 = vor.u32 %v4355_v7, %v4043_v31  ;;  %v3989_v54 = vld [vmem:[%s6656_s3 + $0x138] sm:$0xf0]  ;;  %v4052_v2 = vor.u32 %v4357_v36, %v4051_v39  ;;  %v3997_v61 = vld [vmem:[%s6656_s3 + $0x148] sm:$0xf0]  ;;  %6760 = vst [vmem:[#allocation16_spill] sm:$0xff] %v5776_v41 }
 0x2c0   : > { %v1859_v35 = vpack.c.bf16 %v1747_v24, %v1745_v49  ;;  %v1858_v18 = vpack.c.bf16 %v1746_v8, %v1744_v9  ;;  %v4060_v1 = vor.u32 %v4359_v56, %v4059_v20  ;;  %v4000_v29 = vor.u32 %v4342_v57, %v3997_v61  ;;  %v4344_v5 = vld [vmem:[%s6656_s3 + $0x154] sm:$0xf]  ;;  %v4005_v0 = vld [vmem:[%s6656_s3 + $0x158] sm:$0xf0]  ;;  %v4363_v8 = vld [vmem:[%s6656_s3 + $0x1e4] sm:$0xf0] }
 0x2c1   : > { %2463 = vmatpush.bf16.msra.mxu1 %v1869_v3  ;;  %v4028_v3 = vor.u32 %v4351_v58, %v4027_v25  ;;  %v4008_v34 = vor.u32 %v4344_v5, %v4005_v0  ;;  %v4365_v31 = vld [vmem:[%s6656_s3 + $0x1f4] sm:$0xf0]  ;;  %v4348_v7 = vld [vmem:[%s6656_s3 + $0x174] sm:$0xf]  ;;  %v4350_v56 = vld [vmem:[%s6656_s3 + $0x184] sm:$0xf] }
 0x2c2   : > { %2284 = vmatpush.bf16.msra.mxu3 %v1870_v37  ;;  %v3968_v37 = vor.u32 %v4334_v60, %v3965_v45  ;;  %v4075_v60 = vld [vmem:[%s6656_s3 + $0x1e0] sm:$0xf]  ;;  %v4029_v57 = vld [vmem:[%s6656_s3 + $0x188] sm:$0xf0] }
 0x2c3   : > { %v5746_v48 = vpop.permute.xlu0 %1941  ;;  %v4076_v14 = vor.u32 %v4363_v8, %v4075_v60 }
 0x2c5   : > { %2464 = vmatpush.bf16.msra.mxu1 %v1867_v21  ;;  %v4338_v21 = vld [vmem:[%s6656_s3 + $0x124] sm:$0xf] }
 0x2c6   : > { %2285 = vmatpush.bf16.msra.mxu3 %v1868_v62  ;;  %v3981_v62 = vld [vmem:[%s6656_s3 + $0x128] sm:$0xf0]  ;;  %v5798_v49 = vpop.permute.xlu1 %2016 }
 0x2c7   : > { %v3984_v59 = vor.u32 %v4338_v21, %v3981_v62  ;;  %6762 = vst [vmem:[#allocation11_spill] sm:$0xff] %v5798_v49  ;;  %v4021_v21 = vld [vmem:[%s6656_s3 + $0x178] sm:$0xf0] }
 0x2c8   : > { %2415 = vmatmul.bf16.gmra.mxu0 %v4020_v17 }
 0x2c9   : > { %2465 = vmatpush.bf16.msra.mxu1 %v1865_v52  ;;  %v3992_v52 = vor.u32 %v4340_v63, %v3989_v54 }
 0x2ca   : > { %2286 = vmatpush.bf16.msra.mxu3 %v1866_v30 }
 0x2cd   : > { %2237 = vmatmul.bf16.gmra.mxu2 %v4020_v17  ;;  %2466 = vmatpush.bf16.msra.mxu1 %v1863_v47  ;;  %v5724_v17 = vpop.permute.xlu2 %1951  ;;  %v5768_v47 = vpop.permute.xlu0 %1926 }
 0x2ce   : > { %2287 = vmatpush.bf16.msra.mxu3 %v1864_v32  ;;  %v5811_v45 = vpop.permute.xlu1 %1931 }
 0x2d1   : > { %2467 = vmatpush.bf16.msra.mxu1 %v1861_v42 }
 0x2d2   : > { %2288 = vmatpush.bf16.msra.mxu3 %v1862_v22  ;;  %v4068_v22 = vor.u32 %v4361_v55, %v4067_v44 }
 0x2d5   : > { %2468 = vmatpush.bf16.msra.mxu1 %v1859_v35  ;;  %v5740_v33 = vpop.f32.mrf.mxu0  ;;  %v5742_v38 = vpop.permute.xlu2 %1936  ;;  %v4346_v35 = vld [vmem:[%s6656_s3 + $0x164] sm:$0xf] }
 0x2d6   : > { %2289 = vmatpush.bf16.msra.mxu3 %v1860_v50  ;;  %v5778_v19 = vpop.permute.xlu0 %2011  ;;  %v4013_v50 = vld [vmem:[%s6656_s3 + $0x168] sm:$0xf0]  ;;  %v5830_v51 = vpop.permute.xlu1 %1916 }
 0x2d7   : > { %6761 = vst [vmem:[#allocation18_spill] sm:$0xff] %v5778_v19  ;;  %v4016_v9 = vor.u32 %v4346_v35, %v4013_v50 }
 0x2d8   : > { %2420 = vmatmul.bf16.gmra.mxu0 %v4028_v3  ;;  %2469 = vmatmul.bf16.vlgmr.msra.gmra.mxu1 %v3968_v37 }
 0x2da   : > { %2290 = vmatpush.bf16.msra.mxu3 %v1858_v18 }
 0x2dd   : > { %2242 = vmatmul.bf16.gmra.mxu2 %v4028_v3  ;;  %2291 = vmatmul.bf16.vlgmr.msra.gmra.mxu3 %v3968_v37  ;;  %v5748_v12 = vpop.f32.mrf.mxu0  ;;  %v5750_v53 = vpop.permute.xlu2 %2021 }
 0x2de   : > { %6758 = vst [vmem:[#allocation15_spill] sm:$0xff] %v5750_v53  ;;  %v5800_v6 = vpop.permute.xlu0 %1996  ;;  %v5852_v39 = vpop.permute.xlu1 %2001 }
 0x2df   : > { %6764 = vst [vmem:[#allocation12_spill] sm:$0xff] %v5852_v39 }
 0x2e0   : > { %v5744_v30 = vpop.f32.mrf.mxu2 }
 0x2e5   : > { %v5770_v32 = vpop.f32.mrf.mxu0  ;;  %v5772_v11 = vpop.permute.xlu2 %2006 }
 0x2e6   : > { %6759 = vst [vmem:[#allocation17_spill] sm:$0xff] %v5772_v11  ;;  %v5822_v3 = vpop.permute.xlu0 %1911 }
 0x2e8   : > { %2425 = vmatmul.bf16.gmra.mxu0 %v4036_v4  ;;  %2474 = vmatmul.bf16.gmra.mxu1 %v3976_v15  ;;  %v5752_v46 = vpop.f32.mrf.mxu2 }
 0x2ed   : > { %2247 = vmatmul.bf16.gmra.mxu2 %v4036_v4  ;;  %2296 = vmatmul.bf16.gmra.mxu3 %v3976_v15  ;;  %v5780_v13 = vpop.f32.mrf.mxu0  ;;  %v5785_v24 = vpop.permute.xlu2 %1921  ;;  %v4083_v15 = vld [vmem:[%s6656_s3 + $0x1f0] sm:$0xf] }
 0x2ee   : > { %v5832_v23 = vpop.permute.xlu0 %1896 }
 0x2f0   : > { %v5774_v16 = vpop.f32.mrf.mxu2 }
 0x2f5   : > { %v5802_v43 = vpop.f32.mrf.mxu0  ;;  %v5804_v25 = vpop.permute.xlu2 %1906 }
 0x2f6   : > { %v5854_v36 = vpop.permute.xlu0 %1981 }
 0x2f7   : > { %6765 = vst [vmem:[#allocation14_spill] sm:$0xff] %v5854_v36 }
 0x2f8   : > { %2430 = vmatmul.bf16.gmra.mxu0 %v4044_v26  ;;  %2479 = vmatmul.bf16.gmra.mxu1 %v3984_v59  ;;  %v5796_v42 = vpop.f32.mrf.mxu2 }
 0x2fd   : > { %2252 = vmatmul.bf16.gmra.mxu2 %v4044_v26  ;;  %2301 = vmatmul.bf16.gmra.mxu3 %v3984_v59  ;;  %v5824_v37 = vpop.f32.mrf.mxu0  ;;  %v5826_v18 = vpop.permute.xlu2 %1991  ;;  %v4084_v26 = vor.u32 %v4365_v31, %v4083_v15  ;;  %v4024_v59 = vor.u32 %v4348_v7, %v4021_v21  ;;  %v4037_v15 = vld [vmem:[%s6656_s3 + $0x198] sm:$0xf0] }
 0x2fe   : > { %6763 = vst [vmem:[#allocation13_spill] sm:$0xff] %v5826_v18  ;;  %v5862_v20 = vpop.permute.xlu0 %1966 }
 0x300   : > { %v5806_v58 = vpop.f32.mrf.mxu2 }
 0x305   : > { %v5834_v40 = vpop.f32.mrf.mxu0  ;;  %v5836_v4 = vpop.permute.xlu2 %1976 }
 0x306   : > { %v1882_v0 = vpop.permute.xlu0 %1881 }
 0x308   : > { %2435 = vmatmul.bf16.gmra.mxu0 %v4052_v2  ;;  %2484 = vmatmul.bf16.gmra.mxu1 %v3992_v52  ;;  %v5828_v10 = vpop.f32.mrf.mxu2 }
 0x30d   : > { %2257 = vmatmul.bf16.gmra.mxu2 %v4052_v2  ;;  %2306 = vmatmul.bf16.gmra.mxu3 %v3992_v52  ;;  %v5856_v63 = vpop.f32.mrf.mxu0  ;;  %v1892_v54 = vpop.permute.xlu2 %1891 }
 0x30e   : > { %v5860_v52 = vpop.permute.xlu1 %1986 }
 0x310   : > { %v5850_v62 = vpop.f32.mrf.mxu2 }
 0x315   : > { %v1877_v61 = vpop.permute.xlu2 %1876  ;;  %v5881_v31 = vpop.f32.mrf.mxu0 }
 0x316   : > { %v5871_v5 = vpop.permute.xlu1 %1901  ;;  %v2204_v60 = vadd.f32 %v5744_v30, %v1877_v61 }
 0x318   : > { %2440 = vmatmul.bf16.gmra.mxu0 %v4060_v1  ;;  %2489 = vmatmul.bf16.gmra.mxu1 %v4000_v29  ;;  %v5858_v2 = vpop.f32.mrf.mxu2 }
 0x31d   : > { %2262 = vmatmul.bf16.gmra.mxu2 %v4060_v1  ;;  %2311 = vmatmul.bf16.gmra.mxu3 %v4000_v29  ;;  %v2382_v1 = vadd.f32 %v5740_v33, %v1877_v61  ;;  %v4032_v29 = vor.u32 %v4350_v56, %v4029_v57  ;;  %v4352_v33 = vld [vmem:[%s6656_s3 + $0x194] sm:$0xf] }
 0x31e   : > { %v1887_v7 = vpop.permute.xlu1 %1886  ;;  %v4040_v21 = vor.u32 %v4352_v33, %v4037_v15  ;;  %v2392_v33 = vadd.f32 %v5802_v43, %v5832_v23 }
 0x31f   : > { %v2387_v30 = vadd.f32 %v5770_v32, %v1887_v7 }
 0x328   : > { %2445 = vmatmul.bf16.gmra.mxu0 %v4068_v22  ;;  %2494 = vmatmul.bf16.gmra.mxu1 %v4008_v34 }
 0x32d   : > { %2267 = vmatmul.bf16.gmra.mxu2 %v4068_v22  ;;  %2316 = vmatmul.bf16.gmra.mxu3 %v4008_v34  ;;  %v2384_v22 = vadd.f32 %v5748_v12, %v1882_v0 }
 0x338   : > { %2450 = vmatmul.bf16.gmra.mxu0 %v4076_v14  ;;  %2499 = vmatmul.bf16.gmra.mxu1 %v4016_v9 }
 0x33d   : > { %2272 = vmatmul.bf16.gmra.mxu2 %v4076_v14  ;;  %2321 = vmatmul.bf16.gmra.mxu3 %v4016_v9 }
 0x348   : > { %2455 = vmatmul.bf16.gmra.mxu0 %v4084_v26  ;;  %2504 = vmatmul.bf16.gmra.mxu1 %v4024_v59 }
 0x34d   : > { %2277 = vmatmul.bf16.gmra.mxu2 %v4084_v26  ;;  %2326 = vmatmul.bf16.gmra.mxu3 %v4024_v59  ;;  %v2206_v59 = vadd.f32 %v5752_v46, %v1882_v0 }
 0x355   : > { %v2470_v44 = vpop.f32.mrf.mxu1 }
 0x356   : > { %v2471_v55 = vadd.f32 %v2470_v44, %v2382_v1  ;;  %v2389_v44 = vadd.f32 %v5780_v13, %v1892_v54  ;;  %v4045_v13 = vld [vmem:[%s6656_s3 + $0x1a8] sm:$0xf0] }
 0x358   : > { %2509 = vmatmul.bf16.gmra.mxu1 %v4032_v29  ;;  %v2551_v50 = vmax.f32 %v2471_v55, 0.0  ;;  %v5888_v55 = vpop.f32.mrf.mxu0 }
 0x35d   : > { %2331 = vmatmul.bf16.gmra.mxu3 %v4032_v29  ;;  %v2472_v34 = vpop.f32.mrf.mxu1 }
 0x35e   : > { %v2473_v8 = vadd.f32 %v2472_v34, %v2384_v22  ;;  %v5892_v34 = vpop.f32.mrf.mxu2 }
 0x360   : > { %v2292_v35 = vpop.f32.mrf.mxu3  ;;  %v2553_v14 = vmax.f32 %v2473_v8, 0.0 }
 0x361   : > { %v2293_v9 = vadd.f32 %v2292_v35, %v2204_v60  ;;  %v2209_v60 = vadd.f32 %v5774_v16, %v1887_v7  ;;  %v2211_v7 = vadd.f32 %v5796_v42, %v1892_v54  ;;  %v2214_v42 = vadd.f32 %v5806_v58, %v5832_v23 }
 0x362   : > { %v5883_v12 = vpack.c.bf16 %v2553_v14, %v2551_v50  ;;  %v4354_v14 = vld [vmem:[%s6656_s3 + $0x1a4] sm:$0xf]  ;;  %v2397_v58 = vadd.f32 %v5834_v40, %v5804_v25 }
 0x363   : > { %v2550_v1 = vmax.f32 %v2293_v9, 0.0  ;;  %v4048_v15 = vor.u32 %v4354_v14, %v4045_v13  ;;  %v2216_v13 = vadd.f32 %v5828_v10, %v5871_v5  ;;  %v2219_v10 = vadd.f32 %v5850_v62, %v5804_v25 }
 0x365   : > { %v2475_v26 = vpop.f32.mrf.mxu1 }
 0x366   : > { %v2476_v56 = vadd.f32 %v2475_v26, %v2387_v30  ;;  %v5906_v30 = vpop.f32.mrf.mxu0  ;;  %v5908_v26 = vpop.f32.mrf.mxu2 }
 0x368   : > { %v2294_v57 = vpop.f32.mrf.mxu3  ;;  %2514 = vmatmul.bf16.gmra.mxu1 %v4040_v21  ;;  %v2555_v0 = vmax.f32 %v2476_v56, 0.0 }
 0x369   : > { %v2295_v61 = vadd.f32 %v2294_v57, %v2206_v59 }
 0x36b   : > { %v2552_v29 = vmax.f32 %v2295_v61, 0.0 }
 0x36d   : > { %2336 = vmatmul.bf16.gmra.mxu3 %v4040_v21  ;;  %v5890_v22 = vpack.c.bf16 %v2552_v29, %v2550_v1  ;;  %v2477_v32 = vpop.f32.mrf.mxu1  ;;  %v2394_v1 = vadd.f32 %v5824_v37, %v5871_v5  ;;  %v4356_v37 = vld [vmem:[%s6656_s3 + $0x1b4] sm:$0xf] }
 0x36e   : > { %v2478_v8 = vadd.f32 %v2477_v32, %v2389_v44  ;;  %v5916_v32 = vpop.f32.mrf.mxu0 }
 0x370   : > { %v2297_v46 = vpop.f32.mrf.mxu3  ;;  %v2557_v35 = vmax.f32 %v2478_v8, 0.0 }
 0x371   : > { %v2298_v50 = vadd.f32 %v2297_v46, %v2209_v60 }
 0x372   : > { %v5901_v9 = vpack.c.bf16 %v2557_v35, %v2555_v0  ;;  %v5918_v0 = vpop.f32.mrf.mxu2  ;;  %v4053_v35 = vld [vmem:[%s6656_s3 + $0x1b8] sm:$0xf0] }
 0x373   : > { %v2554_v57 = vmax.f32 %v2298_v50, 0.0  ;;  %v4056_v23 = vor.u32 %v4356_v37, %v4053_v35  ;;  %v2221_v35 = vadd.f32 %v5858_v2, %v5822_v3  ;;  %v4360_v2 = vld [vmem:[%s6656_s3 + $0x1d4] sm:$0xf] }
 0x375   : > { %v2480_v16 = vpop.f32.mrf.mxu1 }
 0x376   : > { %v2481_v21 = vadd.f32 %v2480_v16, %v2392_v33 }
 0x378   : > { %v2299_v59 = vpop.f32.mrf.mxu3  ;;  %2519 = vmatmul.bf16.gmra.mxu1 %v4048_v15  ;;  %v2559_v60 = vmax.f32 %v2481_v21, 0.0 }
 0x379   : > { %v2300_v56 = vadd.f32 %v2299_v59, %v2211_v7  ;;  %v5932_v7 = vpop.f32.mrf.mxu0 }
 0x37b   : > { %v2556_v61 = vmax.f32 %v2300_v56, 0.0  ;;  %v5934_v56 = vpop.f32.mrf.mxu2 }
 0x37d   : > { %2341 = vmatmul.bf16.gmra.mxu3 %v4048_v15  ;;  %v5912_v29 = vpack.c.bf16 %v2556_v61, %v2554_v57  ;;  %v2482_v43 = vpop.f32.mrf.mxu1  ;;  %v2399_v57 = vadd.f32 %v5856_v63, %v5822_v3  ;;  %v4061_v63 = vld [vmem:[%s6656_s3 + $0x1c8] sm:$0xf0] }
 0x37e   : > { %v2483_v54 = vadd.f32 %v2482_v43, %v2394_v1 }
 0x380   : > { %v2302_v44 = vpop.f32.mrf.mxu3  ;;  %v2561_v8 = vmax.f32 %v2483_v54, 0.0 }
 0x381   : > { %v2303_v46 = vadd.f32 %v2302_v44, %v2214_v42  ;;  %v4358_v44 = vld [vmem:[%s6656_s3 + $0x1c4] sm:$0xf] }
 0x382   : > { %v5926_v50 = vpack.c.bf16 %v2561_v8, %v2559_v60  ;;  %v2402_v8 = vadd.f32 %v5881_v31, %v5830_v51  ;;  %v4064_v25 = vor.u32 %v4358_v44, %v4061_v63  ;;  %v2224_v31 = vadd.f32 %v5892_v34, %v5830_v51  ;;  %v4077_v44 = vld [vmem:[%s6656_s3 + $0x1e8] sm:$0xf0] }
 0x383   : > { %v2558_v21 = vmax.f32 %v2303_v46, 0.0  ;;  %v2413_v46 = vpop.f32.mrf.mxu0  ;;  %v5952_v62 = vpop.f32.mrf.mxu2 }
 0x384   : > { %v2414_v36 = vadd.f32 %v2413_v46, %v5746_v48 }
 0x385   : > { %v2485_v14 = vpop.f32.mrf.mxu1 }
 0x386   : > { %v2486_v33 = vadd.f32 %v2485_v14, %v2397_v58 }
 0x388   : > { %v2304_v15 = vpop.f32.mrf.mxu3  ;;  %2524 = vmatmul.bf16.gmra.mxu1 %v4056_v23  ;;  %v2563_v43 = vmax.f32 %v2486_v33, 0.0 }
 0x389   : > { %v2305_v16 = vadd.f32 %v2304_v15, %v2216_v13 }
 0x38b   : > { %v2560_v59 = vmax.f32 %v2305_v16, 0.0 }
 0x38d   : > { %2346 = vmatmul.bf16.gmra.mxu3 %v4056_v23  ;;  %v5938_v40 = vpack.c.bf16 %v2560_v59, %v2558_v21  ;;  %v2487_v61 = vpop.f32.mrf.mxu1  ;;  %v2416_v21 = vpop.f32.mrf.mxu0 }
 0x38e   : > { %v2488_v5 = vadd.f32 %v2487_v61, %v2399_v57  ;;  %v5964_v59 = vpop.f32.mrf.mxu2  ;;  %v4069_v61 = vld [vmem:[%s6656_s3 + $0x1d8] sm:$0xf0] }
 0x390   : > { %v2307_v1 = vpop.f32.mrf.mxu3  ;;  %v2565_v42 = vmax.f32 %v2488_v5, 0.0 }
 0x391   : > { %v2308_v54 = vadd.f32 %v2307_v1, %v2219_v10  ;;  %v4072_v10 = vor.u32 %v4360_v2, %v4069_v61 }
 0x392   : > { %v5948_v60 = vpack.c.bf16 %v2565_v42, %v2563_v43 }
 0x393   : > { %v2562_v13 = vmax.f32 %v2308_v54, 0.0  ;;  %v4362_v54 = vld [vmem:[%s6656_s3 + $0x1e4] sm:$0xf] }
 0x395   : > { %v2490_v37 = vpop.f32.mrf.mxu1  ;;  %v2418_v43 = vpop.f32.mrf.mxu0 }
 0x396   : > { %v5956_v58 = vadd.f32 %v2490_v37, %v2402_v8  ;;  %v2238_v51 = vpop.f32.mrf.mxu2  ;;  %v2419_v18 = vadd.f32 %v2418_v43, %v5724_v17  ;;  %v2407_v43 = vadd.f32 %v5906_v30, %v5768_v47 }
 0x398   : > { %v2309_v23 = vpop.f32.mrf.mxu3  ;;  %2529 = vmatmul.bf16.gmra.mxu1 %v4064_v25 }
 0x399   : > { %v2310_v14 = vadd.f32 %v2309_v23, %v2221_v35 }
 0x39b   : > { %v2564_v33 = vmax.f32 %v2310_v14, 0.0 }
 0x39d   : > { %2351 = vmatmul.bf16.gmra.mxu3 %v4064_v25  ;;  %v5958_v15 = vpack.c.bf16 %v2564_v33, %v2562_v13  ;;  %v5960_v16 = vpop.f32.mrf.mxu1  ;;  %v2421_v63 = vpop.f32.mrf.mxu0  ;;  %v4080_v25 = vor.u32 %v4362_v54, %v4077_v44 }
 0x39e   : > { %v2240_v8 = vpop.f32.mrf.mxu2 }
 0x3a0   : > { %v2312_v57 = vpop.f32.mrf.mxu3 }
 0x3a1   : > { %v5966_v3 = vadd.f32 %v2312_v57, %v2224_v31  ;;  %v4364_v31 = vld [vmem:[%s6656_s3 + $0x1f4] sm:$0xf]  ;;  %v4085_v57 = vld [vmem:[%s6656_s3 + $0x1f8] sm:$0xf0] }
 0x3a2   : > { %v4088_v2 = vor.u32 %v4364_v31, %v4085_v57  ;;  %v2412_v31 = vadd.f32 %v5932_v7, %v5742_v38 }
 0x3a5   : > { %v2495_v5 = vpop.f32.mrf.mxu1  ;;  %v5986_v23 = vpop.f32.mrf.mxu0 }
 0x3a6   : > { %6766 = vst [vmem:[#allocation20_spill] sm:$0xff] %v5986_v23  ;;  %v5988_v14 = vpop.f32.mrf.mxu2  ;;  %v2417_v23 = vadd.f32 %v2416_v21, %v5766_v27 }
 0x3a8   : > { %v5974_v1 = vpop.f32.mrf.mxu3  ;;  %2534 = vmatmul.bf16.gmra.mxu1 %v4072_v10 }
 0x3ad   : > { %2356 = vmatmul.bf16.gmra.mxu3 %v4072_v10  ;;  %v2497_v34 = vpop.f32.mrf.mxu1  ;;  %v5996_v10 = vpop.f32.mrf.mxu0 }
 0x3ae   : > { %v5998_v54 = vpop.f32.mrf.mxu2 }
 0x3af   : > { %6767 = vst [vmem:[#allocation8_spill] sm:$0xff] %v5998_v54  ;;  %v2409_v54 = vadd.f32 %v5916_v32, %v5811_v45  ;;  %v2496_v32 = vadd.f32 %v2495_v5, %v2407_v43 }
 0x3b0   : > { %v5976_v42 = vpop.f32.mrf.mxu3 }
 0x3b1   : > { %v2571_v5 = vmax.f32 %v2496_v32, 0.0 }
 0x3b5   : > { %v2500_v37 = vpop.f32.mrf.mxu1  ;;  %v6009_v41 = vpop.f32.mrf.mxu0 }
 0x3b6   : > { %v6011_v46 = vpop.f32.mrf.mxu2 }
 0x3b8   : > { %v5984_v35 = vpop.f32.mrf.mxu3  ;;  %2539 = vmatmul.bf16.gmra.mxu1 %v4080_v25 }
 0x3bd   : > { %2361 = vmatmul.bf16.gmra.mxu3 %v4080_v25  ;;  %v2502_v13 = vpop.f32.mrf.mxu1  ;;  %v6000_v25 = vpop.permute.xlu1 %1971 }
 0x3be   : > { %6768 = vst [vmem:[#allocation6_spill] sm:$0xff] %v6000_v25  ;;  %v2503_v57 = vadd.f32 %v2502_v13, %v2414_v36  ;;  %v2501_v25 = vadd.f32 %v2500_v37, %v2412_v31 }
 0x3c0   : > { %v2322_v33 = vpop.f32.mrf.mxu3  ;;  %v2575_v13 = vmax.f32 %v2501_v25, 0.0 }
 0x3c5   : > { %v2505_v61 = vpop.f32.mrf.mxu1  ;;  %v1957_v7 = vpop.permute.xlu1 %1956 }
 0x3c6   : > { %v2506_v39 = vadd.f32 %v2505_v61, %v2417_v23  ;;  %v2498_v23 = vadd.f32 %v2497_v34, %v2409_v54  ;;  %v2422_v36 = vadd.f32 %v2421_v63, %v1957_v7 }
 0x3c8   : > { %v2324_v44 = vpop.f32.mrf.mxu3  ;;  %2544 = vmatmul.bf16.gmra.mxu1 %v4088_v2  ;;  %v2579_v21 = vmax.f32 %v2506_v39, 0.0  ;;  %v2241_v39 = vadd.f32 %v2240_v8, %v5724_v17  ;;  %v2573_v37 = vmax.f32 %v2498_v23, 0.0 }
 0x3cd   : > { %2366 = vmatmul.bf16.gmra.mxu3 %v4088_v2  ;;  %v2507_v11 = vpop.f32.mrf.mxu1  ;;  %v2577_v2 = vmax.f32 %v2503_v57, 0.0  ;;  %v2229_v57 = vadd.f32 %v5918_v0, %v5768_v47 }
 0x3ce   : > { %v2508_v19 = vadd.f32 %v2507_v11, %v2419_v18  ;;  %v2404_v11 = vadd.f32 %v5888_v55, %v5785_v24  ;;  %v2239_v18 = vadd.f32 %v2238_v51, %v5766_v27  ;;  %v2234_v27 = vadd.f32 %v5952_v62, %v5742_v38 }
 0x3cf   : > { %v2693_v31 = vpack.c.bf16 %v2577_v2, %v2575_v13  ;;  %v2567_v38 = vmax.f32 %v5956_v58, 0.0  ;;  %v2318_v23 = vadd.f32 %v5976_v42, %v2229_v57 }
 0x3d0   : > { %v2327_v49 = vpop.f32.mrf.mxu3  ;;  %v2581_v53 = vmax.f32 %v2508_v19, 0.0  ;;  %v2236_v19 = vadd.f32 %v5964_v59, %v5746_v48  ;;  %v2493_v30 = vadd.f32 %v5960_v16, %v2404_v11  ;;  %v2231_v48 = vadd.f32 %v5934_v56, %v5811_v45  ;;  %v2431_v59 = vpop.f32.mrf.mxu0 }
 0x3d1   : > { %v2323_v16 = vadd.f32 %v2322_v33, %v2234_v27  ;;  %v2226_v45 = vadd.f32 %v5908_v26, %v5785_v24  ;;  %v2244_v33 = vadd.f32 %v5988_v14, %v1957_v7  ;;  %v2427_v24 = vadd.f32 %v5996_v10, %v5862_v20  ;;  %v4367_v10 = vld [vmem:[%s6656_s3 + $0x204] sm:$0xf0] }
 0x3d2   : > { %v2695_v61 = vpack.c.bf16 %v2581_v53, %v2579_v21  ;;  %v2328_v53 = vadd.f32 %v2327_v49, %v2239_v18  ;;  %v2325_v51 = vadd.f32 %v2324_v44, %v2236_v19  ;;  %v2569_v17 = vmax.f32 %v2493_v30, 0.0  ;;  %v6030_v21 = vpop.f32.mrf.mxu2 }
 0x3d3   : > { %v2691_v49 = vpack.c.bf16 %v2573_v37, %v2571_v5  ;;  %6770 = vst [vmem:[#allocation5_spill] sm:$0xff] %v6030_v21  ;;  %v2320_v62 = vadd.f32 %v5984_v35, %v2231_v48  ;;  %v2574_v2 = vmax.f32 %v2323_v16, 0.0  ;;  %v2315_v58 = vadd.f32 %v5974_v1, %v2226_v45 }
 0x3d4   : > { %3210 = vmatpush.bf16.msrb.mxu0 %v2695_v61  ;;  %v2578_v8 = vmax.f32 %v2328_v53, 0.0  ;;  %v2576_v44 = vmax.f32 %v2325_v51, 0.0  ;;  %v2689_v47 = vpack.c.bf16 %v2569_v17, %v2567_v38  ;;  %v2570_v18 = vmax.f32 %v2318_v23, 0.0 }
 0x3d5   : > { %v2510_v34 = vpop.f32.mrf.mxu1  ;;  %v2572_v61 = vmax.f32 %v2320_v62, 0.0  ;;  %v2568_v14 = vmax.f32 %v2315_v58, 0.0  ;;  %v2566_v1 = vmax.f32 %v5966_v3, 0.0  ;;  %v2432_v53 = vadd.f32 %v2431_v59, %v5836_v4 }
 0x3d6   : > { %v6022_v54 = vadd.f32 %v2510_v34, %v2422_v36  ;;  %v2692_v11 = vpack.c.bf16 %v2576_v44, %v2574_v2 }
 0x3d7   : > { %v2690_v42 = vpack.c.bf16 %v2572_v61, %v2570_v18  ;;  %v2688_v19 = vpack.c.bf16 %v2568_v14, %v2566_v1  ;;  %v4179_v61 = vld [vmem:[%s6656_s3 + $0x230] sm:$0xf] }
 0x3d8   : > { %6769 = vst [vmem:[#allocation7_spill] sm:$0xff] %v6022_v54  ;;  %v2329_v55 = vpop.f32.mrf.mxu3  ;;  %3211 = vmatpush.bf16.msrb.mxu0 %v2693_v31  ;;  %v6045_v26 = vpop.f32.mrf.mxu0 }
 0x3d9   : > { %v2330_v63 = vadd.f32 %v2329_v55, %v2241_v39  ;;  %v2249_v39 = vadd.f32 %v6011_v46, %v5862_v20 }
 0x3da   : > { %v2253_v7 = vpop.f32.mrf.mxu2 }
 0x3db   : > { %v2580_v25 = vmax.f32 %v2330_v63, 0.0 }
 0x3dc   : > { %3212 = vmatpush.bf16.msrb.mxu0 %v2691_v49  ;;  %v4371_v49 = vld [vmem:[%s6656_s3 + $0x224] sm:$0xf0] }
 0x3dd   : > { %v2694_v43 = vpack.c.bf16 %v2580_v25, %v2578_v8  ;;  %v6036_v56 = vpop.f32.mrf.mxu1 }
 0x3df   : > { %3032 = vmatpush.bf16.msrb.mxu2 %v2694_v43 }
 0x3e0   : > { %v2332_v0 = vpop.f32.mrf.mxu3  ;;  %3213 = vmatpush.bf16.msrb.mxu0 %v2689_v47  ;;  %v2436_v30 = vpop.f32.mrf.mxu0 }
 0x3e1   : > { %v6041_v35 = vadd.f32 %v2332_v0, %v2244_v33 }
 0x3e3   : > { %6771 = vst [vmem:[#allocation19_spill] sm:$0xff] %v6041_v35  ;;  %3033 = vmatpush.bf16.msrb.mxu2 %v2692_v11 }
 0x3e4   : > { %3214 = vmatpush.bf16.msrb.mxu0 %v5948_v60  ;;  %v4155_v60 = vld [vmem:[%s6656_s3 + $0x200] sm:$0xf] }
 0x3e5   : > { %v2515_v36 = vpop.f32.mrf.mxu1 }
 0x3e6   : > { %v6049_v32 = vadd.f32 %v2515_v36, %v2427_v24 }
 0x3e7   : > { %3034 = vmatpush.bf16.msrb.mxu2 %v2690_v42 }
 0x3e8   : > { %v6051_v13 = vpop.f32.mrf.mxu3  ;;  %3215 = vmatpush.bf16.msrb.mxu0 %v5926_v50  ;;  %v6066_v50 = vpop.f32.mrf.mxu2 }
 0x3e9   : > { %6772 = vst [vmem:[#allocation3_spill] sm:$0xff] %v6051_v13 }
 0x3eb   : > { %3035 = vmatpush.bf16.msrb.mxu2 %v2688_v19 }
 0x3ec   : > { %3216 = vmatpush.bf16.msrb.mxu0 %v5901_v9  ;;  %v4156_v9 = vor.u32 %v4367_v10, %v4155_v60 }
 0x3ed   : > { %v6061_v3 = vpop.f32.mrf.mxu1 }
 0x3ef   : > { %3036 = vmatpush.bf16.msrb.mxu2 %v5958_v15  ;;  %v6078_v15 = vpop.f32.mrf.mxu0 }
 0x3f0   : > { %v2337_v34 = vpop.f32.mrf.mxu3  ;;  %3217 = vmatpush.bf16.msrb.mxu0 %v5883_v12  ;;  %v2258_v46 = vpop.f32.mrf.mxu2  ;;  %v4163_v12 = vld [vmem:[%s6656_s3 + $0x210] sm:$0xf] }
 0x3f1   : > { %v6069_v37 = vadd.f32 %v2337_v34, %v2249_v39  ;;  %v2259_v62 = vadd.f32 %v2258_v46, %v5860_v52  ;;  %v4187_v39 = vld [vmem:[%s6656_s3 + $0x240] sm:$0xf] }
 0x3f3   : > { %6773 = vst [vmem:[#allocation9_spill] sm:$0xff] %v6069_v37  ;;  %3037 = vmatpush.bf16.msrb.mxu2 %v5938_v40  ;;  %3218 = vmatmul.bf16.vlgmr.msrb.gmra.mxu0 %v4156_v9  ;;  %v4369_v40 = vld [vmem:[%s6656_s3 + $0x214] sm:$0xf0] }
 0x3f4   : > { %v4164_v51 = vor.u32 %v4369_v40, %v4163_v12  ;;  %v4195_v40 = vld [vmem:[%s6656_s3 + $0x250] sm:$0xf] }
 0x3f5   : > { %v2520_v31 = vpop.f32.mrf.mxu1  ;;  %v6781_v37 = vld [vmem:[#allocation17_spill] sm:$0xff] }
 0x3f6   : > { %v6073_v55 = vadd.f32 %v2520_v31, %v2432_v53 }
 0x3f7   : > { %3038 = vmatpush.bf16.msrb.mxu2 %v5912_v29  ;;  %v2254_v29 = vadd.f32 %v2253_v7, %v5836_v4  ;;  %v2441_v48 = vpop.f32.mrf.mxu0  ;;  %v4171_v4 = vld [vmem:[%s6656_s3 + $0x220] sm:$0xf] }
 0x3f8   : > { %v6076_v20 = vpop.f32.mrf.mxu3  ;;  %v6092_v17 = vpop.f32.mrf.mxu2  ;;  %v4172_v43 = vor.u32 %v4371_v49, %v4171_v4  ;;  %v2442_v33 = vadd.f32 %v2441_v48, %v5800_v6 }
 0x3f9   : > { %6774 = vst [vmem:[#allocation4_spill] sm:$0xff] %v6076_v20 }
 0x3fb   : > { %3039 = vmatpush.bf16.msrb.mxu2 %v5890_v22  ;;  %v2437_v22 = vadd.f32 %v2436_v30, %v5860_v52  ;;  %v4373_v52 = vld [vmem:[%s6656_s3 + $0x234] sm:$0xf0] }
 0x3fc   : > { %v4180_v14 = vor.u32 %v4373_v52, %v4179_v61 }
 0x3fd   : > { %v6087_v27 = vpop.f32.mrf.mxu1 }
 0x3fe   : > { %3040 = vmatmul.bf16.vlgmr.msrb.gmra.mxu2 %v4156_v9 }
 0x3ff   : > { %v6099_v25 = vpop.f32.mrf.mxu0 }
 0x400   : > { %v2342_v5 = vpop.f32.mrf.mxu3  ;;  %v2263_v57 = vpop.f32.mrf.mxu2 }
 0x401   : > { %v6090_v63 = vadd.f32 %v2342_v5, %v2254_v29  ;;  %v2264_v18 = vadd.f32 %v2263_v57, %v5800_v6  ;;  %v4375_v6 = vld [vmem:[%s6656_s3 + $0x244] sm:$0xf0]  ;;  %v4377_v29 = vld [vmem:[%s6656_s3 + $0x254] sm:$0xf0] }
 0x402   : > { %v4188_v9 = vor.u32 %v4375_v6, %v4187_v39  ;;  %v6779_v39 = vld [vmem:[#allocation11_spill] sm:$0xff] }
 0x403   : > { %6775 = vst [vmem:[#allocation10_spill] sm:$0xff] %v6090_v63  ;;  %3223 = vmatmul.bf16.gmra.mxu0 %v4164_v51 }
 0x405   : > { %v2525_v59 = vpop.f32.mrf.mxu1 }
 0x406   : > { %v6095_v16 = vadd.f32 %v2525_v59, %v2437_v22  ;;  %v4196_v59 = vor.u32 %v4377_v29, %v4195_v40 }
 0x407   : > { %v2446_v2 = vpop.f32.mrf.mxu0 }
 0x408   : > { %v6097_v8 = vpop.f32.mrf.mxu3  ;;  %v6115_v0 = vpop.f32.mrf.mxu2  ;;  %v2447_v13 = vadd.f32 %v2446_v2, %v6781_v37 }
 0x40d   : > { %v6107_v38 = vpop.f32.mrf.mxu1 }
 0x40e   : > { %3045 = vmatmul.bf16.gmra.mxu2 %v4164_v51 }
 0x40f   : > { %v2448_v42 = vpop.f32.mrf.mxu0 }
 0x410   : > { %v2347_v44 = vpop.f32.mrf.mxu3  ;;  %v6130_v36 = vpop.f32.mrf.mxu2 }
 0x411   : > { %v6110_v45 = vadd.f32 %v2347_v44, %v2259_v62 }
 0x413   : > { %6776 = vst [vmem:[#allocation21_spill] sm:$0xff] %v6110_v45  ;;  %3228 = vmatmul.bf16.gmra.mxu0 %v4172_v43  ;;  %v6782_v45 = vld [vmem:[#allocation12_spill] sm:$0xff] }
 0x414   : > { %v2444_v21 = vadd.f32 %v6099_v25, %v6782_v45 }
 0x415   : > { %v2530_v23 = vpop.f32.mrf.mxu1 }
 0x416   : > { %v6113_v47 = vadd.f32 %v2530_v23, %v2442_v33  ;;  %v6778_v23 = vld [vmem:[#allocation16_spill] sm:$0xff] }
 0x417   : > { %v2451_v60 = vpop.f32.mrf.mxu0 }
 0x418   : > { %v6117_v58 = vpop.f32.mrf.mxu3  ;;  %v6134_v10 = vpop.f32.mrf.mxu2  ;;  %v2452_v6 = vadd.f32 %v2451_v60, %v6779_v39 }
 0x41d   : > { %v6125_v11 = vpop.f32.mrf.mxu1 }
 0x41e   : > { %3050 = vmatmul.bf16.gmra.mxu2 %v4172_v43  ;;  %v6777_v43 = vld [vmem:[#allocation15_spill] sm:$0xff] }
 0x41f   : > { %v2453_v53 = vpop.f32.mrf.mxu0 }
 0x420   : > { %v2352_v24 = vpop.f32.mrf.mxu3  ;;  %v2273_v31 = vpop.f32.mrf.mxu2  ;;  %v2454_v33 = vadd.f32 %v2453_v53, %v6777_v43  ;;  %v6780_v53 = vld [vmem:[#allocation18_spill] sm:$0xff] }
 0x421   : > { %v6128_v7 = vadd.f32 %v2352_v24, %v2264_v18  ;;  %v4203_v18 = vld [vmem:[%s6656_s3 + $0x260] sm:$0xf]  ;;  %v4379_v24 = vld [vmem:[%s6656_s3 + $0x264] sm:$0xf0]  ;;  %v2449_v35 = vadd.f32 %v2448_v42, %v6780_v53 }
 0x423   : > { %3233 = vmatmul.bf16.gmra.mxu0 %v4180_v14 }
 0x425   : > { %v2535_v1 = vpop.f32.mrf.mxu1 }
 0x427   : > { %v2456_v51 = vpop.f32.mrf.mxu0 }
 0x428   : > { %v6132_v19 = vpop.f32.mrf.mxu3  ;;  %v2275_v48 = vpop.f32.mrf.mxu2  ;;  %v2457_v44 = vadd.f32 %v2456_v51, %v5729_v28  ;;  %v4204_v51 = vor.u32 %v4379_v24, %v4203_v18  ;;  %v2274_v24 = vadd.f32 %v2273_v31, %v6779_v39  ;;  %v2269_v31 = vadd.f32 %v6130_v36, %v6781_v37 }
 0x429   : > { %v2276_v42 = vadd.f32 %v2275_v48, %v6777_v43 }
 0x42d   : > { %v2537_v30 = vpop.f32.mrf.mxu1 }
 0x42e   : > { %3055 = vmatmul.bf16.gmra.mxu2 %v4180_v14  ;;  %v2538_v63 = vadd.f32 %v2537_v30, %v2449_v35 }
 0x42f   : > { %v2458_v57 = vpop.f32.mrf.mxu0 }
 0x430   : > { %v6142_v34 = vpop.f32.mrf.mxu3  ;;  %v2278_v62 = vpop.f32.mrf.mxu2  ;;  %v2459_v61 = vadd.f32 %v2458_v57, %v6778_v23  ;;  %v2605_v2 = vmax.f32 %v2538_v63, 0.0 }
 0x431   : > { %v2279_v60 = vadd.f32 %v2278_v62, %v5729_v28  ;;  %v6784_v62 = vld [vmem:[#allocation14_spill] sm:$0xff]  ;;  %v2358_v36 = vadd.f32 %v6142_v34, %v2269_v31  ;;  %v6793_v31 = vld [vmem:[#allocation3_spill] sm:$0xff] }
 0x433   : > { %3238 = vmatmul.bf16.gmra.mxu0 %v4188_v9 }
 0x435   : > { %v2540_v46 = vpop.f32.mrf.mxu1 }
 0x436   : > { %v2541_v57 = vadd.f32 %v2540_v46, %v2452_v6  ;;  %v2533_v46 = vadd.f32 %v6125_v11, %v2444_v21  ;;  %v6785_v6 = vld [vmem:[#allocation6_spill] sm:$0xff] }
 0x438   : > { %v6144_v12 = vpop.f32.mrf.mxu3  ;;  %v2601_v11 = vmax.f32 %v2533_v46, 0.0 }
 0x43d   : > { %v2542_v5 = vpop.f32.mrf.mxu1 }
 0x43e   : > { %3060 = vmatmul.bf16.gmra.mxu2 %v4188_v9  ;;  %v2543_v9 = vadd.f32 %v2542_v5, %v2454_v33  ;;  %v2536_v5 = vadd.f32 %v2535_v1, %v2447_v13  ;;  %v2607_v33 = vmax.f32 %v2541_v57, 0.0 }
 0x440   : > { %v2362_v22 = vpop.f32.mrf.mxu3  ;;  %v2609_v20 = vmax.f32 %v2543_v9, 0.0  ;;  %v2429_v9 = vadd.f32 %v6009_v41, %v6785_v6 }
 0x441   : > { %v2363_v1 = vadd.f32 %v2362_v22, %v2274_v24 }
 0x442   : > { %v2709_v30 = vpack.c.bf16 %v2609_v20, %v2607_v33  ;;  %v2518_v34 = vadd.f32 %v6061_v3, %v2429_v9  ;;  %v4165_v9 = vld [vmem:[%s6656_s3 + $0x218] sm:$0xf0] }
 0x443   : > { %3243 = vmatmul.bf16.gmra.mxu0 %v4196_v59 }
 0x444   : > { %v2589_v3 = vmax.f32 %v2518_v34, 0.0 }
 0x445   : > { %v2545_v4 = vpop.f32.mrf.mxu1 }
 0x446   : > { %v2546_v52 = vadd.f32 %v2545_v4, %v2457_v44 }
 0x448   : > { %v2364_v49 = vpop.f32.mrf.mxu3  ;;  %v2611_v4 = vmax.f32 %v2546_v52, 0.0  ;;  %v6783_v52 = vld [vmem:[#allocation13_spill] sm:$0xff] }
 0x449   : > { %v2439_v18 = vadd.f32 %v6078_v15, %v6783_v52  ;;  %v2365_v28 = vadd.f32 %v2364_v49, %v2276_v42  ;;  %v2434_v15 = vadd.f32 %v6045_v26, %v6784_v62  ;;  %v2599_v49 = vmax.f32 %v6113_v47, 0.0 }
 0x44a   : > { %v2266_v26 = vadd.f32 %v6115_v0, %v6782_v45  ;;  %v1962_v0 = vpop.permute.xlu2 %1961  ;;  %v2598_v42 = vmax.f32 %v6128_v7, 0.0 }
 0x44b   : > { %v2528_v21 = vadd.f32 %v6107_v38, %v2439_v18  ;;  %v4211_v38 = vld [vmem:[%s6656_s3 + $0x270] sm:$0xf]  ;;  %v2523_v37 = vadd.f32 %v6087_v27, %v2434_v15  ;;  %v2705_v22 = vpack.c.bf16 %v2601_v11, %v2599_v49  ;;  %v2261_v27 = vadd.f32 %v6092_v17, %v6783_v52 }
 0x44c   : > { %v2256_v17 = vadd.f32 %v6066_v50, %v6784_v62  ;;  %v6788_v18 = vld [vmem:[#allocation21_spill] sm:$0xff]  ;;  %v6791_v11 = vld [vmem:[#allocation8_spill] sm:$0xff] }
 0x44d   : > { %v2547_v14 = vpop.f32.mrf.mxu1  ;;  %v2597_v47 = vmax.f32 %v2528_v21, 0.0  ;;  %v2594_v50 = vmax.f32 %v6788_v18, 0.0  ;;  %v4157_v21 = vld [vmem:[%s6656_s3 + $0x208] sm:$0xf0] }
 0x44e   : > { %3065 = vmatmul.bf16.gmra.mxu2 %v4196_v59  ;;  %v2548_v40 = vadd.f32 %v2547_v14, %v2459_v61  ;;  %v2280_v59 = vpop.f32.mrf.mxu2  ;;  %v2603_v14 = vmax.f32 %v2536_v5, 0.0 }
 0x44f   : > { %v2281_v61 = vadd.f32 %v2280_v59, %v6778_v23  ;;  %v2608_v23 = vmax.f32 %v2365_v28, 0.0  ;;  %v6786_v59 = vld [vmem:[#allocation20_spill] sm:$0xff] }
 0x450   : > { %v2367_v29 = vpop.f32.mrf.mxu3  ;;  %v2613_v44 = vmax.f32 %v2548_v40, 0.0  ;;  %v2707_v20 = vpack.c.bf16 %v2605_v2, %v2603_v14  ;;  %v2424_v41 = vadd.f32 %v6786_v59, %v1962_v0  ;;  %v2587_v2 = vmax.f32 %v6049_v32, 0.0  ;;  %v6790_v14 = vld [vmem:[#allocation4_spill] sm:$0xff]  ;;  %v4389_v59 = vld [vmem:[%s6656_s3 + $0x2b4] sm:$0xf0] }
 0x451   : > { %v2368_v35 = vadd.f32 %v2367_v29, %v2279_v60  ;;  %v2595_v29 = vmax.f32 %v6095_v16, 0.0  ;;  %v2591_v16 = vmax.f32 %v6073_v55, 0.0 }
 0x452   : > { %v2711_v54 = vpack.c.bf16 %v2613_v44, %v2611_v4  ;;  %v2602_v4 = vmax.f32 %v2358_v36, 0.0  ;;  %v2513_v33 = vadd.f32 %v6036_v56, %v2424_v41  ;;  %v2699_v56 = vpack.c.bf16 %v2589_v3, %v2587_v2  ;;  %v4372_v41 = vld [vmem:[%s6656_s3 + $0x234] sm:$0xf]  ;;  %v4391_v2 = vld [vmem:[%s6656_s3 + $0x2c4] sm:$0xf0] }
 0x453   : > { %3248 = vmatmul.bf16.gmra.mxu0 %v4204_v51  ;;  %v2610_v63 = vmax.f32 %v2368_v35, 0.0  ;;  %v2703_v44 = vpack.c.bf16 %v2597_v47, %v2595_v29  ;;  %v6787_v35 = vld [vmem:[#allocation5_spill] sm:$0xff] }
 0x454   : > { %3299 = vmatpush.bf16.msrb.mxu1 %v2711_v54  ;;  %v2271_v54 = vadd.f32 %v6134_v10, %v6780_v53  ;;  %v4381_v10 = vld [vmem:[%s6656_s3 + $0x274] sm:$0xf0]  ;;  %v2355_v53 = vadd.f32 %v6132_v19, %v2266_v26  ;;  %v2350_v19 = vadd.f32 %v6117_v58, %v2261_v27  ;;  %v2585_v52 = vmax.f32 %v2513_v33, 0.0  ;;  %v4173_v27 = vld [vmem:[%s6656_s3 + $0x228] sm:$0xf0] }
 0x455   : > { %v4212_v40 = vor.u32 %v4381_v10, %v4211_v38 }
 0x456   : > { %v2360_v43 = vadd.f32 %v6144_v12, %v2271_v54  ;;  %v2606_v12 = vmax.f32 %v2363_v1, 0.0  ;;  %v2600_v60 = vmax.f32 %v2355_v53, 0.0  ;;  %v2596_v55 = vmax.f32 %v2350_v19, 0.0  ;;  %v4366_v54 = vld [vmem:[%s6656_s3 + $0x204] sm:$0xf] }
 0x457   : > { %v2246_v1 = vadd.f32 %v6791_v11, %v1962_v0  ;;  %v4160_v15 = vor.u32 %v4366_v54, %v4157_v21  ;;  %v4235_v53 = vld [vmem:[%s6656_s3 + $0x2a0] sm:$0xf]  ;;  %v4376_v54 = vld [vmem:[%s6656_s3 + $0x254] sm:$0xf]  ;;  %v4197_v21 = vld [vmem:[%s6656_s3 + $0x258] sm:$0xf0] }
 0x458   : > { %v2369_v25 = vpop.f32.mrf.mxu3  ;;  %3300 = vmatpush.bf16.msrb.mxu1 %v2709_v30  ;;  %v2604_v57 = vmax.f32 %v2360_v43, 0.0  ;;  %v2708_v45 = vpack.c.bf16 %v2608_v23, %v2606_v12  ;;  %v2704_v58 = vpack.c.bf16 %v2600_v60, %v2598_v42  ;;  %v2251_v30 = vadd.f32 %v6787_v35, %v6785_v6  ;;  %v4227_v12 = vld [vmem:[%s6656_s3 + $0x290] sm:$0xf]  ;;  %v4368_v6 = vld [vmem:[%s6656_s3 + $0x214] sm:$0xf]  ;;  %v6294_v35 = vpop.permute.xlu0 %2784 }
 0x459   : > { %v2370_v13 = vadd.f32 %v2369_v25, %v2281_v61  ;;  %v2345_v61 = vadd.f32 %v6097_v8, %v2256_v17  ;;  %v6789_v25 = vld [vmem:[#allocation7_spill] sm:$0xff]  ;;  %v2702_v28 = vpack.c.bf16 %v2596_v55, %v2594_v50  ;;  %v2335_v49 = vadd.f32 %v6793_v31, %v2246_v1 }
 0x45a   : > { %v2706_v5 = vpack.c.bf16 %v2604_v57, %v2602_v4  ;;  %v2583_v24 = vmax.f32 %v6789_v25, 0.0  ;;  %v4219_v8 = vld [vmem:[%s6656_s3 + $0x280] sm:$0xf]  ;;  %v2340_v32 = vadd.f32 %v6790_v14, %v2251_v30  ;;  %v4168_v29 = vor.u32 %v4368_v6, %v4165_v9  ;;  %v4387_v57 = vld [vmem:[%s6656_s3 + $0x2a4] sm:$0xf0] }
 0x45b   : > { %v2612_v48 = vmax.f32 %v2370_v13, 0.0  ;;  %v2592_v7 = vmax.f32 %v2345_v61, 0.0  ;;  %v4383_v13 = vld [vmem:[%s6656_s3 + $0x284] sm:$0xf0]  ;;  %v2584_v10 = vmax.f32 %v2335_v49, 0.0  ;;  %v4236_v0 = vor.u32 %v4387_v57, %v4235_v53 }
 0x45c   : > { %3301 = vmatpush.bf16.msrb.mxu1 %v2707_v20  ;;  %v2697_v20 = vpack.c.bf16 %v2585_v52, %v2583_v24  ;;  %v4220_v62 = vor.u32 %v4383_v13, %v4219_v8  ;;  %v2588_v43 = vmax.f32 %v2340_v32, 0.0  ;;  %v4243_v4 = vld [vmem:[%s6656_s3 + $0x2b0] sm:$0xf]  ;;  %v4251_v61 = vld [vmem:[%s6656_s3 + $0x2c0] sm:$0xf]  ;;  %v4200_v1 = vor.u32 %v4376_v54, %v4197_v21 }
 0x45d   : > { %v2710_v39 = vpack.c.bf16 %v2612_v48, %v2610_v63  ;;  %v6792_v63 = vld [vmem:[#allocation10_spill] sm:$0xff]  ;;  %v4374_v55 = vld [vmem:[%s6656_s3 + $0x244] sm:$0xf]  ;;  %v4252_v30 = vor.u32 %v4391_v2, %v4251_v61  ;;  %v4259_v32 = vld [vmem:[%s6656_s3 + $0x2d0] sm:$0xf] }
 0x45e   : > { %3070 = vmatmul.bf16.gmra.mxu2 %v4204_v51  ;;  %v2593_v51 = vmax.f32 %v2523_v37, 0.0  ;;  %v2590_v48 = vmax.f32 %v6792_v63, 0.0  ;;  %v6795_v37 = vld [vmem:[#allocation19_spill] sm:$0xff]  ;;  %v4393_v13 = vld [vmem:[%s6656_s3 + $0x2d4] sm:$0xf0] }
 0x45f   : > { %3121 = vmatpush.bf16.msrb.mxu3 %v2710_v39  ;;  %v6794_v39 = vld [vmem:[#allocation9_spill] sm:$0xff]  ;;  %v2582_v47 = vmax.f32 %v6795_v37, 0.0  ;;  %v4260_v11 = vor.u32 %v4393_v13, %v4259_v32  ;;  %v4267_v31 = vld [vmem:[%s6656_s3 + $0x2e0] sm:$0xf]  ;;  %v4382_v61 = vld [vmem:[%s6656_s3 + $0x284] sm:$0xf] }
 0x460   : > { %3302 = vmatpush.bf16.msrb.mxu1 %v2705_v22  ;;  %v2701_v46 = vpack.c.bf16 %v2593_v51, %v2591_v16  ;;  %v2700_v23 = vpack.c.bf16 %v2592_v7, %v2590_v48  ;;  %v2586_v38 = vmax.f32 %v6794_v39, 0.0  ;;  %v4385_v22 = vld [vmem:[%s6656_s3 + $0x294] sm:$0xf0]  ;;  %v6254_v51 = vpop.permute.xlu1 %2789  ;;  %v4181_v16 = vld [vmem:[%s6656_s3 + $0x238] sm:$0xf0]  ;;  %v6304_v24 = vpop.permute.xlu0 %2869 }
 0x461   : > { %v2696_v36 = vpack.c.bf16 %v2584_v10, %v2582_v47  ;;  %v4184_v17 = vor.u32 %v4372_v41, %v4181_v16  ;;  %6799 = vst [vmem:[#allocation18_spill] sm:$0xff] %v6304_v24  ;;  %v4205_v39 = vld [vmem:[%s6656_s3 + $0x268] sm:$0xf0]  ;;  %v4397_v53 = vld [vmem:[%s6656_s3 + $0x2f4] sm:$0xf0] }
 0x462   : > { %v2698_v26 = vpack.c.bf16 %v2588_v43, %v2586_v38  ;;  %v4395_v43 = vld [vmem:[%s6656_s3 + $0x2e4] sm:$0xf0]  ;;  %v4380_v57 = vld [vmem:[%s6656_s3 + $0x274] sm:$0xf]  ;;  %v4221_v2 = vld [vmem:[%s6656_s3 + $0x288] sm:$0xf0] }
 0x463   : > { %3122 = vmatpush.bf16.msrb.mxu3 %v2708_v45  ;;  %3253 = vmatmul.bf16.gmra.mxu0 %v4212_v40  ;;  %v4370_v45 = vld [vmem:[%s6656_s3 + $0x224] sm:$0xf]  ;;  %v4268_v37 = vor.u32 %v4395_v43, %v4267_v31 }
 0x464   : > { %3303 = vmatpush.bf16.msrb.mxu1 %v2703_v44  ;;  %v4176_v34 = vor.u32 %v4370_v45, %v4173_v27  ;;  %v6259_v44 = vpop.permute.xlu2 %2864  ;;  %v4213_v45 = vld [vmem:[%s6656_s3 + $0x278] sm:$0xf0] }
 0x465   : > { %6796 = vst [vmem:[#allocation15_spill] sm:$0xff] %v6259_v44 }
 0x467   : > { %3123 = vmatpush.bf16.msrb.mxu3 %v2706_v5  ;;  %v4244_v5 = vor.u32 %v4389_v59, %v4243_v4 }
 0x468   : > { %3304 = vmatpush.bf16.msrb.mxu1 %v2701_v46  ;;  %v6272_v60 = vpop.permute.xlu1 %2774  ;;  %v6326_v63 = vpop.permute.xlu0 %2854 }
 0x469   : > { %6801 = vst [vmem:[#allocation12_spill] sm:$0xff] %v6326_v63 }
 0x46b   : > { %3124 = vmatpush.bf16.msrb.mxu3 %v2704_v58  ;;  %v4189_v58 = vld [vmem:[%s6656_s3 + $0x248] sm:$0xf0] }
 0x46c   : > { %3305 = vmatpush.bf16.msrb.mxu1 %v2699_v56  ;;  %v6274_v33 = vpop.permute.xlu2 %2779  ;;  %v4192_v52 = vor.u32 %v4374_v55, %v4189_v58 }
 0x46e   : > { %3075 = vmatmul.bf16.gmra.mxu2 %v4212_v40  ;;  %v4228_v40 = vor.u32 %v4385_v22, %v4227_v12 }
 0x46f   : > { %3125 = vmatpush.bf16.msrb.mxu3 %v2702_v28 }
 0x470   : > { %3306 = vmatpush.bf16.msrb.mxu1 %v2697_v20  ;;  %v6270_v19 = vpop.f32.mrf.mxu0  ;;  %v6280_v46 = vpop.permute.xlu1 %2859 }
 0x471   : > { %6797 = vst [vmem:[#allocation16_spill] sm:$0xff] %v6280_v46  ;;  %v6339_v49 = vpop.permute.xlu0 %2769 }
 0x473   : > { %3126 = vmatpush.bf16.msrb.mxu3 %v2700_v23  ;;  %3258 = vmatmul.bf16.gmra.mxu0 %v4220_v62  ;;  %v4378_v23 = vld [vmem:[%s6656_s3 + $0x264] sm:$0xf] }
 0x474   : > { %3307 = vmatmul.bf16.vlgmr.msrb.gmra.mxu1 %v4160_v15  ;;  %v6296_v18 = vpop.permute.xlu2 %2764  ;;  %v4208_v47 = vor.u32 %v4378_v23, %v4205_v39  ;;  %v4384_v39 = vld [vmem:[%s6656_s3 + $0x294] sm:$0xf] }
 0x477   : > { %3127 = vmatpush.bf16.msrb.mxu3 %v2698_v26 }
 0x478   : > { %v6276_v3 = vpop.f32.mrf.mxu0  ;;  %v6302_v25 = vpop.permute.xlu1 %2844 }
 0x479   : > { %6798 = vst [vmem:[#allocation11_spill] sm:$0xff] %v6302_v25  ;;  %v6358_v12 = vpop.permute.xlu0 %2754 }
 0x47b   : > { %3128 = vmatpush.bf16.msrb.mxu3 %v2696_v36 }
 0x47c   : > { %v6306_v7 = vpop.permute.xlu2 %2849 }
 0x47d   : > { %6800 = vst [vmem:[#allocation17_spill] sm:$0xff] %v6306_v7 }
 0x47e   : > { %3080 = vmatmul.bf16.gmra.mxu2 %v4220_v62  ;;  %3129 = vmatmul.bf16.vlgmr.msrb.gmra.mxu3 %v4160_v15 }
 0x480   : > { %v6298_v50 = vpop.f32.mrf.mxu0  ;;  %v6315_v28 = vpop.permute.xlu1 %2759 }
 0x481   : > { %v6278_v42 = vpop.f32.mrf.mxu2 }
 0x483   : > { %3263 = vmatmul.bf16.gmra.mxu0 %v4228_v40 }
 0x484   : > { %3312 = vmatmul.bf16.gmra.mxu1 %v4168_v29  ;;  %v6328_v48 = vpop.permute.xlu2 %2834 }
 0x485   : > { %6802 = vst [vmem:[#allocation13_spill] sm:$0xff] %v6328_v48 }
 0x488   : > { %v6308_v8 = vpop.f32.mrf.mxu0  ;;  %v6334_v15 = vpop.permute.xlu1 %2744 }
 0x489   : > { %v6300_v56 = vpop.f32.mrf.mxu2 }
 0x48c   : > { %v6350_v38 = vpop.permute.xlu2 %2749 }
 0x48e   : > { %3085 = vmatmul.bf16.gmra.mxu2 %v4228_v40  ;;  %3134 = vmatmul.bf16.gmra.mxu3 %v4168_v29  ;;  %v4275_v29 = vld [vmem:[%s6656_s3 + $0x2f0] sm:$0xf] }
 0x48f   : > { %v4276_v27 = vor.u32 %v4397_v53, %v4275_v29 }
 0x490   : > { %v6330_v20 = vpop.f32.mrf.mxu0  ;;  %v6356_v36 = vpop.permute.xlu1 %2829 }
 0x491   : > { %v6310_v14 = vpop.f32.mrf.mxu2  ;;  %6803 = vst [vmem:[#allocation14_spill] sm:$0xff] %v6356_v36 }
 0x493   : > { %3268 = vmatmul.bf16.gmra.mxu0 %v4236_v0 }
 0x494   : > { %3317 = vmatmul.bf16.gmra.mxu1 %v4176_v34  ;;  %v6360_v22 = vpop.permute.xlu2 %2734 }
 0x498   : > { %v6352_v10 = vpop.f32.mrf.mxu0  ;;  %v6366_v40 = vpop.permute.xlu1 %2814 }
 0x499   : > { %v6332_v62 = vpop.f32.mrf.mxu2 }
 0x49c   : > { %v6382_v4 = vpop.permute.xlu2 %2819 }
 0x49e   : > { %3090 = vmatmul.bf16.gmra.mxu2 %v4236_v0  ;;  %3139 = vmatmul.bf16.gmra.mxu3 %v4176_v34  ;;  %v4216_v0 = vor.u32 %v4380_v57, %v4213_v45  ;;  %v6380_v34 = vpop.permute.xlu0 %2839 }
 0x49f   : > { %6804 = vst [vmem:[#allocation6_spill] sm:$0xff] %v6380_v34 }
 0x4a0   : > { %v6362_v6 = vpop.f32.mrf.mxu0  ;;  %v2730_v16 = vpop.permute.xlu1 %2729 }
 0x4a1   : > { %v6354_v26 = vpop.f32.mrf.mxu2 }
 0x4a3   : > { %3273 = vmatmul.bf16.gmra.mxu0 %v4244_v5 }
 0x4a4   : > { %3322 = vmatmul.bf16.gmra.mxu1 %v4184_v17 }
 0x4a8   : > { %v6384_v59 = vpop.f32.mrf.mxu0  ;;  %v2715_v58 = vpop.permute.xlu1 %2714 }
 0x4a9   : > { %v6364_v9 = vpop.f32.mrf.mxu2 }
 0x4ae   : > { %3095 = vmatmul.bf16.gmra.mxu2 %v4244_v5  ;;  %3144 = vmatmul.bf16.gmra.mxu3 %v4184_v17  ;;  %v6388_v5 = vpop.permute.xlu0 %2824  ;;  %v6390_v17 = vpop.permute.xlu2 %2804 }
 0x4b1   : > { %v6386_v41 = vpop.f32.mrf.mxu2 }
 0x4b3   : > { %3278 = vmatmul.bf16.gmra.mxu0 %v4252_v30 }
 0x4b4   : > { %3327 = vmatmul.bf16.gmra.mxu1 %v4192_v52 }
 0x4b6   : > { %v6401_v54 = vpop.permute.xlu0 %2739  ;;  %v2720_v21 = vpop.permute.xlu2 %2719 }
 0x4b9   : > { %v6398_v55 = vpop.f32.mrf.mxu2 }
 0x4be   : > { %3100 = vmatmul.bf16.gmra.mxu2 %v4252_v30  ;;  %3149 = vmatmul.bf16.gmra.mxu3 %v4192_v52  ;;  %v3220_v30 = vadd.f32 %v6270_v19, %v2715_v58  ;;  %v4224_v52 = vor.u32 %v4382_v61, %v4221_v2  ;;  %v4229_v19 = vld [vmem:[%s6656_s3 + $0x298] sm:$0xf0]  ;;  %v3227_v61 = vadd.f32 %v6308_v8, %v2730_v16 }
 0x4bf   : > { %v4232_v53 = vor.u32 %v4384_v39, %v4229_v19  ;;  %v3044_v2 = vadd.f32 %v6300_v56, %v2720_v21 }
 0x4c3   : > { %3283 = vmatmul.bf16.gmra.mxu0 %v4260_v11 }
 0x4c4   : > { %3332 = vmatmul.bf16.gmra.mxu1 %v4200_v1 }
 0x4ce   : > { %3105 = vmatmul.bf16.gmra.mxu2 %v4260_v11  ;;  %3154 = vmatmul.bf16.gmra.mxu3 %v4200_v1  ;;  %v3222_v11 = vadd.f32 %v6276_v3, %v2720_v21  ;;  %v3042_v3 = vadd.f32 %v6278_v42, %v2715_v58  ;;  %v4386_v42 = vld [vmem:[%s6656_s3 + $0x2a4] sm:$0xf]  ;;  %v4237_v58 = vld [vmem:[%s6656_s3 + $0x2a8] sm:$0xf0]  ;;  %v3230_v21 = vadd.f32 %v6330_v20, %v6360_v22 }
 0x4cf   : > { %v4240_v39 = vor.u32 %v4386_v42, %v4237_v58 }
 0x4d3   : > { %3288 = vmatmul.bf16.gmra.mxu0 %v4268_v37 }
 0x4d4   : > { %3337 = vmatmul.bf16.gmra.mxu1 %v4208_v47 }
 0x4de   : > { %3110 = vmatmul.bf16.gmra.mxu2 %v4268_v37  ;;  %3159 = vmatmul.bf16.gmra.mxu3 %v4208_v47  ;;  %v2725_v47 = vpop.permute.xlu0 %2724 }
 0x4df   : > { %v3225_v29 = vadd.f32 %v6298_v50, %v2725_v47  ;;  %v3047_v19 = vadd.f32 %v6310_v14, %v2725_v47 }
 0x4e3   : > { %3293 = vmatmul.bf16.gmra.mxu0 %v4276_v27 }
 0x4e4   : > { %3342 = vmatmul.bf16.gmra.mxu1 %v4216_v0 }
 0x4ee   : > { %3115 = vmatmul.bf16.gmra.mxu2 %v4276_v27  ;;  %3164 = vmatmul.bf16.gmra.mxu3 %v4216_v0 }
 0x4f1   : > { %v3308_v32 = vpop.f32.mrf.mxu1 }
 0x4f2   : > { %v3309_v13 = vadd.f32 %v3308_v32, %v3220_v30 }
 0x4f4   : > { %3347 = vmatmul.bf16.gmra.mxu1 %v4224_v52  ;;  %v3389_v43 = vmax.f32 %v3309_v13, 0.0 }
 0x4f9   : > { %v3310_v1 = vpop.f32.mrf.mxu1 }
 0x4fa   : > { %v3311_v31 = vadd.f32 %v3310_v1, %v3222_v11 }
 0x4fc   : > { %v3391_v23 = vmax.f32 %v3311_v31, 0.0  ;;  %v3239_v31 = vpop.f32.mrf.mxu0 }
 0x4fe   : > { %3169 = vmatmul.bf16.gmra.mxu3 %v4224_v52  ;;  %v6410_v37 = vpack.c.bf16 %v3391_v23, %v3389_v43  ;;  %v6428_v23 = vpop.f32.mrf.mxu2 }
 0x500   : > { %6805 = vst [vmem:[#allocation20_spill] sm:$0xff] %v6410_v37 }
 0x501   : > { %v3313_v57 = vpop.f32.mrf.mxu1  ;;  %v3130_v27 = vpop.f32.mrf.mxu3 }
 0x502   : > { %v3314_v45 = vadd.f32 %v3313_v57, %v3225_v29  ;;  %v3131_v0 = vadd.f32 %v3130_v27, %v3042_v3 }
 0x504   : > { %3352 = vmatmul.bf16.gmra.mxu1 %v4232_v53  ;;  %v3393_v11 = vmax.f32 %v3314_v45, 0.0  ;;  %v3388_v50 = vmax.f32 %v3131_v0, 0.0  ;;  %v6431_v27 = vpop.f32.mrf.mxu0  ;;  %v3049_v0 = vadd.f32 %v6332_v62, %v2730_v16 }
 0x509   : > { %v3315_v30 = vpop.f32.mrf.mxu1  ;;  %v3132_v52 = vpop.f32.mrf.mxu3 }
 0x50a   : > { %v3316_v32 = vadd.f32 %v3315_v30, %v3227_v61  ;;  %v3133_v13 = vadd.f32 %v3132_v52, %v3044_v2  ;;  %v6436_v2 = vpop.f32.mrf.mxu2 }
 0x50c   : > { %v3395_v1 = vmax.f32 %v3316_v32, 0.0  ;;  %v3390_v43 = vmax.f32 %v3133_v13, 0.0  ;;  %v6452_v42 = vpop.f32.mrf.mxu0 }
 0x50e   : > { %3174 = vmatmul.bf16.gmra.mxu3 %v4232_v53  ;;  %v6422_v8 = vpack.c.bf16 %v3395_v1, %v3393_v11  ;;  %v6424_v56 = vpack.c.bf16 %v3390_v43, %v3388_v50  ;;  %v3232_v53 = vadd.f32 %v6352_v10, %v6401_v54  ;;  %v4388_v11 = vld [vmem:[%s6656_s3 + $0x2b4] sm:$0xf]  ;;  %v4245_v10 = vld [vmem:[%s6656_s3 + $0x2b8] sm:$0xf0]  ;;  %v3235_v1 = vadd.f32 %v6362_v6, %v6334_v15 }
 0x50f   : > { %v4248_v50 = vor.u32 %v4388_v11, %v4245_v10  ;;  %v3052_v43 = vadd.f32 %v6354_v26, %v6360_v22 }
 0x510   : > { %6806 = vst [vmem:[#allocation5_spill] sm:$0xff] %v6422_v8 }
 0x511   : > { %v3318_v29 = vpop.f32.mrf.mxu1  ;;  %v3135_v57 = vpop.f32.mrf.mxu3 }
 0x512   : > { %v3319_v3 = vadd.f32 %v3318_v29, %v3230_v21  ;;  %v3136_v45 = vadd.f32 %v3135_v57, %v3047_v19  ;;  %v3054_v57 = vadd.f32 %v6364_v9, %v6401_v54 }
 0x514   : > { %3357 = vmatmul.bf16.gmra.mxu1 %v4240_v39  ;;  %v3397_v52 = vmax.f32 %v3319_v3, 0.0  ;;  %v3392_v47 = vmax.f32 %v3136_v45, 0.0  ;;  %v6454_v3 = vpop.f32.mrf.mxu2 }
 0x519   : > { %v3320_v61 = vpop.f32.mrf.mxu1  ;;  %v3137_v30 = vpop.f32.mrf.mxu3 }
 0x51a   : > { %v3321_v20 = vadd.f32 %v3320_v61, %v3232_v53  ;;  %v3138_v32 = vadd.f32 %v3137_v30, %v3049_v0  ;;  %v6460_v0 = vpop.f32.mrf.mxu0 }
 0x51c   : > { %v3399_v14 = vmax.f32 %v3321_v20, 0.0  ;;  %v3394_v13 = vmax.f32 %v3138_v32, 0.0  ;;  %v4390_v32 = vld [vmem:[%s6656_s3 + $0x2c4] sm:$0xf] }
 0x51e   : > { %3179 = vmatmul.bf16.gmra.mxu3 %v4240_v39  ;;  %v6444_v62 = vpack.c.bf16 %v3399_v14, %v3397_v52  ;;  %v6446_v16 = vpack.c.bf16 %v3394_v13, %v3392_v47  ;;  %v3237_v39 = vadd.f32 %v6384_v59, %v6350_v38  ;;  %v4253_v59 = vld [vmem:[%s6656_s3 + $0x2c8] sm:$0xf0]  ;;  %v6468_v52 = vpop.f32.mrf.mxu2  ;;  %v3240_v14 = vadd.f32 %v3239_v31, %v6358_v12 }
 0x51f   : > { %v4256_v47 = vor.u32 %v4390_v32, %v4253_v59  ;;  %v3057_v13 = vadd.f32 %v6386_v41, %v6334_v15  ;;  %v4392_v15 = vld [vmem:[%s6656_s3 + $0x2d4] sm:$0xf]  ;;  %v4261_v41 = vld [vmem:[%s6656_s3 + $0x2d8] sm:$0xf0] }
 0x520   : > { %6807 = vst [vmem:[#allocation21_spill] sm:$0xff] %v6444_v62 }
 0x521   : > { %v3323_v58 = vpop.f32.mrf.mxu1  ;;  %v3140_v19 = vpop.f32.mrf.mxu3 }
 0x522   : > { %v3324_v21 = vadd.f32 %v3323_v58, %v3235_v1  ;;  %v3141_v29 = vadd.f32 %v3140_v19, %v3052_v43  ;;  %v3249_v58 = vpop.f32.mrf.mxu0 }
 0x524   : > { %3362 = vmatmul.bf16.gmra.mxu1 %v4248_v50  ;;  %v3401_v22 = vmax.f32 %v3324_v21, 0.0  ;;  %v3396_v20 = vmax.f32 %v3141_v29, 0.0 }
 0x526   : > { %v6479_v21 = vpop.f32.mrf.mxu2 }
 0x529   : > { %v3325_v6 = vpop.f32.mrf.mxu1  ;;  %v3142_v53 = vpop.f32.mrf.mxu3 }
 0x52a   : > { %v3326_v45 = vadd.f32 %v3325_v6, %v3237_v39  ;;  %v3143_v26 = vadd.f32 %v3142_v53, %v3054_v57  ;;  %v3251_v6 = vpop.f32.mrf.mxu0  ;;  %v4264_v53 = vor.u32 %v4392_v15, %v4261_v41 }
 0x52c   : > { %v3403_v61 = vmax.f32 %v3326_v45, 0.0  ;;  %v3398_v30 = vmax.f32 %v3143_v26, 0.0 }
 0x52e   : > { %3184 = vmatmul.bf16.gmra.mxu3 %v4248_v50  ;;  %v6470_v9 = vpack.c.bf16 %v3403_v61, %v3401_v22  ;;  %v6472_v54 = vpack.c.bf16 %v3398_v30, %v3396_v20  ;;  %v3059_v50 = vadd.f32 %v6398_v55, %v6350_v38  ;;  %v3062_v38 = vadd.f32 %v6428_v23, %v6358_v12  ;;  %v3073_v26 = vpop.f32.mrf.mxu2  ;;  %v4269_v12 = vld [vmem:[%s6656_s3 + $0x2e8] sm:$0xf0] }
 0x52f   : > { %v3074_v46 = vadd.f32 %v3073_v26, %v6274_v33 }
 0x530   : > { %6808 = vst [vmem:[#allocation7_spill] sm:$0xff] %v6470_v9 }
 0x531   : > { %v3328_v11 = vpop.f32.mrf.mxu1  ;;  %v3145_v1 = vpop.f32.mrf.mxu3 }
 0x532   : > { %v6477_v10 = vadd.f32 %v3328_v11, %v3240_v14  ;;  %v3146_v43 = vadd.f32 %v3145_v1, %v3057_v13  ;;  %v6499_v20 = vpop.f32.mrf.mxu0  ;;  %v4394_v14 = vld [vmem:[%s6656_s3 + $0x2e4] sm:$0xf]  ;;  %v3250_v1 = vadd.f32 %v3249_v58, %v6272_v60 }
 0x533   : > { %v4272_v23 = vor.u32 %v4394_v14, %v4269_v12 }
 0x534   : > { %6809 = vst [vmem:[#allocation4_spill] sm:$0xff] %v6477_v10  ;;  %3367 = vmatmul.bf16.gmra.mxu1 %v4256_v47  ;;  %v3400_v39 = vmax.f32 %v3146_v43, 0.0 }
 0x536   : > { %v3076_v59 = vpop.f32.mrf.mxu2 }
 0x539   : > { %v6483_v19 = vpop.f32.mrf.mxu1  ;;  %v3147_v29 = vpop.f32.mrf.mxu3 }
 0x53a   : > { %v3148_v31 = vadd.f32 %v3147_v29, %v3059_v50  ;;  %v6513_v11 = vpop.f32.mrf.mxu0  ;;  %v3252_v50 = vadd.f32 %v3251_v6, %v6274_v33 }
 0x53c   : > { %v3402_v57 = vmax.f32 %v3148_v31, 0.0 }
 0x53e   : > { %3189 = vmatmul.bf16.gmra.mxu3 %v4256_v47  ;;  %v6491_v45 = vpack.c.bf16 %v3402_v57, %v3400_v39  ;;  %v3078_v43 = vpop.f32.mrf.mxu2 }
 0x53f   : > { %v3079_v44 = vadd.f32 %v3078_v43, %v6254_v51 }
 0x541   : > { %v6495_v55 = vpop.f32.mrf.mxu1  ;;  %v3150_v22 = vpop.f32.mrf.mxu3 }
 0x542   : > { %v6497_v61 = vadd.f32 %v3150_v22, %v3062_v38  ;;  %v3259_v38 = vpop.f32.mrf.mxu0  ;;  %v4277_v22 = vld [vmem:[%s6656_s3 + $0x2f8] sm:$0xf0] }
 0x544   : > { %3372 = vmatmul.bf16.gmra.mxu1 %v4264_v53 }
 0x546   : > { %v3081_v58 = vpop.f32.mrf.mxu2 }
 0x549   : > { %v6501_v30 = vpop.f32.mrf.mxu1  ;;  %v6503_v32 = vpop.f32.mrf.mxu3 }
 0x54e   : > { %3194 = vmatmul.bf16.gmra.mxu3 %v4264_v53  ;;  %v4396_v53 = vld [vmem:[%s6656_s3 + $0x2f4] sm:$0xf] }
 0x54f   : > { %v4280_v6 = vor.u32 %v4396_v53, %v4277_v22  ;;  %v2800_v53 = vpop.permute.xlu1 %2799  ;;  %v3077_v22 = vadd.f32 %v3076_v59, %v6294_v35  ;;  %v3069_v59 = vadd.f32 %v6468_v52, %v6339_v49 }
 0x551   : > { %v3338_v47 = vpop.f32.mrf.mxu1  ;;  %v6511_v13 = vpop.f32.mrf.mxu3 }
 0x552   : > { %v3339_v29 = vadd.f32 %v3338_v47, %v3250_v1  ;;  %v6527_v1 = vpop.permute.xlu0 %2809 }
 0x554   : > { %3377 = vmatmul.bf16.gmra.mxu1 %v4272_v23  ;;  %v3413_v15 = vmax.f32 %v3339_v29, 0.0 }
 0x559   : > { %v3340_v31 = vpop.f32.mrf.mxu1  ;;  %v3157_v57 = vpop.f32.mrf.mxu3 }
 0x55a   : > { %v3341_v39 = vadd.f32 %v3340_v31, %v3252_v50  ;;  %v3261_v50 = vpop.f32.mrf.mxu0  ;;  %v3083_v31 = vpop.f32.mrf.mxu2 }
 0x55b   : > { %v2795_v34 = vpop.permute.xlu0 %2794  ;;  %v3262_v24 = vadd.f32 %v3261_v50, %v2800_v53 }
 0x55c   : > { %v3415_v41 = vmax.f32 %v3341_v39, 0.0  ;;  %v3260_v25 = vadd.f32 %v3259_v38, %v2795_v34  ;;  %v3072_v38 = vadd.f32 %v6479_v21, %v6272_v60 }
 0x55e   : > { %v6523_v14 = vpack.c.bf16 %v3415_v41, %v3413_v15  ;;  %3199 = vmatmul.bf16.gmra.mxu3 %v4272_v23 }
 0x561   : > { %v6525_v12 = vpop.f32.mrf.mxu1  ;;  %v3160_v47 = vpop.f32.mrf.mxu3 }
 0x562   : > { %v3264_v7 = vpop.f32.mrf.mxu0  ;;  %v6531_v63 = vpop.f32.mrf.mxu2  ;;  %v3161_v50 = vadd.f32 %v3160_v47, %v3072_v38 }
 0x564   : > { %3382 = vmatmul.bf16.gmra.mxu1 %v4280_v6  ;;  %v3412_v21 = vmax.f32 %v3161_v50, 0.0 }
 0x569   : > { %v6529_v29 = vpop.f32.mrf.mxu1  ;;  %v3162_v39 = vpop.f32.mrf.mxu3 }
 0x56a   : > { %v3266_v48 = vpop.f32.mrf.mxu0  ;;  %v3088_v26 = vpop.f32.mrf.mxu2 }
 0x56e   : > { %3204 = vmatmul.bf16.gmra.mxu3 %v4280_v6 }
 0x571   : > { %v3348_v15 = vpop.f32.mrf.mxu1  ;;  %v3165_v23 = vpop.f32.mrf.mxu3 }
 0x572   : > { %v3349_v41 = vadd.f32 %v3348_v15, %v3260_v25  ;;  %v3166_v37 = vadd.f32 %v3165_v23, %v3077_v22  ;;  %v3163_v25 = vadd.f32 %v3162_v39, %v3074_v46  ;;  %v3265_v46 = vadd.f32 %v3264_v7, %v6390_v17 }
 0x574   : > { %v3421_v9 = vmax.f32 %v3349_v41, 0.0  ;;  %v3416_v10 = vmax.f32 %v3166_v37, 0.0  ;;  %v3414_v23 = vmax.f32 %v3163_v25, 0.0  ;;  %v3269_v41 = vpop.f32.mrf.mxu0 }
 0x579   : > { %v3350_v8 = vpop.f32.mrf.mxu1  ;;  %v3167_v6 = vpop.f32.mrf.mxu3 }
 0x57a   : > { %v3351_v62 = vadd.f32 %v3350_v8, %v3262_v24  ;;  %v3168_v15 = vadd.f32 %v3167_v6, %v3079_v44  ;;  %v3067_v24 = vadd.f32 %v6454_v3, %v6296_v18  ;;  %v3158_v8 = vadd.f32 %v3157_v57, %v3069_v59 }
 0x57b   : > { %v3064_v44 = vadd.f32 %v6436_v2, %v6315_v28  ;;  %v3466_v3 = vpack.c.bf16 %v3414_v23, %v3412_v21  ;;  %v3267_v2 = vadd.f32 %v3266_v48, %v6527_v1  ;;  %v3270_v48 = vadd.f32 %v3269_v41, %v6366_v40 }
 0x57c   : > { %v3423_v36 = vmax.f32 %v3351_v62, 0.0  ;;  %v3418_v33 = vmax.f32 %v3168_v15, 0.0  ;;  %v3082_v62 = vadd.f32 %v3081_v58, %v2795_v34  ;;  %v3156_v52 = vadd.f32 %v6511_v13, %v3067_v24  ;;  %v3091_v34 = vpop.f32.mrf.mxu2  ;;  %v3271_v23 = vpop.f32.mrf.mxu0 }
 0x57d   : > { %v3410_v39 = vmax.f32 %v3158_v8, 0.0  ;;  %v3084_v58 = vadd.f32 %v3083_v31, %v2800_v53  ;;  %v3404_v13 = vmax.f32 %v6497_v61, 0.0  ;;  %v3087_v61 = vadd.f32 %v6531_v63, %v6390_v17  ;;  %v6568_v63 = vld [vmem:[%s6658_s5] sm:$0xff] }
 0x57e   : > { %v6540_v43 = vpack.c.bf16 %v3423_v36, %v3421_v9  ;;  %v3468_v60 = vpack.c.bf16 %v3418_v33, %v3416_v10  ;;  %v3153_v9 = vadd.f32 %v6503_v32, %v3064_v44  ;;  %v3408_v10 = vmax.f32 %v3156_v52, 0.0 }
 0x57f   : > { %v3257_v53 = vadd.f32 %v6513_v11, %v6254_v51  ;;  %v3255_v21 = vadd.f32 %v6499_v20, %v6294_v35  ;;  %v3272_v51 = vadd.f32 %v3271_v23, %v6382_v4  ;;  %v3492_v11 = vunpack.c.l.b16 %v6568_v63 }
 0x580   : > { %3498 = vmatpush.bf16.msra.mxu2 %v3468_v60  ;;  %v3406_v7 = vmax.f32 %v3153_v9, 0.0  ;;  %v3464_v22 = vpack.c.bf16 %v3410_v39, %v3408_v10  ;;  %v3089_v35 = vadd.f32 %v3088_v26, %v6527_v1 }
 0x581   : > { %v3353_v37 = vpop.f32.mrf.mxu1  ;;  %v3170_v36 = vpop.f32.mrf.mxu3  ;;  %v3344_v17 = vadd.f32 %v6525_v12, %v3255_v21  ;;  %v3245_v12 = vadd.f32 %v6452_v42, %v6296_v18 }
 0x582   : > { %v3354_v47 = vadd.f32 %v3353_v37, %v3265_v46  ;;  %v3171_v57 = vadd.f32 %v3170_v36, %v3082_v62  ;;  %v3462_v32 = vpack.c.bf16 %v3406_v7, %v3404_v13  ;;  %v3346_v37 = vadd.f32 %v6529_v29, %v3257_v53 }
 0x583   : > { %v3334_v26 = vadd.f32 %v6495_v55, %v3245_v12 }
 0x584   : > { %3499 = vmatpush.bf16.msra.mxu2 %v3466_v3  ;;  %v3425_v59 = vmax.f32 %v3354_v47, 0.0  ;;  %v3420_v33 = vmax.f32 %v3171_v57, 0.0  ;;  %v3093_v46 = vpop.f32.mrf.mxu2  ;;  %v3247_v47 = vadd.f32 %v6460_v0, %v6339_v49  ;;  %v3274_v20 = vpop.f32.mrf.mxu0  ;;  %v3494_v49 = vpack.c.b16 %v3492_v11, %v3492_v11 }
 0x585   : > { %v3275_v42 = vadd.f32 %v3274_v20, %v6388_v5  ;;  %v6815_v20 = vld [vmem:[#allocation5_spill] sm:$0xff] }
 0x586   : > { %v3336_v39 = vadd.f32 %v6501_v30, %v3247_v47  ;;  %v6814_v47 = vld [vmem:[#allocation21_spill] sm:$0xff] }
 0x588   : > { %3500 = vmatpush.bf16.msra.mxu2 %v3464_v22 }
 0x589   : > { %v3355_v6 = vpop.f32.mrf.mxu1  ;;  %v3172_v25 = vpop.f32.mrf.mxu3 }
 0x58a   : > { %v3356_v38 = vadd.f32 %v3355_v6, %v3267_v2  ;;  %v3173_v15 = vadd.f32 %v3172_v25, %v3084_v58  ;;  %v3411_v2 = vmax.f32 %v3336_v39, 0.0  ;;  %v3092_v58 = vadd.f32 %v3091_v34, %v6366_v40 }
 0x58c   : > { %v3427_v50 = vmax.f32 %v3356_v38, 0.0  ;;  %v3422_v24 = vmax.f32 %v3173_v15, 0.0  ;;  %3501 = vmatpush.bf16.msra.mxu2 %v3462_v32  ;;  %v3096_v57 = vpop.f32.mrf.mxu2  ;;  %v6810_v15 = vld [vmem:[#allocation4_spill] sm:$0xff] }
 0x58d   : > { %v3405_v32 = vmax.f32 %v6810_v15, 0.0 }
 0x58e   : > { %v6551_v8 = vpack.c.bf16 %v3427_v50, %v3425_v59  ;;  %v6553_v60 = vpack.c.bf16 %v3422_v24, %v3420_v33  ;;  %v6811_v50 = vld [vmem:[#allocation14_spill] sm:$0xff]  ;;  %v3094_v24 = vadd.f32 %v3093_v46, %v6382_v4  ;;  %v3097_v4 = vadd.f32 %v3096_v57, %v6388_v5 }
 0x590   : > { %3502 = vmatpush.bf16.msra.mxu2 %v6491_v45  ;;  %v3419_v45 = vmax.f32 %v3346_v37, 0.0  ;;  %v6813_v37 = vld [vmem:[#allocation13_spill] sm:$0xff] }
 0x591   : > { %v3358_v31 = vpop.f32.mrf.mxu1  ;;  %v3175_v62 = vpop.f32.mrf.mxu3 }
 0x592   : > { %v3359_v44 = vadd.f32 %v3358_v31, %v3270_v48  ;;  %v3176_v52 = vadd.f32 %v3175_v62, %v3087_v61 }
 0x594   : > { %3503 = vmatpush.bf16.msra.mxu2 %v6472_v54  ;;  %v3417_v54 = vmax.f32 %v3344_v17, 0.0  ;;  %v3429_v10 = vmax.f32 %v3359_v44, 0.0  ;;  %v3424_v0 = vmax.f32 %v3176_v52, 0.0  ;;  %v3098_v59 = vpop.f32.mrf.mxu2  ;;  %v6812_v52 = vld [vmem:[#allocation7_spill] sm:$0xff] }
 0x596   : > { %v3469_v41 = vpack.c.bf16 %v3419_v45, %v3417_v54 }
 0x598   : > { %3504 = vmatpush.bf16.msra.mxu2 %v6446_v16  ;;  %v3242_v16 = vadd.f32 %v6431_v27, %v6315_v28  ;;  %v3276_v28 = vpop.f32.mrf.mxu0 }
 0x599   : > { %v3360_v29 = vpop.f32.mrf.mxu1  ;;  %v3177_v9 = vpop.f32.mrf.mxu3 }
 0x59a   : > { %v3361_v36 = vadd.f32 %v3360_v29, %v3272_v51  ;;  %v3178_v3 = vadd.f32 %v3177_v9, %v3089_v35  ;;  %v3331_v30 = vadd.f32 %v6483_v19, %v3242_v16  ;;  %v3277_v19 = vadd.f32 %v3276_v28, %v6811_v50  ;;  %v6816_v9 = vld [vmem:[#allocation20_spill] sm:$0xff] }
 0x59b   : > { %v3099_v29 = vadd.f32 %v3098_v59, %v6811_v50  ;;  %v6817_v59 = vld [vmem:[#allocation15_spill] sm:$0xff] }
 0x59c   : > { %v3431_v7 = vmax.f32 %v3361_v36, 0.0  ;;  %v3426_v1 = vmax.f32 %v3178_v3, 0.0  ;;  %3505 = vmatpush.bf16.msra.mxu2 %v6424_v56  ;;  %v3409_v56 = vmax.f32 %v3334_v26, 0.0  ;;  %v3407_v55 = vmax.f32 %v3331_v30, 0.0  ;;  %v3101_v51 = vpop.f32.mrf.mxu2 }
 0x59d   : > { %v3102_v57 = vadd.f32 %v3101_v51, %v6813_v37 }
 0x59e   : > { %v6584_v22 = vpack.c.bf16 %v3431_v7, %v3429_v10  ;;  %v6586_v18 = vpack.c.bf16 %v3426_v1, %v3424_v0  ;;  %v3465_v25 = vpack.c.bf16 %v3411_v2, %v3409_v56  ;;  %v3463_v33 = vpack.c.bf16 %v3407_v55, %v3405_v32 }
 0x59f   : > { %3506 = vmatmul.bf16.vlgmr.msra.gmra.mxu2 %v3494_v49 }
 0x5a0   : > { %3524 = vmatpush.bf16.msrb.mxu2 %v3469_v41  ;;  %v3279_v31 = vpop.f32.mrf.mxu0 }
 0x5a1   : > { %v3363_v13 = vpop.f32.mrf.mxu1  ;;  %v3180_v38 = vpop.f32.mrf.mxu3  ;;  %v3280_v17 = vadd.f32 %v3279_v31, %v6813_v37 }
 0x5a2   : > { %v3364_v6 = vadd.f32 %v3363_v13, %v3275_v42  ;;  %v3181_v27 = vadd.f32 %v3180_v38, %v3092_v58 }
 0x5a4   : > { %3525 = vmatpush.bf16.msrb.mxu2 %v6523_v14  ;;  %v3433_v61 = vmax.f32 %v3364_v6, 0.0  ;;  %v3428_v53 = vmax.f32 %v3181_v27, 0.0  ;;  %v3103_v54 = vpop.f32.mrf.mxu2 }
 0x5a8   : > { %3526 = vmatpush.bf16.msrb.mxu2 %v3465_v25  ;;  %v6609_v26 = vpop.f32.mrf.mxu0 }
 0x5a9   : > { %v3365_v40 = vpop.f32.mrf.mxu1  ;;  %v3182_v23 = vpop.f32.mrf.mxu3 }
 0x5aa   : > { %v3366_v34 = vadd.f32 %v3365_v40, %v3277_v19  ;;  %v3183_v48 = vadd.f32 %v3182_v23, %v3094_v24  ;;  %v6818_v19 = vld [vmem:[#allocation16_spill] sm:$0xff]  ;;  %v6819_v24 = vld [vmem:[#allocation18_spill] sm:$0xff] }
 0x5ac   : > { %3527 = vmatpush.bf16.msrb.mxu2 %v3463_v33  ;;  %v3435_v14 = vmax.f32 %v3366_v34, 0.0  ;;  %v3430_v44 = vmax.f32 %v3183_v48, 0.0  ;;  %v3106_v7 = vpop.f32.mrf.mxu2 }
 0x5ae   : > { %v6595_v62 = vpack.c.bf16 %v3435_v14, %v3433_v61  ;;  %v6598_v21 = vpack.c.bf16 %v3430_v44, %v3428_v53  ;;  %v6820_v61 = vld [vmem:[#allocation12_spill] sm:$0xff]  ;;  %v6821_v44 = vld [vmem:[#allocation17_spill] sm:$0xff] }
 0x5b0   : > { %3528 = vmatpush.bf16.msrb.mxu2 %v6812_v52  ;;  %v6613_v58 = vpop.f32.mrf.mxu0 }
 0x5b1   : > { %v3368_v46 = vpop.f32.mrf.mxu1  ;;  %v3185_v11 = vpop.f32.mrf.mxu3 }
 0x5b2   : > { %v6602_v45 = vadd.f32 %v3368_v46, %v3280_v17  ;;  %v3186_v35 = vadd.f32 %v3185_v11, %v3097_v4  ;;  %v6822_v46 = vld [vmem:[#allocation11_spill] sm:$0xff] }
 0x5b3   : > { %v3107_v11 = vadd.f32 %v3106_v7, %v6822_v46 }
 0x5b4   : > { %3529 = vmatpush.bf16.msrb.mxu2 %v6814_v47  ;;  %v3432_v39 = vmax.f32 %v3186_v35, 0.0  ;;  %v3108_v1 = vpop.f32.mrf.mxu2 }
 0x5b5   : > { %v3109_v52 = vadd.f32 %v3108_v1, %v6821_v44 }
 0x5b8   : > { %3530 = vmatpush.bf16.msrb.mxu2 %v6815_v20  ;;  %v3286_v6 = vpop.f32.mrf.mxu0 }
 0x5b9   : > { %v3187_v36 = vpop.f32.mrf.mxu3  ;;  %v6611_v42 = vpop.f32.mrf.mxu1 }
 0x5ba   : > { %v3188_v12 = vadd.f32 %v3187_v36, %v3099_v29  ;;  %v6823_v29 = vld [vmem:[#allocation6_spill] sm:$0xff] }
 0x5bb   : > { %v3104_v36 = vadd.f32 %v3103_v54, %v6823_v29 }
 0x5bc   : > { %3531 = vmatpush.bf16.msrb.mxu2 %v6816_v9  ;;  %v3434_v3 = vmax.f32 %v3188_v12, 0.0  ;;  %v3111_v30 = vpop.f32.mrf.mxu2 }
 0x5bd   : > { %v3112_v14 = vadd.f32 %v3111_v30, %v6820_v61 }
 0x5be   : > { %v3476_v5 = vpack.c.bf16 %v3434_v3, %v3432_v39 }
 0x5bf   : > { %3532 = vmatmul.bf16.vlgmr.msrb.gmra.mxu2 %v3494_v49 }
 0x5c0   : > { %v3289_v55 = vpop.f32.mrf.mxu0 }
 0x5c1   : > { %v3190_v41 = vpop.f32.mrf.mxu3  ;;  %v6615_v13 = vpop.f32.mrf.mxu1 }
 0x5c2   : > { %v3191_v10 = vadd.f32 %v3190_v41, %v3102_v57 }
 0x5c4   : > { %v3113_v49 = vpop.f32.mrf.mxu2 }
 0x5c5   : > { %v3114_v33 = vadd.f32 %v3113_v49, %v6818_v19 }
 0x5c8   : > { %v3291_v48 = vpop.f32.mrf.mxu0 }
 0x5c9   : > { %v3192_v0 = vpop.f32.mrf.mxu3  ;;  %v3375_v38 = vpop.f32.mrf.mxu1 }
 0x5ca   : > { %v3193_v39 = vadd.f32 %v3192_v0, %v3104_v36 }
 0x5cc   : > { %v3116_v27 = vpop.f32.mrf.mxu2  ;;  %v3438_v1 = vmax.f32 %v3193_v39, 0.0  ;;  %v3580_v39 = vpop.permute.xlu1 %3579 }
 0x5cd   : > { %v3117_v50 = vadd.f32 %v3116_v27, %v6817_v59 }
 0x5d0   : > { %v3294_v41 = vpop.f32.mrf.mxu0 }
 0x5d1   : > { %v3195_v16 = vpop.f32.mrf.mxu3  ;;  %v3378_v15 = vpop.f32.mrf.mxu1 }
 0x5d2   : > { %v3196_v9 = vadd.f32 %v3195_v16, %v3107_v11  ;;  %v3295_v16 = vadd.f32 %v3294_v41, %v6817_v59  ;;  %v3285_v59 = vadd.f32 %v6613_v58, %v6822_v46  ;;  %v3558_v11 = vpop.permute.xlu0 %3557 }
 0x5d4   : > { %v3118_v32 = vpop.f32.mrf.mxu2  ;;  %v3440_v30 = vmax.f32 %v3196_v9, 0.0  ;;  %v4417_v9 = vld [vmem:[%s4503_s21 + $0x8] sm:$0xff] }
 0x5d5   : > { %v3119_v40 = vadd.f32 %v3118_v32, %v6819_v24 }
 0x5d9   : > { %v3197_v2 = vpop.f32.mrf.mxu3  ;;  %v3380_v37 = vpop.f32.mrf.mxu1 }
 0x5da   : > { %v3198_v47 = vadd.f32 %v3197_v2, %v3109_v52  ;;  %v3296_v2 = vpop.f32.mrf.mxu0 }
 0x5db   : > { %v3297_v54 = vadd.f32 %v3296_v2, %v6819_v24 }
 0x5dc   : > { %v3442_v3 = vmax.f32 %v3198_v47, 0.0 }
 0x5de   : > { %v3480_v49 = vpack.c.bf16 %v3442_v3, %v3440_v30  ;;  %v3582_v30 = vperm.slane %v3580_v39, 0 }
 0x5e1   : > { %v3200_v56 = vpop.f32.mrf.mxu3 }
 0x5e2   : > { %v3201_v17 = vadd.f32 %v3200_v56, %v3112_v14  ;;  %v3383_v56 = vpop.f32.mrf.mxu1 }
 0x5e3   : > { %v3384_v32 = vadd.f32 %v3383_v56, %v3295_v16 }
 0x5e4   : > { %v3444_v12 = vmax.f32 %v3201_v17, 0.0  ;;  %v4416_v17 = vld [vmem:[%s4503_s21] sm:$0xff]  ;;  %s3672_s21 = sshll.u32 %s6825_s12, 1 }
 0x5e5   : > { %v3449_v24 = vmax.f32 %v3384_v32, 0.0  ;;  %s332_s10 = scalar_lea.vmem %s6662_s9, %s3672_s21 }
 0x5e9   : > { %v3202_v28 = vpop.f32.mrf.mxu3 }
 0x5ea   : > { %v3203_v31 = vadd.f32 %v3202_v28, %v3114_v33  ;;  %v3436_v28 = vmax.f32 %v3191_v10, 0.0  ;;  %v3385_v27 = vpop.f32.mrf.mxu1 }
 0x5eb   : > { %v3386_v0 = vadd.f32 %v3385_v27, %v3297_v54 }
 0x5ec   : > { %v3446_v35 = vmax.f32 %v3203_v31, 0.0  ;;  %v3478_v7 = vpack.c.bf16 %v3438_v1, %v3436_v28 }
 0x5ed   : > { %v3451_v10 = vmax.f32 %v3386_v0, 0.0 }
 0x5ee   : > { %v3482_v57 = vpack.c.bf16 %v3446_v35, %v3444_v12 }
 0x5ef   : > { %v3485_v14 = vpack.c.bf16 %v3451_v10, %v3449_v24 }
 0x5f1   : > { %v3205_v25 = vpop.f32.mrf.mxu3 }
 0x5f2   : > { %v3206_v34 = vadd.f32 %v3205_v25, %v3117_v50  ;;  %v3292_v25 = vadd.f32 %v3291_v48, %v6818_v19  ;;  %v3290_v50 = vadd.f32 %v3289_v55, %v6820_v61  ;;  %v3282_v55 = vadd.f32 %v6609_v26, %v6823_v29 }
 0x5f4   : > { %v3448_v51 = vmax.f32 %v3206_v34, 0.0  ;;  %v3381_v33 = vadd.f32 %v3380_v37, %v3292_v25  ;;  %v3379_v34 = vadd.f32 %v3378_v15, %v3290_v50 }
 0x5f6   : > { %v3445_v48 = vmax.f32 %v3379_v34, 0.0 }
 0x5f9   : > { %v3207_v23 = vpop.f32.mrf.mxu3 }
 0x5fa   : > { %v3208_v53 = vadd.f32 %v3207_v23, %v3119_v40  ;;  %v3493_v40 = vunpack.c.h.b16 %v6568_v63  ;;  %v3374_v63 = vadd.f32 %v6615_v13, %v3285_v59 }
 0x5fc   : > { %v3450_v4 = vmax.f32 %v3208_v53, 0.0  ;;  %v3495_v19 = vpack.c.b16 %v3493_v40, %v3493_v40  ;;  %v3441_v61 = vmax.f32 %v3374_v63, 0.0  ;;  %v3437_v53 = vmax.f32 %v6602_v45, 0.0 }
 0x5fe   : > { %v3484_v20 = vpack.c.bf16 %v3450_v4, %v3448_v51 }
 0x600   : > { %3511 = vmatpush.bf16.msra.mxu3 %v3484_v20 }
 0x604   : > { %3512 = vmatpush.bf16.msra.mxu3 %v3482_v57 }
 0x608   : > { %3513 = vmatpush.bf16.msra.mxu3 %v3480_v49 }
 0x60c   : > { %3514 = vmatpush.bf16.msra.mxu3 %v3478_v7 }
 0x610   : > { %3515 = vmatpush.bf16.msra.mxu3 %v3476_v5  ;;  %v3287_v5 = vadd.f32 %v3286_v6, %v6821_v44  ;;  %v3489_v44 = vpop.permute.xlu2 %3488 }
 0x612   : > { %v3376_v23 = vadd.f32 %v3375_v38, %v3287_v5 }
 0x614   : > { %3516 = vmatpush.bf16.msra.mxu3 %v6598_v21  ;;  %v3447_v21 = vmax.f32 %v3381_v33, 0.0  ;;  %v3443_v6 = vmax.f32 %v3376_v23, 0.0  ;;  %v3607_v23 = vlaneseq }
 0x616   : > { %v3483_v15 = vpack.c.bf16 %v3447_v21, %v3445_v48  ;;  %v3481_v31 = vpack.c.bf16 %v3443_v6, %v3441_v61  ;;  %vm3609_vm6 = vcmp.lt.s32.totalorder %v3607_v23, 152 }
 0x618   : > { %3517 = vmatpush.bf16.msra.mxu3 %v6586_v18  ;;  %v3371_v18 = vadd.f32 %v6611_v42, %v3282_v55 }
 0x61a   : > { %v3439_v38 = vmax.f32 %v3371_v18, 0.0 }
 0x61c   : > { %3518 = vmatpush.bf16.msra.mxu3 %v6553_v60  ;;  %v3479_v60 = vpack.c.bf16 %v3439_v38, %v3437_v53 }
 0x61f   : > { %3519 = vmatmul.bf16.vlgmr.msra.gmra.mxu3 %v3495_v19 }
 0x620   : > { %3537 = vmatpush.bf16.msrb.mxu3 %v3485_v14 }
 0x622   : > { %v3507_v58 = vpop.f32.mrf.mxu2 }
 0x623   : > { %v3508_v52 = vadd.f32 %v3507_v58, %v3489_v44 }
 0x624   : > { %3538 = vmatpush.bf16.msrb.mxu3 %v3483_v15 }
 0x628   : > { %3539 = vmatpush.bf16.msrb.mxu3 %v3481_v31 }
 0x62a   : > { %v3509_v26 = vpop.f32.mrf.mxu2 }
 0x62c   : > { %3540 = vmatpush.bf16.msrb.mxu3 %v3479_v60 }
 0x630   : > { %3541 = vmatpush.bf16.msrb.mxu3 %v6595_v62 }
 0x634   : > { %3542 = vmatpush.bf16.msrb.mxu3 %v6584_v22 }
 0x638   : > { %3543 = vmatpush.bf16.msrb.mxu3 %v6551_v8 }
 0x63c   : > { %3544 = vmatpush.bf16.msrb.mxu3 %v6540_v43 }
 0x63f   : > { %3545 = vmatmul.bf16.vlgmr.msrb.gmra.mxu3 %v3495_v19 }
 0x642   : > { %v3533_v42 = vpop.f32.mrf.mxu2 }
 0x643   : > { %v3534_v20 = vadd.f32 %v3533_v42, %v3489_v44 }
 0x64a   : > { %v3535_v13 = vpop.f32.mrf.mxu2 }
 0x6a2   : > { %v3520_v37 = vpop.f32.mrf.mxu3 }
 0x6a3   : > { %v3521_v45 = vadd.f32 %v3520_v37, %v3508_v52 }
 0x6a5   : > { %v3550_v51 = vadd.f32 %v4416_v17, %v3521_v45 }
 0x6a7   : > { %v3552_v4 = vmax.f32 %v3550_v51, 0.0 }
 0x6a9   : > { %v3560_v62 = vmul.f32 %v3558_v11, %v3552_v4 }
 0x6aa   : > { %v3522_v46 = vpop.f32.mrf.mxu3 }
 0x6ab   : > { %v3562_v47 = vrot.slane %v3560_v62, 4 }
 0x6ad   : > { %v3563_v22 = vadd.f32 %v3562_v47, %v3560_v62 }
 0x6af   : > { %v3564_v35 = vrot.slane %v3563_v22, 2 }
 0x6b1   : > { %v3565_v8 = vadd.f32 %v3564_v35, %v3563_v22 }
 0x6b3   : > { %v3566_v36 = vrot.slane %v3565_v8, 1 }
 0x6b5   : > { %v3567_v57 = vadd.f32 %v3566_v36, %v3565_v8 }
 0x6b7   : > { %v3583_v56 = vadd.f32 %v3582_v30, %v3567_v57 }
 0x6b9   : > { %v3585_v2 = vmin.f32 %v3583_v56, 0.0  ;;  %vm3595_vm3 = vcmp.gt.f32.partialorder %v3583_v56, 0.0 }
 0x6bb   : > { %v3587_v16 = vmul.f32 1.442695, %v3585_v2 }
 0x6bd   : > { %4412 = vpow2.f32 %v3587_v16 }
 0x6c2   : > { %v3546_v43 = vpop.f32.mrf.mxu3 }
 0x6c3   : > { %v3547_v29 = vadd.f32 %v3546_v43, %v3534_v20  ;;  %v4413_v10 = vpop.eup %4412 }
 0x6c4   : > { %v4281_v40 = vadd.f32 -1.0, %v4413_v10 }
 0x6c5   : > { %v3551_v12 = vadd.f32 %v4417_v9, %v3547_v29 }
 0x6c6   : > { %v3593_v34 = vmul.f32 1.6732632, %v4281_v40 }
 0x6c7   : > { %v3553_v3 = vmax.f32 %v3551_v12, 0.0 }
 0x6c8   : > { %v3597_v21 = vsel %vm3595_vm3, %v3583_v56, %v3593_v34 }
 0x6c9   : > { %v3561_v41 = vmul.f32 %v3558_v11, %v3553_v3  ;;  %v3599_v55 = vmul.f32 1.050701, %v3597_v21 }
 0x6ca   : > { %v3548_v1 = vpop.f32.mrf.mxu3 }
 0x6cb   : > { %v3569_v49 = vsel %vm3568_vm2, %v3561_v41, 0.0 }
 0x6cc   : > { %v3570_v28 = vrot.slane %v3569_v49, 4 }
 0x6ce   : > { %v3571_v7 = vadd.f32 %v3570_v28, %v3569_v49 }
 0x6d0   : > { %v3572_v27 = vrot.slane %v3571_v7, 2 }
 0x6d2   : > { %v3573_v54 = vadd.f32 %v3572_v27, %v3571_v7 }
 0x6d4   : > { %v3574_v0 = vrot.slane %v3573_v54, 1 }
 0x6d6   : > { %v3575_v25 = vadd.f32 %v3574_v0, %v3573_v54 }
 0x6d8   : > { %v3584_v32 = vadd.f32 %v3582_v30, %v3575_v25 }
 0x6da   : > { %v3586_v50 = vmin.f32 %v3584_v32, 0.0  ;;  %vm3596_vm4 = vcmp.gt.f32.partialorder %v3584_v32, 0.0 }
 0x6dc   : > { %v3589_v33 = vmul.f32 1.442695, %v3586_v50 }
 0x6de   : > { %4414 = vpow2.f32 %v3589_v33 }
 0x6e4   : > { %v4415_v5 = vpop.eup %4414 }
 0x6e5   : > { %v4282_v24 = vadd.f32 -1.0, %v4415_v5 }
 0x6e7   : > { %v3594_v59 = vmul.f32 1.6732632, %v4282_v24 }
 0x6e9   : > { %v3598_v14 = vsel %vm3596_vm4, %v3584_v32, %v3594_v59 }
 0x6ea   : > { %v3600_v19 = vmul.f32 1.050701, %v3598_v14 }
 0x6ec   : > { %v3603_v63 = vrot.slane %v3600_v19, 7 }
 0x6ee   : > { %v3605_v48 = vsel %vm3604_vm5, %v3599_v55, %v3603_v63 }
 0x6ef   : > { %3611 = vst.msk [vmem:[%s332_s10] sm:$0x3] %vm3609_vm6, %v3605_v48 }
 0x6f0 PF: > { %s21_s11 = sadd.s32 1, %s4424_s11  }
 0x6f1   : > { %p18_p4 = scmp.ge.s32.totalorder %s21_s11, 4  }
 0x6f3   :  { %20 = sbr.rel (!%p18_p4) target bundleno = 3 (0x3), region = 90 }

</bundles_post_ra>
